<compile_context>
chip_gen: v7x
topology: tpu7x:2x2x1
jax: 0.10.0
libtpu: 0.0.40
codegen_flags: <defaults>
</compile_context>

<pallas_src>
import math
from functools import partial

import jax
import jax.numpy as jnp
from jax.experimental import pallas as pl
from jax.experimental.pallas import tpu as pltpu

_MM_DTYPE = jnp.bfloat16   # MXU operand dtype; accumulation stays f32.
_LN_EPS = 1e-5
_NEG_INF = -1e9            # finite "minus infinity" for additive masks.


# ------------------- per-generation VMEM limit (explicit) -------------------

def _default_vmem_limit():
    kind = jax.devices()[0].device_kind.lower()
    # v7x: 64 MiB physical VMEM per TensorCore -> leave headroom.
    # v5e / v6e: 128 MiB physical -> raise well above the 16/32 MiB default.
    return (48 << 20) if "v7" in kind else (96 << 20)


_VMEM_LIMIT = _default_vmem_limit()


# -------- probe: single-buffering for grid-invariant (weight) blocks --------

def _probe_copy_kernel(x_ref, o_ref):
    o_ref[...] = x_ref[...]


def _probe_single_buffering():
    """Return pl.Buffered(1) if this JAX/Mosaic supports it, else None."""
    try:
        mode = pl.Buffered(1)
        f = pl.pallas_call(
            _probe_copy_kernel,
            out_shape=jax.ShapeDtypeStruct((8, 128), jnp.float32),
            grid=(2,),
            in_specs=[pl.BlockSpec((8, 128), lambda i: (0, 0),
                                   pipeline_mode=mode)],
            out_specs=pl.BlockSpec((8, 128), lambda i: (0, 0)),
        )
        jax.block_until_ready(f(jnp.zeros((8, 128), jnp.float32)))
        return mode
    except Exception:
        return None


_WEIGHT_BUFFERING = _probe_single_buffering()


def _wspec(shape):
    """Grid-invariant block (weights / biases / LN): fetched once; single-buffered."""
    if _WEIGHT_BUFFERING is not None:
        return pl.BlockSpec(shape, lambda b: (0, 0),
                            pipeline_mode=_WEIGHT_BUFFERING)
    return pl.BlockSpec(shape, lambda b: (0, 0))


# --------------------------- in-kernel helpers ------------------------------

def _residual_layernorm(x, delta, gamma, beta, *, eps):
    """LayerNorm(x + delta) with f32 math. gamma/beta are (1, E)."""
    y = x + delta
    mu = jnp.mean(y, axis=-1, keepdims=True)
    var = jnp.mean(jnp.square(y - mu), axis=-1, keepdims=True)
    return (y - mu) * jax.lax.rsqrt(var + eps) * gamma + beta


def _mha(q, k, v, mask, wo_bf16, ctx_ref, *, nhead):
    """Multi-head attention on VMEM-resident values.

    q: (L, E) f32 (already scaled by 1/sqrt(Dh)), k/v: (S, E) f32,
    mask: (L, S) additive f32 or None, wo_bf16: (E, E) bf16,
    ctx_ref: (L, E) f32 VMEM scratch.
    Per-head (L, Dh) results are written into slices of ctx_ref, then a single
    (L,E)@(E,E) output projection runs with full K=E MXU contraction depth.
    """
    L, E = q.shape
    dh = E // nhead
    qb = q.astype(_MM_DTYPE)
    kb = k.astype(_MM_DTYPE)
    vb = v.astype(_MM_DTYPE)
    contract_last = (((1,), (1,)), ((), ()))      # q @ k^T without a transpose
    for h in range(nhead):
        sl = slice(h * dh, (h + 1) * dh)
        s = jax.lax.dot_general(qb[:, sl], kb[:, sl], contract_last,
                                preferred_element_type=jnp.float32)
        if mask is not None:
            s = s + mask
        s = s - jnp.max(s, axis=-1, keepdims=True)
        p = jnp.exp(s)
        p = p * pl.reciprocal(jnp.sum(p, axis=-1, keepdims=True), approx=True)
        ctx_ref[:, sl] = jnp.dot(p.astype(_MM_DTYPE), vb[:, sl],
                                 preferred_element_type=jnp.float32)
    return jnp.dot(ctx_ref[...].astype(_MM_DTYPE), wo_bf16,
                   preferred_element_type=jnp.float32)


# ------------------------- fused decoder-layer kernel -----------------------

def _decoder_layer_kernel(
        x_ref, mem_ref, tm_ref, pad_ref,
        wqkv_ref, bqkv_ref, wos_ref, bos_ref, g1_ref, be1_ref,
        wq_ref, bq_ref, wkv_ref, bkv_ref, woc_ref, boc_ref, g2_ref, be2_ref,
        w1_ref, b1_ref, w2_ref, b2_ref, g3_ref, be3_ref,
        o_ref, ctx_ref, *, nhead, scale, eps):
    """One full nn.TransformerDecoderLayer (post-norm, ReLU) for one batch row.

    Weight refs are bf16 (cast once in init); activations / LN / softmax f32.
    """
    x = x_ref[0]                                                  # (L, E) f32
    mem = mem_ref[0]                                              # (S, E) f32
    E = x.shape[-1]

    # ---- self-attention sublayer: x = LN(x + SelfMHA(x)) ----
    qkv = jnp.dot(x.astype(_MM_DTYPE), wqkv_ref[...],
                  preferred_element_type=jnp.float32) + bqkv_ref[...]   # (L,3E)
    # combined additive mask built in-kernel: shared (L,L) mask + per-batch
    # (1,L) key-padding row, clamped finite so fully-masked rows cannot NaN.
    mask = jnp.maximum(tm_ref[...] + pad_ref[0], _NEG_INF)              # (L,L)
    attn = _mha(qkv[:, :E] * scale, qkv[:, E:2 * E], qkv[:, 2 * E:], mask,
                wos_ref[...], ctx_ref, nhead=nhead) + bos_ref[...]
    x = _residual_layernorm(x, attn, g1_ref[...], be1_ref[...], eps=eps)

    # ---- cross-attention sublayer: x = LN(x + CrossMHA(x, memory)) ----
    # (memory_mask / memory_key_padding_mask are None in the reference call)
    q = jnp.dot(x.astype(_MM_DTYPE), wq_ref[...],
                preferred_element_type=jnp.float32) + bq_ref[...]
    kv = jnp.dot(mem.astype(_MM_DTYPE), wkv_ref[...],
                 preferred_element_type=jnp.float32) + bkv_ref[...]     # (S,2E)
    attn = _mha(q * scale, kv[:, :E], kv[:, E:], None,
                woc_ref[...], ctx_ref, nhead=nhead) + boc_ref[...]
    x = _residual_layernorm(x, attn, g2_ref[...], be2_ref[...], eps=eps)

    # ---- FFN sublayer: x = LN(x + W2 relu(W1 x)) ----
    h = jnp.dot(x.astype(_MM_DTYPE), w1_ref[...],
                preferred_element_type=jnp.float32) + b1_ref[...]
    h = jnp.maximum(h, 0.0)
    f = jnp.dot(h.astype(_MM_DTYPE), w2_ref[...],
                preferred_element_type=jnp.float32) + b2_ref[...]
    o_ref[0] = _residual_layernorm(x, f, g3_ref[...], be3_ref[...], eps=eps)


def decoder_layer(x, memory, tgt_mask, pad_add, lp, *, nhead):
    B, L, E = x.shape
    S = memory.shape[1]
    H = lp["w1"].shape[1]
    scale = 1.0 / math.sqrt(E // nhead)

    in_specs = [
        pl.BlockSpec((1, L, E), lambda b: (b, 0, 0)),   # x
        pl.BlockSpec((1, S, E), lambda b: (b, 0, 0)),   # memory
        _wspec((L, L)),                                 # shared additive tgt mask
        pl.BlockSpec((1, 1, L), lambda b: (b, 0, 0)),   # per-batch padding row
        _wspec((E, 3 * E)), _wspec((1, 3 * E)),         # fused Wqkv (bf16), bqkv
        _wspec((E, E)), _wspec((1, E)),                 # Wo self, bo
        _wspec((1, E)), _wspec((1, E)),                 # ln1 gamma, beta
        _wspec((E, E)), _wspec((1, E)),                 # Wq, bq
        _wspec((E, 2 * E)), _wspec((1, 2 * E)),         # fused Wkv, bkv
        _wspec((E, E)), _wspec((1, E)),                 # Wo cross, bo
        _wspec((1, E)), _wspec((1, E)),                 # ln2 gamma, beta
        _wspec((E, H)), _wspec((1, H)),                 # W1, b1
        _wspec((H, E)), _wspec((1, E)),                 # W2, b2
        _wspec((1, E)), _wspec((1, E)),                 # ln3 gamma, beta
    ]
    return pl.pallas_call(
        partial(_decoder_layer_kernel, nhead=nhead, scale=scale, eps=_LN_EPS),
        out_shape=jax.ShapeDtypeStruct((B, L, E), jnp.float32),
        grid=(B,),
        in_specs=in_specs,
        out_specs=pl.BlockSpec((1, L, E), lambda b: (b, 0, 0)),
        scratch_shapes=[pltpu.VMEM((L, E), jnp.float32)],   # per-head ctx slab
        compiler_params=pltpu.CompilerParams(
            dimension_semantics=("parallel",),
            vmem_limit_bytes=_VMEM_LIMIT),
    )(x, memory, tgt_mask, pad_add,
      lp["wqkv"], lp["bqkv"], lp["wo_s"], lp["bo_s"], lp["ln1_g"], lp["ln1_b"],
      lp["wq"], lp["bq"], lp["wkv"], lp["bkv"], lp["wo_c"], lp["bo_c"],
      lp["ln2_g"], lp["ln2_b"],
      lp["w1"], lp["b1"], lp["w2"], lp["b2"], lp["ln3_g"], lp["ln3_b"])


# --------------------------- tiled vocab projection -------------------------

def _dense_kernel(x_ref, w_ref, b_ref, o_ref):
    # One (L, E) @ (E, TN) tile; TN is a multiple of 128 -> lane-dense stores.
    o_ref[0] = (jnp.dot(x_ref[0].astype(_MM_DTYPE), w_ref[...],
                        preferred_element_type=jnp.float32) + b_ref[...])


def dense_head(x, w_pad, b_pad):
    B, L, E = x.shape
    Vp = w_pad.shape[1]
    TN = 512 if Vp % 512 == 0 else (256 if Vp % 256 == 0 else 128)
    TN = min(TN, Vp)
    return pl.pallas_call(
        _dense_kernel,
        out_shape=jax.ShapeDtypeStruct((B, L, Vp), jnp.float32),
        grid=(B, Vp // TN),
        in_specs=[
            pl.BlockSpec((1, L, E), lambda b, j: (b, 0, 0)),
            pl.BlockSpec((E, TN), lambda b, j: (0, j)),      # bf16 weight tile
            pl.BlockSpec((1, TN), lambda b, j: (0, j)),
        ],
        out_specs=pl.BlockSpec((1, L, TN), lambda b, j: (b, 0, j)),
        compiler_params=pltpu.CompilerParams(
            dimension_semantics=("parallel", "parallel"),
            vmem_limit_bytes=_VMEM_LIMIT),
    )(x, w_pad, b_pad)


# --------------------------- model forward (glue) ---------------------------

def transformer_decoder_forward(params, target, memory, target_mask,
                                target_padding_mask, *, nhead):
    B, L = target.shape

    # token embedding (gather is glue; not the hot path)
    emb = jnp.take(params["embedding"], target, axis=0)           # (B, L, E)
    # positional encoding (dropout = identity in eval mode)
    x = emb + params["pe"][:L, 0, :][None, :, :]                  # (B, L, E)

    # shared (L,L) additive mask, clamped finite; per-batch (1,L) padding row.
    tm = jnp.maximum(target_mask.astype(jnp.float32), jnp.float32(_NEG_INF))
    pad_add = jnp.where(target_padding_mask, jnp.float32(_NEG_INF),
                        jnp.float32(0.0))[:, None, :]             # (B, 1, L)

    for lp in params["layers"]:
        x = decoder_layer(x, memory, tm, pad_add, lp, nhead=nhead)

    logits_p = dense_head(x, params["dense_w"], params["dense_b"])
    V = params["embedding"].shape[0]
    return logits_p[:, :, :V]                                     # slice padding


# ------------------------------ init helpers -------------------------------

def init_params(key, vocab_dim, embedding_dim, hidden_size, n_layers, max_length):
    E, H, V = embedding_dim, hidden_size, vocab_dim
    Vp = ((V + 127) // 128) * 128                                 # lane-dense pad

    def w_bf16(k, shape, scale=0.02):
        # weights live in bf16 in HBM (cast once here, never in-kernel)
        return (scale * jax.random.normal(k, shape)).astype(_MM_DTYPE)

    keys = iter(jax.random.split(key, 2 + n_layers * 7))

    # sinusoidal positional encoding buffer, shape (max_len, 1, E)
    position = jnp.arange(max_length, dtype=jnp.float32)[:, None]
    div_term = jnp.exp(jnp.arange(0, E, 2, dtype=jnp.float32)
                       * (-math.log(10000.0) / E))
    pe = jnp.zeros((max_length, 1, E), jnp.float32)
    pe = pe.at[:, 0, 0::2].set(jnp.sin(position * div_term))
    pe = pe.at[:, 0, 1::2].set(jnp.cos(position * div_term))

    layers = []
    for _ in range(n_layers):
        layers.append({
            "wqkv": w_bf16(next(keys), (E, 3 * E)),
            "bqkv": jnp.zeros((1, 3 * E), jnp.float32),
            "wo_s": w_bf16(next(keys), (E, E)),
            "bo_s": jnp.zeros((1, E), jnp.float32),
            "ln1_g": jnp.ones((1, E), jnp.float32),
            "ln1_b": jnp.zeros((1, E), jnp.float32),
            "wq": w_bf16(next(keys), (E, E)),
            "bq": jnp.zeros((1, E), jnp.float32),
            "wkv": w_bf16(next(keys), (E, 2 * E)),
            "bkv": jnp.zeros((1, 2 * E), jnp.float32),
            "wo_c": w_bf16(next(keys), (E, E)),
            "bo_c": jnp.zeros((1, E), jnp.float32),
            "ln2_g": jnp.ones((1, E), jnp.float32),
            "ln2_b": jnp.zeros((1, E), jnp.float32),
            "w1": w_bf16(next(keys), (E, H)),
            "b1": jnp.zeros((1, H), jnp.float32),
            "w2": w_bf16(next(keys), (H, E)),
            "b2": jnp.zeros((1, E), jnp.float32),
            "ln3_g": jnp.ones((1, E), jnp.float32),
            "ln3_b": jnp.zeros((1, E), jnp.float32),
        })

    dense_w = jnp.zeros((E, Vp), _MM_DTYPE).at[:, :V].set(
        w_bf16(next(keys), (E, V)))
    return {
        "embedding": (jax.random.normal(next(keys), (V, E))).astype(jnp.float32),
        "pe": pe,
        "layers": layers,
        "dense_w": dense_w,                       # (E, Vp) bf16, lane-padded
        "dense_b": jnp.zeros((1, Vp), jnp.float32),
    }


# ----------------------------------- main -----------------------------------

if __name__ == "__main__":
    vocab_dim, embedding_dim, hidden_size = 50, 32, 64
    nhead, n_layers, max_length = 4, 2, 8
    B, L, S = 2, 8, 8   # L == max_length; memory has S tokens of width E

    root = jax.random.PRNGKey(0)
    k_par, k_tgt, k_mem = jax.random.split(root, 3)

    params = init_params(k_par, vocab_dim, embedding_dim, hidden_size,
                         n_layers, max_length)

    target = jax.random.randint(k_tgt, (B, L), 0, vocab_dim, dtype=jnp.int32)
    memory = jax.random.normal(k_mem, (B, S, embedding_dim), dtype=jnp.float32)

    # causal float mask (L, L): 0 on/below diagonal, -inf above (like
    # nn.Transformer.generate_square_subsequent_mask); clamped finite inside.
    causal = jnp.triu(jnp.ones((L, L), jnp.bool_), k=1)
    target_mask = jnp.where(causal, -jnp.inf, 0.0).astype(jnp.float32)

    # bool key-padding mask (B, L): True = ignore; pad the tail of batch 1
    target_padding_mask = jnp.zeros((B, L), jnp.bool_).at[1, L - 2:].set(True)

    fwd = jax.jit(partial(transformer_decoder_forward, nhead=nhead))
    logits = fwd(params, target, memory, target_mask, target_padding_mask)
    jax.block_until_ready(logits)

    assert logits.shape == (B, L, vocab_dim)
    assert bool(jnp.all(jnp.isfinite(logits)))
    print("KERNEL_OK")
</pallas_src>

<mosaic_0001>
module attributes {stable_mosaic.version = 11 : i64} {
  func.func @_probe_copy_kernel(%arg0: i32, %arg1: memref<8x128xf32, #tpu.memory_space<vmem>>, %arg2: memref<8x128xf32, #tpu.memory_space<vmem>>) attributes {dimension_semantics = [#tpu.dimension_semantics<arbitrary>], iteration_bounds = array<i64: 2>, scalar_prefetch = 0 : i64, scratch_operands = 0 : i64, tpu.core_type = #tpu.core_type<tc>, window_params = [{pipeline_mode = #tpu.pipeline_mode<synchronous>, transform_indices = @transform_0, window_bounds = array<i64: 8, 128>}, {pipeline_mode = #tpu.pipeline_mode<synchronous>, transform_indices = @transform_1, window_bounds = array<i64: 8, 128>}]} {
    %c0 = arith.constant 0 : index
    %c0_0 = arith.constant 0 : index
    %0 = vector.load %arg1[%c0, %c0_0] : memref<8x128xf32, #tpu.memory_space<vmem>>, vector<8x128xf32>
    %c0_1 = arith.constant 0 : index
    %c0_2 = arith.constant 0 : index
    %1 = vector.load %arg2[%c0_1, %c0_2] : memref<8x128xf32, #tpu.memory_space<vmem>>, vector<8x128xf32>
    tpu.vector_store %arg2[%c0_1, %c0_2], %0 {strides = array<i32>} : memref<8x128xf32, #tpu.memory_space<vmem>>, vector<8x128xf32>,
    return
  }
  func.func @transform_0(%arg0: i32) -> (i32, i32) {
    %c0_i32 = arith.constant 0 : i32
    %c0_i32_0 = arith.constant 0 : i32
    %c0_i32_1 = arith.constant 0 : i32
    return %c0_i32, %c0_i32_0 : i32, i32
  }
  func.func @transform_1(%arg0: i32) -> (i32, i32) {
    %c0_i32 = arith.constant 0 : i32
    %c0_i32_0 = arith.constant 0 : i32
    %c0_i32_1 = arith.constant 0 : i32
    return %c0_i32, %c0_i32_0 : i32, i32
  }
}

module attributes {stable_mosaic.version = 11 : i64} {
  func.func @_dense_kernel(%arg0: i32, %arg1: i32, %arg2: memref<1x8x32xf32, #tpu.memory_space<vmem>>, %arg3: memref<32x128xbf16, #tpu.memory_space<vmem>>, %arg4: memref<1x128xf32, #tpu.memory_space<vmem>>, %arg5: memref<1x8x128xf32, #tpu.memory_space<vmem>>) attributes {dimension_semantics = [#tpu.dimension_semantics<parallel>, #tpu.dimension_semantics<parallel>], iteration_bounds = array<i64: 2, 1>, scalar_prefetch = 0 : i64, scratch_operands = 0 : i64, tpu.core_type = #tpu.core_type<tc>, window_params = [{transform_indices = @transform_0, window_bounds = array<i64: 1, 8, 32>}, {transform_indices = @transform_1, window_bounds = array<i64: 32, 128>}, {transform_indices = @transform_2, window_bounds = array<i64: 1, 128>}, {transform_indices = @transform_3, window_bounds = array<i64: 1, 8, 128>}]} {
    %c0 = arith.constant 0 : index
    %c0_0 = arith.constant 0 : index
    %c0_1 = arith.constant 0 : index
    %0 = vector.load %arg2[%c0, %c0_0, %c0_1] : memref<1x8x32xf32, #tpu.memory_space<vmem>>, vector<1x8x32xf32>
    %1 = vector.shape_cast %0 : vector<1x8x32xf32> to vector<8x32xf32>
    %2 = arith.truncf %1 : vector<8x32xf32> to vector<8x32xbf16>
    %c0_2 = arith.constant 0 : index
    %c0_3 = arith.constant 0 : index
    %3 = vector.load %arg3[%c0_2, %c0_3] : memref<32x128xbf16, #tpu.memory_space<vmem>>, vector<32x128xbf16>
    %cst = arith.constant dense<0.000000e+00> : vector<8x128xf32>
    %4 = tpu.matmul %2, %3, %cst {dimension_numbers = #tpu.dot_dimension_numbers<[1], [0], [0], [1], [0, 0, 1, 1], [], []>} : vector<8x32xbf16>, vector<32x128xbf16>, vector<8x128xf32> -> vector<8x128xf32>
    %c0_4 = arith.constant 0 : index
    %c0_5 = arith.constant 0 : index
    %5 = vector.load %arg4[%c0_4, %c0_5] : memref<1x128xf32, #tpu.memory_space<vmem>>, vector<1x128xf32>
    %6 = vector.broadcast %5 : vector<1x128xf32> to vector<8x128xf32>
    %7 = arith.addf %4, %6 : vector<8x128xf32>
    %c0_6 = arith.constant 0 : index
    %c0_7 = arith.constant 0 : index
    %c0_8 = arith.constant 0 : index
    %8 = vector.load %arg5[%c0_6, %c0_7, %c0_8] : memref<1x8x128xf32, #tpu.memory_space<vmem>>, vector<1x8x128xf32>
    %9 = vector.shape_cast %8 : vector<1x8x128xf32> to vector<8x128xf32>
    %10 = vector.shape_cast %7 : vector<8x128xf32> to vector<1x8x128xf32>
    tpu.vector_store %arg5[%c0_6, %c0_7, %c0_8], %10 {strides = array<i32>} : memref<1x8x128xf32, #tpu.memory_space<vmem>>, vector<1x8x128xf32>,
    return
  }
  func.func @transform_0(%arg0: i32, %arg1: i32) -> (i32, i32, i32) {
    %c0_i32 = arith.constant 0 : i32
    %c0_i32_0 = arith.constant 0 : i32
    %c0_i32_1 = arith.constant 0 : i32
    return %arg0, %c0_i32, %c0_i32_0 : i32, i32, i32
  }
  func.func @transform_1(%arg0: i32, %arg1: i32) -> (i32, i32) {
    %c0_i32 = arith.constant 0 : i32
    %c0_i32_0 = arith.constant 0 : i32
    return %c0_i32, %arg1 : i32, i32
  }
  func.func @transform_2(%arg0: i32, %arg1: i32) -> (i32, i32) {
    %c0_i32 = arith.constant 0 : i32
    %c0_i32_0 = arith.constant 0 : i32
    return %c0_i32, %arg1 : i32, i32
  }
  func.func @transform_3(%arg0: i32, %arg1: i32) -> (i32, i32, i32) {
    %c0_i32 = arith.constant 0 : i32
    %c0_i32_0 = arith.constant 0 : i32
    return %arg0, %c0_i32, %arg1 : i32, i32, i32
  }
}

module attributes {stable_mosaic.version = 11 : i64} {
  func.func @_decoder_layer_kernel(%arg0: i32, %arg1: memref<1x8x32xf32, #tpu.memory_space<vmem>>, %arg2: memref<1x8x32xf32, #tpu.memory_space<vmem>>, %arg3: memref<8x8xf32, #tpu.memory_space<vmem>>, %arg4: memref<1x1x8xf32, #tpu.memory_space<vmem>>, %arg5: memref<32x96xbf16, #tpu.memory_space<vmem>>, %arg6: memref<1x96xf32, #tpu.memory_space<vmem>>, %arg7: memref<32x32xbf16, #tpu.memory_space<vmem>>, %arg8: memref<1x32xf32, #tpu.memory_space<vmem>>, %arg9: memref<1x32xf32, #tpu.memory_space<vmem>>, %arg10: memref<1x32xf32, #tpu.memory_space<vmem>>, %arg11: memref<32x32xbf16, #tpu.memory_space<vmem>>, %arg12: memref<1x32xf32, #tpu.memory_space<vmem>>, %arg13: memref<32x64xbf16, #tpu.memory_space<vmem>>, %arg14: memref<1x64xf32, #tpu.memory_space<vmem>>, %arg15: memref<32x32xbf16, #tpu.memory_space<vmem>>, %arg16: memref<1x32xf32, #tpu.memory_space<vmem>>, %arg17: memref<1x32xf32, #tpu.memory_space<vmem>>, %arg18: memref<1x32xf32, #tpu.memory_space<vmem>>, %arg19: memref<32x64xbf16, #tpu.memory_space<vmem>>, %arg20: memref<1x64xf32, #tpu.memory_space<vmem>>, %arg21: memref<64x32xbf16, #tpu.memory_space<vmem>>, %arg22: memref<1x32xf32, #tpu.memory_space<vmem>>, %arg23: memref<1x32xf32, #tpu.memory_space<vmem>>, %arg24: memref<1x32xf32, #tpu.memory_space<vmem>>, %arg25: memref<1x8x32xf32, #tpu.memory_space<vmem>>, %arg26: memref<8x32xf32, #tpu.memory_space<vmem>>) attributes {dimension_semantics = [#tpu.dimension_semantics<parallel>], iteration_bounds = array<i64: 2>, scalar_prefetch = 0 : i64, scratch_operands = 1 : i64, tpu.core_type = #tpu.core_type<tc>, window_params = [{transform_indices = @transform_0, window_bounds = array<i64: 1, 8, 32>}, {transform_indices = @transform_1, window_bounds = array<i64: 1, 8, 32>}, {pipeline_mode = #tpu.pipeline_mode<synchronous>, transform_indices = @transform_2, window_bounds = array<i64: 8, 8>}, {transform_indices = @transform_3, window_bounds = array<i64: 1, 1, 8>}, {pipeline_mode = #tpu.pipeline_mode<synchronous>, transform_indices = @transform_4, window_bounds = array<i64: 32, 96>}, {pipeline_mode = #tpu.pipeline_mode<synchronous>, transform_indices = @transform_5, window_bounds = array<i64: 1, 96>}, {pipeline_mode = #tpu.pipeline_mode<synchronous>, transform_indices = @transform_6, window_bounds = array<i64: 32, 32>}, {pipeline_mode = #tpu.pipeline_mode<synchronous>, transform_indices = @transform_7, window_bounds = array<i64: 1, 32>}, {pipeline_mode = #tpu.pipeline_mode<synchronous>, transform_indices = @transform_8, window_bounds = array<i64: 1, 32>}, {pipeline_mode = #tpu.pipeline_mode<synchronous>, transform_indices = @transform_9, window_bounds = array<i64: 1, 32>}, {pipeline_mode = #tpu.pipeline_mode<synchronous>, transform_indices = @transform_10, window_bounds = array<i64: 32, 32>}, {pipeline_mode = #tpu.pipeline_mode<synchronous>, transform_indices = @transform_11, window_bounds = array<i64: 1, 32>}, {pipeline_mode = #tpu.pipeline_mode<synchronous>, transform_indices = @transform_12, window_bounds = array<i64: 32, 64>}, {pipeline_mode = #tpu.pipeline_mode<synchronous>, transform_indices = @transform_13, window_bounds = array<i64: 1, 64>}, {pipeline_mode = #tpu.pipeline_mode<synchronous>, transform_indices = @transform_14, window_bounds = array<i64: 32, 32>}, {pipeline_mode = #tpu.pipeline_mode<synchronous>, transform_indices = @transform_15, window_bounds = array<i64: 1, 32>}, {pipeline_mode = #tpu.pipeline_mode<synchronous>, transform_indices = @transform_16, window_bounds = array<i64: 1, 32>}, {pipeline_mode = #tpu.pipeline_mode<synchronous>, transform_indices = @transform_17, window_bounds = array<i64: 1, 32>}, {pipeline_mode = #tpu.pipeline_mode<synchronous>, transform_indices = @transform_18, window_bounds = array<i64: 32, 64>}, {pipeline_mode = #tpu.pipeline_mode<synchronous>, transform_indices = @transform_19, window_bounds = array<i64: 1, 64>}, {pipeline_mode = #tpu.pipeline_mode<synchronous>, transform_indices = @transform_20, window_bounds = array<i64: 64, 32>}, {pipeline_mode = #tpu.pipeline_mode<synchronous>, transform_indices = @transform_21, window_bounds = array<i64: 1, 32>}, {pipeline_mode = #tpu.pipeline_mode<synchronous>, transform_indices = @transform_22, window_bounds = array<i64: 1, 32>}, {pipeline_mode = #tpu.pipeline_mode<synchronous>, transform_indices = @transform_23, window_bounds = array<i64: 1, 32>}, {transform_indices = @transform_24, window_bounds = array<i64: 1, 8, 32>}]} {
    %c0 = arith.constant 0 : index
    %c0_0 = arith.constant 0 : index
    %c0_1 = arith.constant 0 : index
    %0 = vector.load %arg1[%c0, %c0_0, %c0_1] : memref<1x8x32xf32, #tpu.memory_space<vmem>>, vector<1x8x32xf32>
    %1 = vector.shape_cast %0 : vector<1x8x32xf32> to vector<8x32xf32>
    %c0_2 = arith.constant 0 : index
    %c0_3 = arith.constant 0 : index
    %c0_4 = arith.constant 0 : index
    %2 = vector.load %arg2[%c0_2, %c0_3, %c0_4] : memref<1x8x32xf32, #tpu.memory_space<vmem>>, vector<1x8x32xf32>
    %3 = vector.shape_cast %2 : vector<1x8x32xf32> to vector<8x32xf32>
    %4 = arith.truncf %1 : vector<8x32xf32> to vector<8x32xbf16>
    %c0_5 = arith.constant 0 : index
    %c0_6 = arith.constant 0 : index
    %5 = vector.load %arg5[%c0_5, %c0_6] : memref<32x96xbf16, #tpu.memory_space<vmem>>, vector<32x96xbf16>
    %cst = arith.constant dense<0.000000e+00> : vector<8x96xf32>
    %6 = tpu.matmul %4, %5, %cst {dimension_numbers = #tpu.dot_dimension_numbers<[1], [0], [0], [1], [0, 0, 1, 1], [], []>} : vector<8x32xbf16>, vector<32x96xbf16>, vector<8x96xf32> -> vector<8x96xf32>
    %c0_7 = arith.constant 0 : index
    %c0_8 = arith.constant 0 : index
    %7 = vector.load %arg6[%c0_7, %c0_8] : memref<1x96xf32, #tpu.memory_space<vmem>>, vector<1x96xf32>
    %8 = vector.broadcast %7 : vector<1x96xf32> to vector<8x96xf32>
    %9 = arith.addf %6, %8 : vector<8x96xf32>
    %c0_9 = arith.constant 0 : index
    %c0_10 = arith.constant 0 : index
    %10 = vector.load %arg3[%c0_9, %c0_10] : memref<8x8xf32, #tpu.memory_space<vmem>>, vector<8x8xf32>
    %c0_11 = arith.constant 0 : index
    %c0_12 = arith.constant 0 : index
    %c0_13 = arith.constant 0 : index
    %11 = vector.load %arg4[%c0_11, %c0_12, %c0_13] : memref<1x1x8xf32, #tpu.memory_space<vmem>>, vector<1x1x8xf32>
    %12 = vector.shape_cast %11 : vector<1x1x8xf32> to vector<1x8xf32>
    %13 = vector.broadcast %12 : vector<1x8xf32> to vector<8x8xf32>
    %14 = arith.addf %10, %13 : vector<8x8xf32>
    %cst_14 = arith.constant -1.000000e+09 : f32
    %15 = vector.broadcast %cst_14 : f32 to vector<8x8xf32>
    %16 = arith.maximumf %14, %15 : vector<8x8xf32>
    %17 = vector.extract_strided_slice %9 {offsets = [0, 0], sizes = [8, 32], strides = [1, 1]} : vector<8x96xf32> to vector<8x32xf32>
    %cst_15 = arith.constant 0.353553385 : f32
    %18 = vector.broadcast %cst_15 : f32 to vector<8x32xf32>
    %19 = arith.mulf %17, %18 : vector<8x32xf32>
    %20 = vector.extract_strided_slice %9 {offsets = [0, 32], sizes = [8, 32], strides = [1, 1]} : vector<8x96xf32> to vector<8x32xf32>
    %21 = vector.extract_strided_slice %9 {offsets = [0, 64], sizes = [8, 32], strides = [1, 1]} : vector<8x96xf32> to vector<8x32xf32>
    %c0_16 = arith.constant 0 : index
    %c0_17 = arith.constant 0 : index
    %22 = vector.load %arg7[%c0_16, %c0_17] : memref<32x32xbf16, #tpu.memory_space<vmem>>, vector<32x32xbf16>
    %23 = arith.truncf %19 : vector<8x32xf32> to vector<8x32xbf16>
    %24 = arith.truncf %20 : vector<8x32xf32> to vector<8x32xbf16>
    %25 = arith.truncf %21 : vector<8x32xf32> to vector<8x32xbf16>
    %26 = vector.extract_strided_slice %23 {offsets = [0, 0], sizes = [8, 8], strides = [1, 1]} : vector<8x32xbf16> to vector<8x8xbf16>
    %27 = vector.extract_strided_slice %24 {offsets = [0, 0], sizes = [8, 8], strides = [1, 1]} : vector<8x32xbf16> to vector<8x8xbf16>
    %cst_18 = arith.constant dense<0.000000e+00> : vector<8x8xf32>
    %28 = tpu.matmul %26, %27, %cst_18 {dimension_numbers = #tpu.dot_dimension_numbers<[1], [1], [0], [0], [0, 0, 1, 0], [], []>} : vector<8x8xbf16>, vector<8x8xbf16>, vector<8x8xf32> -> vector<8x8xf32>
    %29 = arith.addf %28, %16 : vector<8x8xf32>
    %cst_19 = arith.constant dense<0xFF800000> : vector<8xf32>
    %30 = vector.multi_reduction <maximumf>, %29, %cst_19 [1] : vector<8x8xf32> to vector<8xf32>
    %31 = vector.shape_cast %30 : vector<8xf32> to vector<8x1xf32>
    %32 = vector.broadcast %31 : vector<8x1xf32> to vector<8x8xf32>
    %33 = arith.subf %29, %32 : vector<8x8xf32>
    %34 = math.exp %33 : vector<8x8xf32>
    %cst_20 = arith.constant dense<0.000000e+00> : vector<8xf32>
    %35 = vector.multi_reduction <add>, %34, %cst_20 [1] : vector<8x8xf32> to vector<8xf32>
    %36 = vector.shape_cast %35 : vector<8xf32> to vector<8x1xf32>
    %37 = tpu.reciprocal %36 {approx = true} : vector<8x1xf32> -> vector<8x1xf32>
    %38 = vector.broadcast %37 : vector<8x1xf32> to vector<8x8xf32>
    %39 = arith.mulf %34, %38 : vector<8x8xf32>
    %40 = arith.truncf %39 : vector<8x8xf32> to vector<8x8xbf16>
    %41 = vector.extract_strided_slice %25 {offsets = [0, 0], sizes = [8, 8], strides = [1, 1]} : vector<8x32xbf16> to vector<8x8xbf16>
    %cst_21 = arith.constant dense<0.000000e+00> : vector<8x8xf32>
    %42 = tpu.matmul %40, %41, %cst_21 {dimension_numbers = #tpu.dot_dimension_numbers<[1], [0], [0], [1], [0, 0, 1, 1], [], []>} : vector<8x8xbf16>, vector<8x8xbf16>, vector<8x8xf32> -> vector<8x8xf32>
    %c0_22 = arith.constant 0 : index
    %c0_23 = arith.constant 0 : index
    %43 = vector.load %arg26[%c0_22, %c0_23] : memref<8x32xf32, #tpu.memory_space<vmem>>, vector<8x8xf32>
    tpu.vector_store %arg26[%c0_22, %c0_23], %42 {strides = array<i32>} : memref<8x32xf32, #tpu.memory_space<vmem>>, vector<8x8xf32>,
    %44 = vector.extract_strided_slice %23 {offsets = [0, 8], sizes = [8, 8], strides = [1, 1]} : vector<8x32xbf16> to vector<8x8xbf16>
    %45 = vector.extract_strided_slice %24 {offsets = [0, 8], sizes = [8, 8], strides = [1, 1]} : vector<8x32xbf16> to vector<8x8xbf16>
    %cst_24 = arith.constant dense<0.000000e+00> : vector<8x8xf32>
    %46 = tpu.matmul %44, %45, %cst_24 {dimension_numbers = #tpu.dot_dimension_numbers<[1], [1], [0], [0], [0, 0, 1, 0], [], []>} : vector<8x8xbf16>, vector<8x8xbf16>, vector<8x8xf32> -> vector<8x8xf32>
    %47 = arith.addf %46, %16 : vector<8x8xf32>
    %cst_25 = arith.constant dense<0xFF800000> : vector<8xf32>
    %48 = vector.multi_reduction <maximumf>, %47, %cst_25 [1] : vector<8x8xf32> to vector<8xf32>
    %49 = vector.shape_cast %48 : vector<8xf32> to vector<8x1xf32>
    %50 = vector.broadcast %49 : vector<8x1xf32> to vector<8x8xf32>
    %51 = arith.subf %47, %50 : vector<8x8xf32>
    %52 = math.exp %51 : vector<8x8xf32>
    %cst_26 = arith.constant dense<0.000000e+00> : vector<8xf32>
    %53 = vector.multi_reduction <add>, %52, %cst_26 [1] : vector<8x8xf32> to vector<8xf32>
    %54 = vector.shape_cast %53 : vector<8xf32> to vector<8x1xf32>
    %55 = tpu.reciprocal %54 {approx = true} : vector<8x1xf32> -> vector<8x1xf32>
    %56 = vector.broadcast %55 : vector<8x1xf32> to vector<8x8xf32>
    %57 = arith.mulf %52, %56 : vector<8x8xf32>
    %58 = arith.truncf %57 : vector<8x8xf32> to vector<8x8xbf16>
    %59 = vector.extract_strided_slice %25 {offsets = [0, 8], sizes = [8, 8], strides = [1, 1]} : vector<8x32xbf16> to vector<8x8xbf16>
    %cst_27 = arith.constant dense<0.000000e+00> : vector<8x8xf32>
    %60 = tpu.matmul %58, %59, %cst_27 {dimension_numbers = #tpu.dot_dimension_numbers<[1], [0], [0], [1], [0, 0, 1, 1], [], []>} : vector<8x8xbf16>, vector<8x8xbf16>, vector<8x8xf32> -> vector<8x8xf32>
    %c0_28 = arith.constant 0 : index
    %c8 = arith.constant 8 : index
    %61 = vector.load %arg26[%c0_28, %c8] : memref<8x32xf32, #tpu.memory_space<vmem>>, vector<8x8xf32>
    tpu.vector_store %arg26[%c0_28, %c8], %60 {strides = array<i32>} : memref<8x32xf32, #tpu.memory_space<vmem>>, vector<8x8xf32>,
    %62 = vector.extract_strided_slice %23 {offsets = [0, 16], sizes = [8, 8], strides = [1, 1]} : vector<8x32xbf16> to vector<8x8xbf16>
    %63 = vector.extract_strided_slice %24 {offsets = [0, 16], sizes = [8, 8], strides = [1, 1]} : vector<8x32xbf16> to vector<8x8xbf16>
    %cst_29 = arith.constant dense<0.000000e+00> : vector<8x8xf32>
    %64 = tpu.matmul %62, %63, %cst_29 {dimension_numbers = #tpu.dot_dimension_numbers<[1], [1], [0], [0], [0, 0, 1, 0], [], []>} : vector<8x8xbf16>, vector<8x8xbf16>, vector<8x8xf32> -> vector<8x8xf32>
    %65 = arith.addf %64, %16 : vector<8x8xf32>
    %cst_30 = arith.constant dense<0xFF800000> : vector<8xf32>
    %66 = vector.multi_reduction <maximumf>, %65, %cst_30 [1] : vector<8x8xf32> to vector<8xf32>
    %67 = vector.shape_cast %66 : vector<8xf32> to vector<8x1xf32>
    %68 = vector.broadcast %67 : vector<8x1xf32> to vector<8x8xf32>
    %69 = arith.subf %65, %68 : vector<8x8xf32>
    %70 = math.exp %69 : vector<8x8xf32>
    %cst_31 = arith.constant dense<0.000000e+00> : vector<8xf32>
    %71 = vector.multi_reduction <add>, %70, %cst_31 [1] : vector<8x8xf32> to vector<8xf32>
    %72 = vector.shape_cast %71 : vector<8xf32> to vector<8x1xf32>
    %73 = tpu.reciprocal %72 {approx = true} : vector<8x1xf32> -> vector<8x1xf32>
    %74 = vector.broadcast %73 : vector<8x1xf32> to vector<8x8xf32>
    %75 = arith.mulf %70, %74 : vector<8x8xf32>
    %76 = arith.truncf %75 : vector<8x8xf32> to vector<8x8xbf16>
    %77 = vector.extract_strided_slice %25 {offsets = [0, 16], sizes = [8, 8], strides = [1, 1]} : vector<8x32xbf16> to vector<8x8xbf16>
    %cst_32 = arith.constant dense<0.000000e+00> : vector<8x8xf32>
    %78 = tpu.matmul %76, %77, %cst_32 {dimension_numbers = #tpu.dot_dimension_numbers<[1], [0], [0], [1], [0, 0, 1, 1], [], []>} : vector<8x8xbf16>, vector<8x8xbf16>, vector<8x8xf32> -> vector<8x8xf32>
    %c0_33 = arith.constant 0 : index
    %c16 = arith.constant 16 : index
    %79 = vector.load %arg26[%c0_33, %c16] : memref<8x32xf32, #tpu.memory_space<vmem>>, vector<8x8xf32>
    tpu.vector_store %arg26[%c0_33, %c16], %78 {strides = array<i32>} : memref<8x32xf32, #tpu.memory_space<vmem>>, vector<8x8xf32>,
    %80 = vector.extract_strided_slice %23 {offsets = [0, 24], sizes = [8, 8], strides = [1, 1]} : vector<8x32xbf16> to vector<8x8xbf16>
    %81 = vector.extract_strided_slice %24 {offsets = [0, 24], sizes = [8, 8], strides = [1, 1]} : vector<8x32xbf16> to vector<8x8xbf16>
    %cst_34 = arith.constant dense<0.000000e+00> : vector<8x8xf32>
    %82 = tpu.matmul %80, %81, %cst_34 {dimension_numbers = #tpu.dot_dimension_numbers<[1], [1], [0], [0], [0, 0, 1, 0], [], []>} : vector<8x8xbf16>, vector<8x8xbf16>, vector<8x8xf32> -> vector<8x8xf32>
    %83 = arith.addf %82, %16 : vector<8x8xf32>
    %cst_35 = arith.constant dense<0xFF800000> : vector<8xf32>
    %84 = vector.multi_reduction <maximumf>, %83, %cst_35 [1] : vector<8x8xf32> to vector<8xf32>
    %85 = vector.shape_cast %84 : vector<8xf32> to vector<8x1xf32>
    %86 = vector.broadcast %85 : vector<8x1xf32> to vector<8x8xf32>
    %87 = arith.subf %83, %86 : vector<8x8xf32>
    %88 = math.exp %87 : vector<8x8xf32>
    %cst_36 = arith.constant dense<0.000000e+00> : vector<8xf32>
    %89 = vector.multi_reduction <add>, %88, %cst_36 [1] : vector<8x8xf32> to vector<8xf32>
    %90 = vector.shape_cast %89 : vector<8xf32> to vector<8x1xf32>
    %91 = tpu.reciprocal %90 {approx = true} : vector<8x1xf32> -> vector<8x1xf32>
    %92 = vector.broadcast %91 : vector<8x1xf32> to vector<8x8xf32>
    %93 = arith.mulf %88, %92 : vector<8x8xf32>
    %94 = arith.truncf %93 : vector<8x8xf32> to vector<8x8xbf16>
    %95 = vector.extract_strided_slice %25 {offsets = [0, 24], sizes = [8, 8], strides = [1, 1]} : vector<8x32xbf16> to vector<8x8xbf16>
    %cst_37 = arith.constant dense<0.000000e+00> : vector<8x8xf32>
    %96 = tpu.matmul %94, %95, %cst_37 {dimension_numbers = #tpu.dot_dimension_numbers<[1], [0], [0], [1], [0, 0, 1, 1], [], []>} : vector<8x8xbf16>, vector<8x8xbf16>, vector<8x8xf32> -> vector<8x8xf32>
    %c0_38 = arith.constant 0 : index
    %c24 = arith.constant 24 : index
    %97 = vector.load %arg26[%c0_38, %c24] : memref<8x32xf32, #tpu.memory_space<vmem>>, vector<8x8xf32>
    tpu.vector_store %arg26[%c0_38, %c24], %96 {strides = array<i32>} : memref<8x32xf32, #tpu.memory_space<vmem>>, vector<8x8xf32>,
    %c0_39 = arith.constant 0 : index
    %c0_40 = arith.constant 0 : index
    %98 = vector.load %arg26[%c0_39, %c0_40] : memref<8x32xf32, #tpu.memory_space<vmem>>, vector<8x32xf32>
    %99 = arith.truncf %98 : vector<8x32xf32> to vector<8x32xbf16>
    %cst_41 = arith.constant dense<0.000000e+00> : vector<8x32xf32>
    %100 = tpu.matmul %99, %22, %cst_41 {dimension_numbers = #tpu.dot_dimension_numbers<[1], [0], [0], [1], [0, 0, 1, 1], [], []>} : vector<8x32xbf16>, vector<32x32xbf16>, vector<8x32xf32> -> vector<8x32xf32>
    %c0_42 = arith.constant 0 : index
    %c0_43 = arith.constant 0 : index
    %101 = vector.load %arg8[%c0_42, %c0_43] : memref<1x32xf32, #tpu.memory_space<vmem>>, vector<1x32xf32>
    %102 = vector.broadcast %101 : vector<1x32xf32> to vector<8x32xf32>
    %103 = arith.addf %100, %102 : vector<8x32xf32>
    %c0_44 = arith.constant 0 : index
    %c0_45 = arith.constant 0 : index
    %104 = vector.load %arg9[%c0_44, %c0_45] : memref<1x32xf32, #tpu.memory_space<vmem>>, vector<1x32xf32>
    %c0_46 = arith.constant 0 : index
    %c0_47 = arith.constant 0 : index
    %105 = vector.load %arg10[%c0_46, %c0_47] : memref<1x32xf32, #tpu.memory_space<vmem>>, vector<1x32xf32>
    %106 = arith.addf %1, %103 : vector<8x32xf32>
    %cst_48 = arith.constant dense<0.000000e+00> : vector<8xf32>
    %107 = vector.multi_reduction <add>, %106, %cst_48 [1] : vector<8x32xf32> to vector<8xf32>
    %108 = vector.shape_cast %107 : vector<8xf32> to vector<8x1xf32>
    %cst_49 = arith.constant 3.200000e+01 : f32
    %109 = vector.broadcast %cst_49 : f32 to vector<8x1xf32>
    %110 = arith.divf %108, %109 : vector<8x1xf32>
    %111 = vector.broadcast %110 : vector<8x1xf32> to vector<8x32xf32>
    %112 = arith.subf %106, %111 : vector<8x32xf32>
    %113 = arith.mulf %112, %112 : vector<8x32xf32>
    %cst_50 = arith.constant dense<0.000000e+00> : vector<8xf32>
    %114 = vector.multi_reduction <add>, %113, %cst_50 [1] : vector<8x32xf32> to vector<8xf32>
    %115 = vector.shape_cast %114 : vector<8xf32> to vector<8x1xf32>
    %cst_51 = arith.constant 3.200000e+01 : f32
    %116 = vector.broadcast %cst_51 : f32 to vector<8x1xf32>
    %117 = arith.divf %115, %116 : vector<8x1xf32>
    %118 = vector.broadcast %110 : vector<8x1xf32> to vector<8x32xf32>
    %119 = arith.subf %106, %118 : vector<8x32xf32>
    %cst_52 = arith.constant 9.99999974E-6 : f32
    %120 = vector.broadcast %cst_52 : f32 to vector<8x1xf32>
    %121 = arith.addf %117, %120 : vector<8x1xf32>
    %122 = math.rsqrt %121 : vector<8x1xf32>
    %123 = vector.broadcast %122 : vector<8x1xf32> to vector<8x32xf32>
    %124 = arith.mulf %119, %123 : vector<8x32xf32>
    %125 = vector.broadcast %104 : vector<1x32xf32> to vector<8x32xf32>
    %126 = arith.mulf %124, %125 : vector<8x32xf32>
    %127 = vector.broadcast %105 : vector<1x32xf32> to vector<8x32xf32>
    %128 = arith.addf %126, %127 : vector<8x32xf32>
    %129 = arith.truncf %128 : vector<8x32xf32> to vector<8x32xbf16>
    %c0_53 = arith.constant 0 : index
    %c0_54 = arith.constant 0 : index
    %130 = vector.load %arg11[%c0_53, %c0_54] : memref<32x32xbf16, #tpu.memory_space<vmem>>, vector<32x32xbf16>
    %cst_55 = arith.constant dense<0.000000e+00> : vector<8x32xf32>
    %131 = tpu.matmul %129, %130, %cst_55 {dimension_numbers = #tpu.dot_dimension_numbers<[1], [0], [0], [1], [0, 0, 1, 1], [], []>} : vector<8x32xbf16>, vector<32x32xbf16>, vector<8x32xf32> -> vector<8x32xf32>
    %c0_56 = arith.constant 0 : index
    %c0_57 = arith.constant 0 : index
    %132 = vector.load %arg12[%c0_56, %c0_57] : memref<1x32xf32, #tpu.memory_space<vmem>>, vector<1x32xf32>
    %133 = vector.broadcast %132 : vector<1x32xf32> to vector<8x32xf32>
    %134 = arith.addf %131, %133 : vector<8x32xf32>
    %135 = arith.truncf %3 : vector<8x32xf32> to vector<8x32xbf16>
    %c0_58 = arith.constant 0 : index
    %c0_59 = arith.constant 0 : index
    %136 = vector.load %arg13[%c0_58, %c0_59] : memref<32x64xbf16, #tpu.memory_space<vmem>>, vector<32x64xbf16>
    %cst_60 = arith.constant dense<0.000000e+00> : vector<8x64xf32>
    %137 = tpu.matmul %135, %136, %cst_60 {dimension_numbers = #tpu.dot_dimension_numbers<[1], [0], [0], [1], [0, 0, 1, 1], [], []>} : vector<8x32xbf16>, vector<32x64xbf16>, vector<8x64xf32> -> vector<8x64xf32>
    %c0_61 = arith.constant 0 : index
    %c0_62 = arith.constant 0 : index
    %138 = vector.load %arg14[%c0_61, %c0_62] : memref<1x64xf32, #tpu.memory_space<vmem>>, vector<1x64xf32>
    %139 = vector.broadcast %138 : vector<1x64xf32> to vector<8x64xf32>
    %140 = arith.addf %137, %139 : vector<8x64xf32>
    %cst_63 = arith.constant 0.353553385 : f32
    %141 = vector.broadcast %cst_63 : f32 to vector<8x32xf32>
    %142 = arith.mulf %134, %141 : vector<8x32xf32>
    %143 = vector.extract_strided_slice %140 {offsets = [0, 0], sizes = [8, 32], strides = [1, 1]} : vector<8x64xf32> to vector<8x32xf32>
    %144 = vector.extract_strided_slice %140 {offsets = [0, 32], sizes = [8, 32], strides = [1, 1]} : vector<8x64xf32> to vector<8x32xf32>
    %c0_64 = arith.constant 0 : index
    %c0_65 = arith.constant 0 : index
    %145 = vector.load %arg15[%c0_64, %c0_65] : memref<32x32xbf16, #tpu.memory_space<vmem>>, vector<32x32xbf16>
    %146 = arith.truncf %142 : vector<8x32xf32> to vector<8x32xbf16>
    %147 = arith.truncf %143 : vector<8x32xf32> to vector<8x32xbf16>
    %148 = arith.truncf %144 : vector<8x32xf32> to vector<8x32xbf16>
    %149 = vector.extract_strided_slice %146 {offsets = [0, 0], sizes = [8, 8], strides = [1, 1]} : vector<8x32xbf16> to vector<8x8xbf16>
    %150 = vector.extract_strided_slice %147 {offsets = [0, 0], sizes = [8, 8], strides = [1, 1]} : vector<8x32xbf16> to vector<8x8xbf16>
    %cst_66 = arith.constant dense<0.000000e+00> : vector<8x8xf32>
    %151 = tpu.matmul %149, %150, %cst_66 {dimension_numbers = #tpu.dot_dimension_numbers<[1], [1], [0], [0], [0, 0, 1, 0], [], []>} : vector<8x8xbf16>, vector<8x8xbf16>, vector<8x8xf32> -> vector<8x8xf32>
    %cst_67 = arith.constant dense<0xFF800000> : vector<8xf32>
    %152 = vector.multi_reduction <maximumf>, %151, %cst_67 [1] : vector<8x8xf32> to vector<8xf32>
    %153 = vector.shape_cast %152 : vector<8xf32> to vector<8x1xf32>
    %154 = vector.broadcast %153 : vector<8x1xf32> to vector<8x8xf32>
    %155 = arith.subf %151, %154 : vector<8x8xf32>
    %156 = math.exp %155 : vector<8x8xf32>
    %cst_68 = arith.constant dense<0.000000e+00> : vector<8xf32>
    %157 = vector.multi_reduction <add>, %156, %cst_68 [1] : vector<8x8xf32> to vector<8xf32>
    %158 = vector.shape_cast %157 : vector<8xf32> to vector<8x1xf32>
    %159 = tpu.reciprocal %158 {approx = true} : vector<8x1xf32> -> vector<8x1xf32>
    %160 = vector.broadcast %159 : vector<8x1xf32> to vector<8x8xf32>
    %161 = arith.mulf %156, %160 : vector<8x8xf32>
    %162 = arith.truncf %161 : vector<8x8xf32> to vector<8x8xbf16>
    %163 = vector.extract_strided_slice %148 {offsets = [0, 0], sizes = [8, 8], strides = [1, 1]} : vector<8x32xbf16> to vector<8x8xbf16>
    %cst_69 = arith.constant dense<0.000000e+00> : vector<8x8xf32>
    %164 = tpu.matmul %162, %163, %cst_69 {dimension_numbers = #tpu.dot_dimension_numbers<[1], [0], [0], [1], [0, 0, 1, 1], [], []>} : vector<8x8xbf16>, vector<8x8xbf16>, vector<8x8xf32> -> vector<8x8xf32>
    %c0_70 = arith.constant 0 : index
    %c0_71 = arith.constant 0 : index
    %165 = vector.load %arg26[%c0_70, %c0_71] : memref<8x32xf32, #tpu.memory_space<vmem>>, vector<8x8xf32>
    tpu.vector_store %arg26[%c0_70, %c0_71], %164 {strides = array<i32>} : memref<8x32xf32, #tpu.memory_space<vmem>>, vector<8x8xf32>,
    %166 = vector.extract_strided_slice %146 {offsets = [0, 8], sizes = [8, 8], strides = [1, 1]} : vector<8x32xbf16> to vector<8x8xbf16>
    %167 = vector.extract_strided_slice %147 {offsets = [0, 8], sizes = [8, 8], strides = [1, 1]} : vector<8x32xbf16> to vector<8x8xbf16>
    %cst_72 = arith.constant dense<0.000000e+00> : vector<8x8xf32>
    %168 = tpu.matmul %166, %167, %cst_72 {dimension_numbers = #tpu.dot_dimension_numbers<[1], [1], [0], [0], [0, 0, 1, 0], [], []>} : vector<8x8xbf16>, vector<8x8xbf16>, vector<8x8xf32> -> vector<8x8xf32>
    %cst_73 = arith.constant dense<0xFF800000> : vector<8xf32>
    %169 = vector.multi_reduction <maximumf>, %168, %cst_73 [1] : vector<8x8xf32> to vector<8xf32>
    %170 = vector.shape_cast %169 : vector<8xf32> to vector<8x1xf32>
    %171 = vector.broadcast %170 : vector<8x1xf32> to vector<8x8xf32>
    %172 = arith.subf %168, %171 : vector<8x8xf32>
    %173 = math.exp %172 : vector<8x8xf32>
    %cst_74 = arith.constant dense<0.000000e+00> : vector<8xf32>
    %174 = vector.multi_reduction <add>, %173, %cst_74 [1] : vector<8x8xf32> to vector<8xf32>
    %175 = vector.shape_cast %174 : vector<8xf32> to vector<8x1xf32>
    %176 = tpu.reciprocal %175 {approx = true} : vector<8x1xf32> -> vector<8x1xf32>
    %177 = vector.broadcast %176 : vector<8x1xf32> to vector<8x8xf32>
    %178 = arith.mulf %173, %177 : vector<8x8xf32>
    %179 = arith.truncf %178 : vector<8x8xf32> to vector<8x8xbf16>
    %180 = vector.extract_strided_slice %148 {offsets = [0, 8], sizes = [8, 8], strides = [1, 1]} : vector<8x32xbf16> to vector<8x8xbf16>
    %cst_75 = arith.constant dense<0.000000e+00> : vector<8x8xf32>
    %181 = tpu.matmul %179, %180, %cst_75 {dimension_numbers = #tpu.dot_dimension_numbers<[1], [0], [0], [1], [0, 0, 1, 1], [], []>} : vector<8x8xbf16>, vector<8x8xbf16>, vector<8x8xf32> -> vector<8x8xf32>
    %c0_76 = arith.constant 0 : index
    %c8_77 = arith.constant 8 : index
    %182 = vector.load %arg26[%c0_76, %c8_77] : memref<8x32xf32, #tpu.memory_space<vmem>>, vector<8x8xf32>
    tpu.vector_store %arg26[%c0_76, %c8_77], %181 {strides = array<i32>} : memref<8x32xf32, #tpu.memory_space<vmem>>, vector<8x8xf32>,
    %183 = vector.extract_strided_slice %146 {offsets = [0, 16], sizes = [8, 8], strides = [1, 1]} : vector<8x32xbf16> to vector<8x8xbf16>
    %184 = vector.extract_strided_slice %147 {offsets = [0, 16], sizes = [8, 8], strides = [1, 1]} : vector<8x32xbf16> to vector<8x8xbf16>
    %cst_78 = arith.constant dense<0.000000e+00> : vector<8x8xf32>
    %185 = tpu.matmul %183, %184, %cst_78 {dimension_numbers = #tpu.dot_dimension_numbers<[1], [1], [0], [0], [0, 0, 1, 0], [], []>} : vector<8x8xbf16>, vector<8x8xbf16>, vector<8x8xf32> -> vector<8x8xf32>
    %cst_79 = arith.constant dense<0xFF800000> : vector<8xf32>
    %186 = vector.multi_reduction <maximumf>, %185, %cst_79 [1] : vector<8x8xf32> to vector<8xf32>
    %187 = vector.shape_cast %186 : vector<8xf32> to vector<8x1xf32>
    %188 = vector.broadcast %187 : vector<8x1xf32> to vector<8x8xf32>
    %189 = arith.subf %185, %188 : vector<8x8xf32>
    %190 = math.exp %189 : vector<8x8xf32>
    %cst_80 = arith.constant dense<0.000000e+00> : vector<8xf32>
    %191 = vector.multi_reduction <add>, %190, %cst_80 [1] : vector<8x8xf32> to vector<8xf32>
    %192 = vector.shape_cast %191 : vector<8xf32> to vector<8x1xf32>
    %193 = tpu.reciprocal %192 {approx = true} : vector<8x1xf32> -> vector<8x1xf32>
    %194 = vector.broadcast %193 : vector<8x1xf32> to vector<8x8xf32>
    %195 = arith.mulf %190, %194 : vector<8x8xf32>
    %196 = arith.truncf %195 : vector<8x8xf32> to vector<8x8xbf16>
    %197 = vector.extract_strided_slice %148 {offsets = [0, 16], sizes = [8, 8], strides = [1, 1]} : vector<8x32xbf16> to vector<8x8xbf16>
    %cst_81 = arith.constant dense<0.000000e+00> : vector<8x8xf32>
    %198 = tpu.matmul %196, %197, %cst_81 {dimension_numbers = #tpu.dot_dimension_numbers<[1], [0], [0], [1], [0, 0, 1, 1], [], []>} : vector<8x8xbf16>, vector<8x8xbf16>, vector<8x8xf32> -> vector<8x8xf32>
    %c0_82 = arith.constant 0 : index
    %c16_83 = arith.constant 16 : index
    %199 = vector.load %arg26[%c0_82, %c16_83] : memref<8x32xf32, #tpu.memory_space<vmem>>, vector<8x8xf32>
    tpu.vector_store %arg26[%c0_82, %c16_83], %198 {strides = array<i32>} : memref<8x32xf32, #tpu.memory_space<vmem>>, vector<8x8xf32>,
    %200 = vector.extract_strided_slice %146 {offsets = [0, 24], sizes = [8, 8], strides = [1, 1]} : vector<8x32xbf16> to vector<8x8xbf16>
    %201 = vector.extract_strided_slice %147 {offsets = [0, 24], sizes = [8, 8], strides = [1, 1]} : vector<8x32xbf16> to vector<8x8xbf16>
    %cst_84 = arith.constant dense<0.000000e+00> : vector<8x8xf32>
    %202 = tpu.matmul %200, %201, %cst_84 {dimension_numbers = #tpu.dot_dimension_numbers<[1], [1], [0], [0], [0, 0, 1, 0], [], []>} : vector<8x8xbf16>, vector<8x8xbf16>, vector<8x8xf32> -> vector<8x8xf32>
    %cst_85 = arith.constant dense<0xFF800000> : vector<8xf32>
    %203 = vector.multi_reduction <maximumf>, %202, %cst_85 [1] : vector<8x8xf32> to vector<8xf32>
    %204 = vector.shape_cast %203 : vector<8xf32> to vector<8x1xf32>
    %205 = vector.broadcast %204 : vector<8x1xf32> to vector<8x8xf32>
    %206 = arith.subf %202, %205 : vector<8x8xf32>
    %207 = math.exp %206 : vector<8x8xf32>
    %cst_86 = arith.constant dense<0.000000e+00> : vector<8xf32>
    %208 = vector.multi_reduction <add>, %207, %cst_86 [1] : vector<8x8xf32> to vector<8xf32>
    %209 = vector.shape_cast %208 : vector<8xf32> to vector<8x1xf32>
    %210 = tpu.reciprocal %209 {approx = true} : vector<8x1xf32> -> vector<8x1xf32>
    %211 = vector.broadcast %210 : vector<8x1xf32> to vector<8x8xf32>
    %212 = arith.mulf %207, %211 : vector<8x8xf32>
    %213 = arith.truncf %212 : vector<8x8xf32> to vector<8x8xbf16>
    %214 = vector.extract_strided_slice %148 {offsets = [0, 24], sizes = [8, 8], strides = [1, 1]} : vector<8x32xbf16> to vector<8x8xbf16>
    %cst_87 = arith.constant dense<0.000000e+00> : vector<8x8xf32>
    %215 = tpu.matmul %213, %214, %cst_87 {dimension_numbers = #tpu.dot_dimension_numbers<[1], [0], [0], [1], [0, 0, 1, 1], [], []>} : vector<8x8xbf16>, vector<8x8xbf16>, vector<8x8xf32> -> vector<8x8xf32>
    %c0_88 = arith.constant 0 : index
    %c24_89 = arith.constant 24 : index
    %216 = vector.load %arg26[%c0_88, %c24_89] : memref<8x32xf32, #tpu.memory_space<vmem>>, vector<8x8xf32>
    tpu.vector_store %arg26[%c0_88, %c24_89], %215 {strides = array<i32>} : memref<8x32xf32, #tpu.memory_space<vmem>>, vector<8x8xf32>,
    %c0_90 = arith.constant 0 : index
    %c0_91 = arith.constant 0 : index
    %217 = vector.load %arg26[%c0_90, %c0_91] : memref<8x32xf32, #tpu.memory_space<vmem>>, vector<8x32xf32>
    %218 = arith.truncf %217 : vector<8x32xf32> to vector<8x32xbf16>
    %cst_92 = arith.constant dense<0.000000e+00> : vector<8x32xf32>
    %219 = tpu.matmul %218, %145, %cst_92 {dimension_numbers = #tpu.dot_dimension_numbers<[1], [0], [0], [1], [0, 0, 1, 1], [], []>} : vector<8x32xbf16>, vector<32x32xbf16>, vector<8x32xf32> -> vector<8x32xf32>
    %c0_93 = arith.constant 0 : index
    %c0_94 = arith.constant 0 : index
    %220 = vector.load %arg16[%c0_93, %c0_94] : memref<1x32xf32, #tpu.memory_space<vmem>>, vector<1x32xf32>
    %221 = vector.broadcast %220 : vector<1x32xf32> to vector<8x32xf32>
    %222 = arith.addf %219, %221 : vector<8x32xf32>
    %c0_95 = arith.constant 0 : index
    %c0_96 = arith.constant 0 : index
    %223 = vector.load %arg17[%c0_95, %c0_96] : memref<1x32xf32, #tpu.memory_space<vmem>>, vector<1x32xf32>
    %c0_97 = arith.constant 0 : index
    %c0_98 = arith.constant 0 : index
    %224 = vector.load %arg18[%c0_97, %c0_98] : memref<1x32xf32, #tpu.memory_space<vmem>>, vector<1x32xf32>
    %225 = arith.addf %128, %222 : vector<8x32xf32>
    %cst_99 = arith.constant dense<0.000000e+00> : vector<8xf32>
    %226 = vector.multi_reduction <add>, %225, %cst_99 [1] : vector<8x32xf32> to vector<8xf32>
    %227 = vector.shape_cast %226 : vector<8xf32> to vector<8x1xf32>
    %cst_100 = arith.constant 3.200000e+01 : f32
    %228 = vector.broadcast %cst_100 : f32 to vector<8x1xf32>
    %229 = arith.divf %227, %228 : vector<8x1xf32>
    %230 = vector.broadcast %229 : vector<8x1xf32> to vector<8x32xf32>
    %231 = arith.subf %225, %230 : vector<8x32xf32>
    %232 = arith.mulf %231, %231 : vector<8x32xf32>
    %cst_101 = arith.constant dense<0.000000e+00> : vector<8xf32>
    %233 = vector.multi_reduction <add>, %232, %cst_101 [1] : vector<8x32xf32> to vector<8xf32>
    %234 = vector.shape_cast %233 : vector<8xf32> to vector<8x1xf32>
    %cst_102 = arith.constant 3.200000e+01 : f32
    %235 = vector.broadcast %cst_102 : f32 to vector<8x1xf32>
    %236 = arith.divf %234, %235 : vector<8x1xf32>
    %237 = vector.broadcast %229 : vector<8x1xf32> to vector<8x32xf32>
    %238 = arith.subf %225, %237 : vector<8x32xf32>
    %cst_103 = arith.constant 9.99999974E-6 : f32
    %239 = vector.broadcast %cst_103 : f32 to vector<8x1xf32>
    %240 = arith.addf %236, %239 : vector<8x1xf32>
    %241 = math.rsqrt %240 : vector<8x1xf32>
    %242 = vector.broadcast %241 : vector<8x1xf32> to vector<8x32xf32>
    %243 = arith.mulf %238, %242 : vector<8x32xf32>
    %244 = vector.broadcast %223 : vector<1x32xf32> to vector<8x32xf32>
    %245 = arith.mulf %243, %244 : vector<8x32xf32>
    %246 = vector.broadcast %224 : vector<1x32xf32> to vector<8x32xf32>
    %247 = arith.addf %245, %246 : vector<8x32xf32>
    %248 = arith.truncf %247 : vector<8x32xf32> to vector<8x32xbf16>
    %c0_104 = arith.constant 0 : index
    %c0_105 = arith.constant 0 : index
    %249 = vector.load %arg19[%c0_104, %c0_105] : memref<32x64xbf16, #tpu.memory_space<vmem>>, vector<32x64xbf16>
    %cst_106 = arith.constant dense<0.000000e+00> : vector<8x64xf32>
    %250 = tpu.matmul %248, %249, %cst_106 {dimension_numbers = #tpu.dot_dimension_numbers<[1], [0], [0], [1], [0, 0, 1, 1], [], []>} : vector<8x32xbf16>, vector<32x64xbf16>, vector<8x64xf32> -> vector<8x64xf32>
    %c0_107 = arith.constant 0 : index
    %c0_108 = arith.constant 0 : index
    %251 = vector.load %arg20[%c0_107, %c0_108] : memref<1x64xf32, #tpu.memory_space<vmem>>, vector<1x64xf32>
    %252 = vector.broadcast %251 : vector<1x64xf32> to vector<8x64xf32>
    %253 = arith.addf %250, %252 : vector<8x64xf32>
    %cst_109 = arith.constant 0.000000e+00 : f32
    %254 = vector.broadcast %cst_109 : f32 to vector<8x64xf32>
    %255 = arith.maximumf %253, %254 : vector<8x64xf32>
    %256 = arith.truncf %255 : vector<8x64xf32> to vector<8x64xbf16>
    %c0_110 = arith.constant 0 : index
    %c0_111 = arith.constant 0 : index
    %257 = vector.load %arg21[%c0_110, %c0_111] : memref<64x32xbf16, #tpu.memory_space<vmem>>, vector<64x32xbf16>
    %cst_112 = arith.constant dense<0.000000e+00> : vector<8x32xf32>
    %258 = tpu.matmul %256, %257, %cst_112 {dimension_numbers = #tpu.dot_dimension_numbers<[1], [0], [0], [1], [0, 0, 1, 1], [], []>} : vector<8x64xbf16>, vector<64x32xbf16>, vector<8x32xf32> -> vector<8x32xf32>
    %c0_113 = arith.constant 0 : index
    %c0_114 = arith.constant 0 : index
    %259 = vector.load %arg22[%c0_113, %c0_114] : memref<1x32xf32, #tpu.memory_space<vmem>>, vector<1x32xf32>
    %260 = vector.broadcast %259 : vector<1x32xf32> to vector<8x32xf32>
    %261 = arith.addf %258, %260 : vector<8x32xf32>
    %c0_115 = arith.constant 0 : index
    %c0_116 = arith.constant 0 : index
    %262 = vector.load %arg23[%c0_115, %c0_116] : memref<1x32xf32, #tpu.memory_space<vmem>>, vector<1x32xf32>
    %c0_117 = arith.constant 0 : index
    %c0_118 = arith.constant 0 : index
    %263 = vector.load %arg24[%c0_117, %c0_118] : memref<1x32xf32, #tpu.memory_space<vmem>>, vector<1x32xf32>
    %264 = arith.addf %247, %261 : vector<8x32xf32>
    %cst_119 = arith.constant dense<0.000000e+00> : vector<8xf32>
    %265 = vector.multi_reduction <add>, %264, %cst_119 [1] : vector<8x32xf32> to vector<8xf32>
    %266 = vector.shape_cast %265 : vector<8xf32> to vector<8x1xf32>
    %cst_120 = arith.constant 3.200000e+01 : f32
    %267 = vector.broadcast %cst_120 : f32 to vector<8x1xf32>
    %268 = arith.divf %266, %267 : vector<8x1xf32>
    %269 = vector.broadcast %268 : vector<8x1xf32> to vector<8x32xf32>
    %270 = arith.subf %264, %269 : vector<8x32xf32>
    %271 = arith.mulf %270, %270 : vector<8x32xf32>
    %cst_121 = arith.constant dense<0.000000e+00> : vector<8xf32>
    %272 = vector.multi_reduction <add>, %271, %cst_121 [1] : vector<8x32xf32> to vector<8xf32>
    %273 = vector.shape_cast %272 : vector<8xf32> to vector<8x1xf32>
    %cst_122 = arith.constant 3.200000e+01 : f32
    %274 = vector.broadcast %cst_122 : f32 to vector<8x1xf32>
    %275 = arith.divf %273, %274 : vector<8x1xf32>
    %276 = vector.broadcast %268 : vector<8x1xf32> to vector<8x32xf32>
    %277 = arith.subf %264, %276 : vector<8x32xf32>
    %cst_123 = arith.constant 9.99999974E-6 : f32
    %278 = vector.broadcast %cst_123 : f32 to vector<8x1xf32>
    %279 = arith.addf %275, %278 : vector<8x1xf32>
    %280 = math.rsqrt %279 : vector<8x1xf32>
    %281 = vector.broadcast %280 : vector<8x1xf32> to vector<8x32xf32>
    %282 = arith.mulf %277, %281 : vector<8x32xf32>
    %283 = vector.broadcast %262 : vector<1x32xf32> to vector<8x32xf32>
    %284 = arith.mulf %282, %283 : vector<8x32xf32>
    %285 = vector.broadcast %263 : vector<1x32xf32> to vector<8x32xf32>
    %286 = arith.addf %284, %285 : vector<8x32xf32>
    %c0_124 = arith.constant 0 : index
    %c0_125 = arith.constant 0 : index
    %c0_126 = arith.constant 0 : index
    %287 = vector.load %arg25[%c0_124, %c0_125, %c0_126] : memref<1x8x32xf32, #tpu.memory_space<vmem>>, vector<1x8x32xf32>
    %288 = vector.shape_cast %287 : vector<1x8x32xf32> to vector<8x32xf32>
    %289 = vector.shape_cast %286 : vector<8x32xf32> to vector<1x8x32xf32>
    tpu.vector_store %arg25[%c0_124, %c0_125, %c0_126], %289 {strides = array<i32>} : memref<1x8x32xf32, #tpu.memory_space<vmem>>, vector<1x8x32xf32>,
    return
  }
  func.func @transform_0(%arg0: i32) -> (i32, i32, i32) {
    %c0_i32 = arith.constant 0 : i32
    %c0_i32_0 = arith.constant 0 : i32
    %c0_i32_1 = arith.constant 0 : i32
    return %arg0, %c0_i32, %c0_i32_0 : i32, i32, i32
  }
  func.func @transform_1(%arg0: i32) -> (i32, i32, i32) {
    %c0_i32 = arith.constant 0 : i32
    %c0_i32_0 = arith.constant 0 : i32
    %c0_i32_1 = arith.constant 0 : i32
    return %arg0, %c0_i32, %c0_i32_0 : i32, i32, i32
  }
  func.func @transform_2(%arg0: i32) -> (i32, i32) {
    %c0_i32 = arith.constant 0 : i32
    %c0_i32_0 = arith.constant 0 : i32
    %c0_i32_1 = arith.constant 0 : i32
    return %c0_i32, %c0_i32_0 : i32, i32
  }
  func.func @transform_3(%arg0: i32) -> (i32, i32, i32) {
    %c0_i32 = arith.constant 0 : i32
    %c0_i32_0 = arith.constant 0 : i32
    %c0_i32_1 = arith.constant 0 : i32
    return %arg0, %c0_i32, %c0_i32_0 : i32, i32, i32
  }
  func.func @transform_4(%arg0: i32) -> (i32, i32) {
    %c0_i32 = arith.constant 0 : i32
    %c0_i32_0 = arith.constant 0 : i32
    %c0_i32_1 = arith.constant 0 : i32
    return %c0_i32, %c0_i32_0 : i32, i32
  }
  func.func @transform_5(%arg0: i32) -> (i32, i32) {
    %c0_i32 = arith.constant 0 : i32
    %c0_i32_0 = arith.constant 0 : i32
    %c0_i32_1 = arith.constant 0 : i32
    return %c0_i32, %c0_i32_0 : i32, i32
  }
  func.func @transform_6(%arg0: i32) -> (i32, i32) {
    %c0_i32 = arith.constant 0 : i32
    %c0_i32_0 = arith.constant 0 : i32
    %c0_i32_1 = arith.constant 0 : i32
    return %c0_i32, %c0_i32_0 : i32, i32
  }
  func.func @transform_7(%arg0: i32) -> (i32, i32) {
    %c0_i32 = arith.constant 0 : i32
    %c0_i32_0 = arith.constant 0 : i32
    %c0_i32_1 = arith.constant 0 : i32
    return %c0_i32, %c0_i32_0 : i32, i32
  }
  func.func @transform_8(%arg0: i32) -> (i32, i32) {
    %c0_i32 = arith.constant 0 : i32
    %c0_i32_0 = arith.constant 0 : i32
    %c0_i32_1 = arith.constant 0 : i32
    return %c0_i32, %c0_i32_0 : i32, i32
  }
  func.func @transform_9(%arg0: i32) -> (i32, i32) {
    %c0_i32 = arith.constant 0 : i32
    %c0_i32_0 = arith.constant 0 : i32
    %c0_i32_1 = arith.constant 0 : i32
    return %c0_i32, %c0_i32_0 : i32, i32
  }
  func.func @transform_10(%arg0: i32) -> (i32, i32) {
    %c0_i32 = arith.constant 0 : i32
    %c0_i32_0 = arith.constant 0 : i32
    %c0_i32_1 = arith.constant 0 : i32
    return %c0_i32, %c0_i32_0 : i32, i32
  }
  func.func @transform_11(%arg0: i32) -> (i32, i32) {
    %c0_i32 = arith.constant 0 : i32
    %c0_i32_0 = arith.constant 0 : i32
    %c0_i32_1 = arith.constant 0 : i32
    return %c0_i32, %c0_i32_0 : i32, i32
  }
  func.func @transform_12(%arg0: i32) -> (i32, i32) {
    %c0_i32 = arith.constant 0 : i32
    %c0_i32_0 = arith.constant 0 : i32
    %c0_i32_1 = arith.constant 0 : i32
    return %c0_i32, %c0_i32_0 : i32, i32
  }
  func.func @transform_13(%arg0: i32) -> (i32, i32) {
    %c0_i32 = arith.constant 0 : i32
    %c0_i32_0 = arith.constant 0 : i32
    %c0_i32_1 = arith.constant 0 : i32
    return %c0_i32, %c0_i32_0 : i32, i32
  }
  func.func @transform_14(%arg0: i32) -> (i32, i32) {
    %c0_i32 = arith.constant 0 : i32
    %c0_i32_0 = arith.constant 0 : i32
    %c0_i32_1 = arith.constant 0 : i32
    return %c0_i32, %c0_i32_0 : i32, i32
  }
  func.func @transform_15(%arg0: i32) -> (i32, i32) {
    %c0_i32 = arith.constant 0 : i32
    %c0_i32_0 = arith.constant 0 : i32
    %c0_i32_1 = arith.constant 0 : i32
    return %c0_i32, %c0_i32_0 : i32, i32
  }
  func.func @transform_16(%arg0: i32) -> (i32, i32) {
    %c0_i32 = arith.constant 0 : i32
    %c0_i32_0 = arith.constant 0 : i32
    %c0_i32_1 = arith.constant 0 : i32
    return %c0_i32, %c0_i32_0 : i32, i32
  }
  func.func @transform_17(%arg0: i32) -> (i32, i32) {
    %c0_i32 = arith.constant 0 : i32
    %c0_i32_0 = arith.constant 0 : i32
    %c0_i32_1 = arith.constant 0 : i32
    return %c0_i32, %c0_i32_0 : i32, i32
  }
  func.func @transform_18(%arg0: i32) -> (i32, i32) {
    %c0_i32 = arith.constant 0 : i32
    %c0_i32_0 = arith.constant 0 : i32
    %c0_i32_1 = arith.constant 0 : i32
    return %c0_i32, %c0_i32_0 : i32, i32
  }
  func.func @transform_19(%arg0: i32) -> (i32, i32) {
    %c0_i32 = arith.constant 0 : i32
    %c0_i32_0 = arith.constant 0 : i32
    %c0_i32_1 = arith.constant 0 : i32
    return %c0_i32, %c0_i32_0 : i32, i32
  }
  func.func @transform_20(%arg0: i32) -> (i32, i32) {
    %c0_i32 = arith.constant 0 : i32
    %c0_i32_0 = arith.constant 0 : i32
    %c0_i32_1 = arith.constant 0 : i32
    return %c0_i32, %c0_i32_0 : i32, i32
  }
  func.func @transform_21(%arg0: i32) -> (i32, i32) {
    %c0_i32 = arith.constant 0 : i32
    %c0_i32_0 = arith.constant 0 : i32
    %c0_i32_1 = arith.constant 0 : i32
    return %c0_i32, %c0_i32_0 : i32, i32
  }
  func.func @transform_22(%arg0: i32) -> (i32, i32) {
    %c0_i32 = arith.constant 0 : i32
    %c0_i32_0 = arith.constant 0 : i32
    %c0_i32_1 = arith.constant 0 : i32
    return %c0_i32, %c0_i32_0 : i32, i32
  }
  func.func @transform_23(%arg0: i32) -> (i32, i32) {
    %c0_i32 = arith.constant 0 : i32
    %c0_i32_0 = arith.constant 0 : i32
    %c0_i32_1 = arith.constant 0 : i32
    return %c0_i32, %c0_i32_0 : i32, i32
  }
  func.func @transform_24(%arg0: i32) -> (i32, i32, i32) {
    %c0_i32 = arith.constant 0 : i32
    %c0_i32_0 = arith.constant 0 : i32
    %c0_i32_1 = arith.constant 0 : i32
    return %arg0, %c0_i32, %c0_i32_0 : i32, i32, i32
  }
}

</mosaic_0001>

<bundles_post_ra>
// kernel: tpu_custom_call.1
= control target key start
LH: loop header
LB: loop body
LE: loop exit
PB: predicated region body
PF: predicated region fallthrough
CT: control target
= control target key end

     0   :  { %6 = vsyncpa [#allocation3], 0  ;;  %s340_s0 = inlined_call_operand.hbm [shape: f32[8,128], index: 0, kind: input, shape index: {}]   ;;  %s341_s1 = inlined_call_operand.hbm [shape: f32[8,128], index: 1, kind: output, shape index: {}]  }
   0x1   :  { %7 = vsyncpa [#allocation4], 0  ;;  %s261_s6 = smov 0  }
   0x2 LB: > { %s144_s7 = sadd.s32 4294967295, %s247_s6   ;;  %p145_p0 = scmp.ge.s32.totalorder %s247_s6, 1  ;;  %s247_s6 = sphi %s261_s6, %s13_s6  }
   0x3   : > { %p60_p1 = scmp.lt.s32.totalorder %s247_s6, 3  ;;  %p275_p3 = scmp.eq.s32.totalorder %s144_s7, 0 }
   0x4   : > { %s249_s10 = smov [#allocation2]   ;;  %s179_s15 = scalar_lea.hbm %s340_s0, 128 }
   0x5   : > { %p269_p2 = pnand %p145_p0, %p60_p1  ;;  %s73_s11 = sshll.u32 %s249_s10, 4  ;;  %s74_s11 = int_to_ptr.vmem [resolvable:$true] %s73_s11 }
   0x6   : > { %s346_s9 = scalar_select %p275_p3, 1, 0 }
   0x7   : > { %s345_s8 = scalar_select %p269_p2, 1, 0 }
   0x8   : > { %p161_p4 = pneg %p269_p2  ;;  %p180_p6 = scmp.ne.s32.totalorder %s340_s0, %s179_s15 }
   0x9   : > { %p186_p10 = scmp.lt.u32.totalorder %s179_s15, %s340_s0 }
   0xa   : > { %p283_p5 = pnand %p275_p3, %p161_p4 }
   0xc   : > { %p181_p7 = pneg %p283_p5 }
   0xe   : > { %p182_p8 = pnand %p181_p7, %p180_p6 }
  0x10   : > { %p183_p9 = pneg %p182_p8 }
  0x12   : > { %p188_p11 = pnand %p186_p10, %p183_p9 }
  0x14   : > { %191 = shalt.err (!%p188_p11)
}
  0x15   : > { %s192_s20 = scalar_lea.vmem %s74_s11, 128  ;;  %p200_p1 = scmp.lt.s32.totalorder %s74_s11, %s74_s11 }
  0x16   : > { %p193_p12 = scmp.ne.s32.totalorder %s74_s11, %s192_s20  ;;  %p201_p4 = scmp.lt.s32.totalorder %s192_s20, %s192_s20 }
  0x18   : > { %p195_p13 = pnand %p193_p12, %p181_p7  ;;  %p202_p3 = por %p201_p4, %p200_p1 }
  0x1a   : > { %p196_p0 = pneg %p195_p13 }
  0x1c   : > { %p203_p2 = pnand %p202_p3, %p196_p0 }
  0x1e   : > { %206 = shalt.err (!%p203_p2)
}
  0x1f   : > { %164 = dma.hbm_to_vmem [thread:$0]  (!%p283_p5), %s340_s0, 128, %s74_s11, [#allocation3]  }
  0x20   : > { %p348_p6 = scmp.ne.s32.totalorder %s345_s8, 0 }
  0x21   : > { %p349_p8 = scmp.ne.s32.totalorder (!%p348_p6), %s346_s9, 0 }
  0x22   : > { %86 = sbr.rel (%p348_p6) target bundleno = 67 (0x43), region = 24 }
  0x29   : > { %238 = dma.done.wait (%p349_p8), [#allocation3], 128  }
  0x2a   : > { %240 = vsyncadd (%p349_p8), [#allocation3], 4294967168  ;;  %s250_s23 = smov [#allocation5]   ;;  %p311_p2 = scmp.eq.s32.totalorder %s144_s7, 1  ;;  %v96_v0 = vld [vmem:[#allocation2] sm:$0xff] }
  0x2b   : > { %s105_s24 = sshll.u32 %s250_s23, 4  ;;  %97 = vst [vmem:[#allocation5] sm:$0xff] %v96_v0  ;;  %s106_s24 = int_to_ptr.vmem [resolvable:$true] %s105_s24 }
  0x2c   : > { %s207_s26 = scalar_lea.vmem %s106_s24, 128  ;;  %p214_p9 = scmp.lt.s32.totalorder %s106_s24, %s106_s24 }
  0x2d   : > { %p208_p3 = scmp.ne.s32.totalorder %s106_s24, %s207_s26  ;;  %p215_p10 = scmp.lt.s32.totalorder %s207_s26, %s207_s26 }
  0x2f   : > { %p209_p5 = pnand %p208_p3, %p311_p2  ;;  %p216_p11 = por %p215_p10, %p214_p9 }
  0x31   : > { %p210_p7 = pneg %p209_p5 }
  0x33   : > { %p217_p12 = pnand %p216_p11, %p210_p7 }
  0x35   : > { %220 = shalt.err (!%p217_p12)
}
  0x36   : > { %s221_s29 = scalar_lea.hbm %s341_s1, 128 }
  0x37   : > { %p222_p13 = scmp.ne.s32.totalorder %s341_s1, %s221_s29  ;;  %p227_p4 = scmp.lt.u32.totalorder %s221_s29, %s341_s1 }
  0x39   : > { %p223_p0 = pnand %p222_p13, %p311_p2 }
  0x3b   : > { %p224_p1 = pneg %p223_p0 }
  0x3d   : > { %p229_p6 = pnand %p227_p4, %p224_p1 }
  0x3f   : > { %232 = shalt.err (!%p229_p6)
}
  0x40   : > { %158 = dma.vmem_to_hbm [thread:$0]  (%p311_p2), %s106_s24, 128, %s341_s1, [#allocation4]  }
  0x41   : > { %242 = dma.done.wait (%p311_p2), [#allocation4], 128  }
  0x42   : > { %244 = vsyncadd (%p311_p2), [#allocation4], 4294967168 }
  0x43 PF: > { %s13_s6 = sadd.s32 1, %s247_s6  }
  0x44   : > { %p10_p8 = scmp.ge.s32.totalorder %s13_s6, 4  }
  0x46   :  { %12 = sbr.rel (!%p10_p8) target bundleno = 2 (0x2), region = 53 }
  0x4d   :  { %118 = vsyncpa [#allocation3], 1 }
  0x4e   :  { %120 = vsyncpa [#allocation3 + $0x1], 1 }
  0x4f   :  { %121 = vsyncpa [#allocation4], 1 }
  0x50   :  { %123 = vsyncpa [#allocation4 + $0x1], 1 }

// kernel: transformer_decoder_forward.5
= control target key start
LH: loop header
LB: loop body
LE: loop exit
PB: predicated region body
PF: predicated region fallthrough
CT: control target
= control target key end

     0   :  { %8 = vsyncpa [#allocation3], 0  ;;  %s1003_s0 = inlined_call_operand.hbm [shape: f32[2,8,32], index: 0, kind: input, shape index: {}]   ;;  %s1004_s1 = inlined_call_operand.hbm [shape: bf16[32,128], index: 1, kind: input, shape index: {}]   ;;  %s1005_s2 = inlined_call_operand.hbm [shape: f32[1,128], index: 2, kind: input, shape index: {}]   ;;  %s1006_s3 = inlined_call_operand.hbm [shape: f32[2,8,128], index: 3, kind: output, shape index: {}]  }
   0x1   :  { %10 = vsyncpa [#allocation3 + $0x1], 0 }
   0x2   :  { %11 = vsyncpa [#allocation6], 0 }
   0x3   :  { %12 = vsyncpa [#allocation4], 0 }
   0x4   :  { %14 = vsyncpa [#allocation4 + $0x1], 0  ;;  %s752_s12 = smov 0   ;;  %s754_s13 = smov 0  }
   0x5   :  { %s756_s14 = smov 0   ;;  %s758_s15 = smov 0  }
   0x6   :  { %s760_s16 = smov 0   ;;  %s762_s17 = smov 0  }
   0x7 LB: > { %s429_s18 = sadd.s32 4294967295, %s722_s17   ;;  %s430_s19 = sadd.s32 4294967294, %s722_s17   ;;  %s722_s17 = sphi %s762_s17, %s20_s17   ;;  %s718_s16 = sphi %s760_s16, %s1028_s16   ;;  %s714_s15 = sphi %s758_s15, %s1027_s15   ;;  %s710_s14 = sphi %s756_s14, %s1026_s14   ;;  %s706_s13 = sphi %s754_s13, %s1025_s13   ;;  %s702_s12 = sphi %s752_s12, %s1024_s12  }
   0x8   : > { %p52_p0 = scmp.ne.s32.totalorder %s706_s13, %s702_s12  ;;  %p786_p1 = scmp.eq.s32.totalorder %s429_s18, 0 }
   0x9   : > { %p790_p2 = scmp.eq.s32.totalorder %s429_s18, 1  ;;  %p136_p3 = scmp.eq.s32.totalorder %s430_s19, 1 }
   0xa   : > { %s1011_s20 = scalar_select %p786_p1, 1, 0 }
   0xb   : > { %p796_p4 = por %p786_p1, %p52_p0  ;;  %p431_p5 = scmp.ge.s32.totalorder %s722_s17, 1 }
   0xc   : > { %p801_p6 = por %p136_p3, %p52_p0  ;;  %p143_p7 = scmp.lt.s32.totalorder %s722_s17, 3 }
   0xd   : > { %s1013_s22 = scalar_select %p796_p4, 1, 0 }
   0xe   : > { %s1014_s23 = scalar_select %p801_p6, 1, 0 }
   0xf   : > { %p806_p8 = pnand %p431_p5, %p143_p7  ;;  %s724_s25 = smov [#allocation5]  }
  0x10   : > { %s157_s26 = sshll.u32 %s724_s25, 4  ;;  %s725_s28 = smov [#allocation7]   ;;  %s810_s26 = int_to_ptr.vmem [resolvable:$true] %s157_s26 }
  0x11   : > { %p473_p9 = pneg %p806_p8  ;;  %s173_s29 = sshll.u32 %s725_s28, 4  ;;  %s821_s29 = int_to_ptr.vmem [resolvable:$true] %s173_s29 }
  0x12   : > { %s550_s5 = scalar_lea.hbm %s1004_s1, 256 }
  0x13   : > { %p817_p11 = pnand %p473_p9, %p786_p1  ;;  %p551_p12 = scmp.ne.s32.totalorder %s1004_s1, %s550_s5 }
  0x14   : > { %p557_p5 = scmp.lt.u32.totalorder %s550_s5, %s1004_s1 }
  0x15   : > { %p552_p13 = pneg %p817_p11 }
  0x17   : > { %p553_p0 = pnand %p552_p13, %p551_p12 }
  0x19   : > { %p554_p3 = pneg %p553_p0 }
  0x1b   : > { %p559_p7 = pnand %p557_p5, %p554_p3 }
  0x1d   : > { %562 = shalt.err (!%p559_p7)
}
  0x1e   : > { %s563_s10 = scalar_lea.vmem %s810_s26, 256  ;;  %p571_p1 = scmp.lt.s32.totalorder %s810_s26, %s810_s26 }
  0x1f   : > { %p564_p9 = scmp.ne.s32.totalorder %s810_s26, %s563_s10  ;;  %p572_p12 = scmp.lt.s32.totalorder %s563_s10, %s563_s10 }
  0x21   : > { %p566_p10 = pnand %p564_p9, %p552_p13  ;;  %p573_p0 = por %p572_p12, %p571_p1 }
  0x23   : > { %p567_p6 = pneg %p566_p10 }
  0x25   : > { %p574_p4 = pnand %p573_p0, %p567_p6 }
  0x27   : > { %577 = shalt.err (!%p574_p4)
}
  0x28   : > { %s726_s11 = smov 64   ;;  %s727_s18 = smov 4  }
  0x29   : > { %476 = dma.hbm_to_vmem [thread:$0]  (!%p817_p11), %s1004_s1, 256, %s810_s26, [#allocation6], %s726_s11, %s726_s11, %s727_s18  }
  0x2a   : > { %s578_s4 = scalar_lea.hbm %s1005_s2, 16 }
  0x2b   : > { %p579_p1 = scmp.ne.s32.totalorder %s1005_s2, %s578_s4  ;;  %p585_p10 = scmp.lt.u32.totalorder %s578_s4, %s1005_s2 }
  0x2d   : > { %p581_p4 = pnand %p579_p1, %p552_p13 }
  0x2f   : > { %p582_p6 = pneg %p581_p4 }
  0x31   : > { %p587_p3 = pnand %p585_p10, %p582_p6 }
  0x33   : > { %590 = shalt.err (!%p587_p3)
}
  0x34   : > { %s591_s26 = scalar_lea.vmem %s821_s29, 16  ;;  %s598_s9 = scalar_lea.vmem %s821_s29, 32 }
  0x35   : > { %p592_p5 = scmp.ne.s32.totalorder %s821_s29, %s591_s26  ;;  %p599_p12 = scmp.lt.s32.totalorder %s821_s29, %s821_s29 }
  0x36   : > { %p600_p0 = scmp.lt.s32.totalorder %s598_s9, %s591_s26 }
  0x37   : > { %p594_p7 = pnand %p592_p5, %p552_p13 }
  0x38   : > { %p601_p1 = por %p600_p0, %p599_p12 }
  0x39   : > { %p595_p9 = pneg %p594_p7 }
  0x3b   : > { %p602_p4 = pnand %p601_p1, %p595_p9 }
  0x3d   : > { %605 = shalt.err (!%p602_p4)
}
  0x3e   : > { %479 = dma.hbm_to_vmem [thread:$0]  (!%p817_p11), %s1005_s2, 16, %s821_s29, [#allocation6]  }
  0x3f   : > { %s32_s18 = sadd.s32 1, %s718_s16  ;;  %s39_s19 = sadd.s32 1, %s710_s14 }
  0x40   : > { %p34_p13 = scmp.ge.s32.totalorder %s32_s18, 2  ;;  %p46_p6 = scmp.ne.s32.totalorder %s710_s14, %s706_s13 }
  0x41   : > { %p47_p10 = scmp.eq.s32.totalorder %s722_s17, 0  ;;  %p490_p3 = scmp.lt.s32.totalorder %s722_s17, 2 }
  0x42   : > { %s1030_s18 = smov (%p34_p13, %s32_s18), 0  ;;  %p886_p7 = por %p790_p2, %p46_p6 }
  0x43   : > { %p48_p5 = por %p47_p10, %p46_p6  ;;  %s36_s25 = ssub.s32 %s718_s16, %s1030_s18 }
  0x44   : > { %s1017_s27 = scalar_select %p886_p7, 1, 0 }
  0x45   : > { %s184_s28 = sand.u32 1, %s710_s14   ;;  %p37_p9 = scmp.eq.s32.totalorder %s36_s25, 0 }
  0x46   : > { %s435_s29 = sshll.u32 %s184_s28, 3  ;;  %s436_s30 = sshll.u32 %s718_s16, 7 }
  0x47   : > { %s895_s4 = scalar_select %p37_p9, %s710_s14, %s39_s19  }
  0x48   : > { %s900_s7 = scalar_lea.hbm %s1003_s0, %s436_s30  ;;  %s188_s21 = scalar_lea.vmem [#allocation2], %s435_s29 }
  0x49   : > { %s195_s8 = sshll.u32 %s188_s21, 4  ;;  %p904_p2 = pnand %p490_p3, %p48_p5  ;;  %s908_s8 = int_to_ptr.vmem [resolvable:$true] %s195_s8 }
  0x4a   : > { %s185_s9 = scalar_lea.sflag [#allocation3], %s184_s28  ;;  %s606_s10 = scalar_lea.hbm %s900_s7, 128 }
  0x4b   : > { %p607_p11 = scmp.ne.s32.totalorder %s900_s7, %s606_s10  ;;  %p608_p12 = pneg %p904_p2 }
  0x4c   : > { %s611_s25 = scalar_lea.hbm %s1003_s0, 256  ;;  %p612_p4 = scmp.lt.u32.totalorder %s900_s7, %s1003_s0 }
  0x4d   : > { %p609_p0 = pnand %p608_p12, %p607_p11  ;;  %p613_p13 = scmp.lt.u32.totalorder %s611_s25, %s606_s10 }
  0x4e   : > { %p615_p10 = scmp.lt.u32.totalorder %s606_s10, %s900_s7 }
  0x4f   : > { %p610_p1 = pneg %p609_p0  ;;  %p614_p6 = por %p613_p13, %p612_p4 }
  0x51   : > { %p616_p3 = por %p615_p10, %p614_p6 }
  0x53   : > { %p617_p5 = pnand %p616_p3, %p610_p1 }
  0x55   : > { %620 = shalt.err (!%p617_p5)
}
  0x56   : > { %s621_s28 = scalar_lea.vmem %s908_s8, 128  ;;  %s728_s5 = smov [#allocation2]  }
  0x57   : > { %p622_p9 = scmp.ne.s32.totalorder %s908_s8, %s621_s28  ;;  %s626_s6 = sshll.u32 %s728_s5, 4  ;;  %s627_s6 = int_to_ptr.vmem [resolvable:$false] %s626_s6 }
  0x58   : > { %s628_s21 = scalar_lea.vmem %s627_s6, 256  ;;  %p629_p7 = scmp.lt.s32.totalorder %s908_s8, %s627_s6 }
  0x59   : > { %p624_p11 = pnand %p622_p9, %p608_p12  ;;  %p630_p4 = scmp.lt.s32.totalorder %s628_s21, %s621_s28 }
  0x5b   : > { %p625_p0 = pneg %p624_p11  ;;  %p631_p13 = por %p630_p4, %p629_p7 }
  0x5d   : > { %p632_p6 = pnand %p631_p13, %p625_p0 }
  0x5f   : > { %635 = shalt.err (!%p632_p6)
}
  0x60   : > { %483 = dma.hbm_to_vmem [thread:$0]  (!%p904_p2), %s900_s7, 128, %s908_s8, %s185_s9  }
  0x61   : > { %204 = sbr.rel (%p806_p8) target bundleno = 345 (0x159), region = 32  ;;  %s938_s10 = sand.u32 (!%p806_p8), 1, %s706_s13  }
  0x62   : > { %s438_s11 = sshll.u32 (!%p806_p8), %s938_s10, 3  ;;  %s207_s19 = scalar_lea.sflag (!%p806_p8), [#allocation3], %s938_s10 }
  0x63   : > { %s210_s25 = scalar_lea.vmem (!%p806_p8), [#allocation2], %s438_s11  ;;  %p1019_p7 = scmp.ne.s32.totalorder (!%p806_p8), %s1013_s22, 0 }
  0x68   : > { %689 = dma.done.wait (%p1019_p7), %s207_s19, 128  }
  0x69   : > { %691 = vsyncadd (%p1019_p7), %s207_s19, 4294967168  ;;  %p1020_p12 = scmp.ne.s32.totalorder %s1011_s20, 0 }
  0x6b   : > { %693 = dma.done.wait (%p1020_p12), [#allocation6], 272  }
  0x6c   : > { %695 = vsyncadd (%p1020_p12), [#allocation6], 4294967024  ;;  %v729_v0 = vmov 0.0   ;;  %vm730_vm0 = vmmov 0   ;;  %v548_v1 = vld [vmem:[#allocation5] sm:$0xff]   ;;  %v549_v2 = vld [vmem:[#allocation5 + $0x8] sm:$0xff]  }
  0x6d   : > { %453 = vmatprep.subr.bf16.mxu0 %v729_v0  ;;  %457 = vmatprep.mubr.msk.bf16.mxu0 %vm730_vm0, %v729_v0  ;;  %v242_v3 = vld [vmem:[%s210_s25] sm:$0xff]  ;;  %vm267_vm1 = vcmask 261120   ;;  %s447_s22 = sshll.u32 %s714_s15, 7  ;;  %s240_s20 = scalar_lea.vmem [#allocation8], %s438_s11 }
  0x6e   : > { %454 = vmatpush3.bf16.msra.mxu0 %v548_v1  ;;  %v243_v4 = vpack.c.bf16 %v242_v3, %v242_v3  ;;  %v442_v5 = vld [vmem:[#allocation7] ss:$0 sm:$0xff]  ;;  %s327_s24 = sshll.u32 %s240_s20, 4  ;;  %s954_s26 = scalar_lea.hbm %s1006_s3, %s447_s22  ;;  %s956_s24 = int_to_ptr.vmem [resolvable:$true] %s327_s24 }
  0x6f   : > { %455 = vmatprep.subr.bf16.mxu0 %v729_v0  ;;  %s313_s9 = scalar_lea.sflag [#allocation4], %s938_s10  ;;  %s636_s15 = scalar_lea.vmem %s956_s24, 128 }
  0x70   : > { %p637_p8 = scmp.ne.s32.totalorder %s956_s24, %s636_s15  ;;  %p1021_p2 = scmp.ne.s32.totalorder %s1017_s27, 0 }
  0x71   : > { %s731_s29 = smov [#allocation8]  }
  0x72   : > { %456 = vmatpush3.bf16.msra.mxu0 %v549_v2  ;;  %p638_p1 = pnand %p637_p8, %p1021_p2  ;;  %s640_s30 = sshll.u32 %s731_s29, 4  ;;  %s641_s30 = int_to_ptr.vmem [resolvable:$false] %s640_s30 }
  0x73   : > { %s642_s28 = scalar_lea.vmem %s641_s30, 256  ;;  %p643_p3 = scmp.lt.s32.totalorder %s956_s24, %s641_s30 }
  0x74   : > { %p639_p10 = pneg %p638_p1  ;;  %p644_p5 = scmp.lt.s32.totalorder %s642_s28, %s636_s15 }
  0x75   : > { %458 = vmatmul.mubr.msk.bf16.vlgmr.msra.gmra.mrb[0].mxu0 %vm267_vm1, %v243_v4 }
  0x76   : > { %p645_p9 = por %p644_p5, %p643_p3 }
  0x78   : > { %p646_p11 = pnand %p645_p9, %p639_p10 }
 0x148   : > { %v305_v6 = vpop.f32.mrb[0].mxu0 }
 0x149   : > { %v306_v7 = vadd.f32 %v442_v5, %v305_v6  ;;  %v459_v8 = vpop.f32.mrb[1].mxu0 }
 0x14a   : > { %v308_v9 = vpop.f32.mrb[2].mxu0 }
 0x14b   : > { %311 = vst [vmem:[%s240_s20] sm:$0xff] %v306_v7  ;;  %v460_v10 = vpop.f32.mrb[3].mxu0 }
 0x14c   : > { %649 = shalt.err (!%p646_p11)
}
 0x14d   : > { %s650_s5 = scalar_lea.hbm %s954_s26, 128  ;;  %s654_s10 = scalar_lea.hbm %s1006_s3, 256 }
 0x14e   : > { %p651_p0 = scmp.ne.s32.totalorder %s954_s26, %s650_s5  ;;  %p655_p6 = scmp.lt.u32.totalorder %s954_s26, %s1006_s3 }
 0x14f   : > { %p656_p7 = scmp.lt.u32.totalorder %s654_s10, %s650_s5  ;;  %p658_p8 = scmp.lt.u32.totalorder %s650_s5, %s954_s26 }
 0x150   : > { %p652_p4 = pnand %p651_p0, %p1021_p2 }
 0x151   : > { %p657_p12 = por %p656_p7, %p655_p6 }
 0x152   : > { %p653_p13 = pneg %p652_p4 }
 0x153   : > { %p659_p1 = por %p658_p8, %p657_p12 }
 0x155   : > { %p660_p10 = pnand %p659_p1, %p653_p13 }
 0x157   : > { %663 = shalt.err (!%p660_p10)
}
 0x158   : > { %471 = dma.vmem_to_hbm [thread:$0]  (%p1021_p2), %s956_s24, 128, %s954_s26, %s313_s9  }
 0x159 PF: > { %s339_s25 = sand.u32 1, %s702_s12   ;;  %p1022_p3 = scmp.ne.s32.totalorder %s1014_s23, 0 }
 0x15a   : > { %p1023_p5 = scmp.ge.s32.totalorder %s722_s17, 2  ;;  %s340_s22 = scalar_lea.sflag [#allocation4], %s339_s25 }
 0x15c   : > { %p485_p9 = pnand %p1023_p5, %p1022_p3 }
 0x15e   : > { %697 = dma.done.wait (!%p485_p9), %s340_s22, 128  }
 0x15f   : > { %699 = vsyncadd (!%p485_p9), %s340_s22, 4294967168  ;;  %s20_s17 = sadd.s32 1, %s722_s17   ;;  %s1024_s12 = smov %s706_s13 }
 0x160   : > { %p17_p11 = scmp.ge.s32.totalorder %s20_s17, 4   ;;  %s1025_s13 = smov %s710_s14 }
 0x161   : > { %s1026_s14 = smov %s895_s4  ;;  %s1027_s15 = smov %s718_s16 }
 0x162   : > { %s1028_s16 = smov %s1030_s18  ;;  %19 = sbr.rel (!%p17_p11) target bundleno = 7 (0x7), region = 87 }
 0x169   :  { %345 = vsyncpa [#allocation3], 1 }
 0x16a   :  { %347 = vsyncpa [#allocation3 + $0x1], 1 }
 0x16b   :  { %348 = vsyncpa [#allocation6], 1 }
 0x16c   :  { %349 = vsyncpa [#allocation4], 1 }
 0x16d   :  { %351 = vsyncpa [#allocation4 + $0x1], 1 }

// kernel: transformer_decoder_forward.3
= control target key start
LH: loop header
LB: loop body
LE: loop exit
PB: predicated region body
PF: predicated region fallthrough
CT: control target
= control target key end

     0   :  { %s5490_s0 = inlined_call_operand.hbm [shape: f32[2,8,32], index: 0, kind: input, shape index: {}]   ;;  %s5491_s1 = inlined_call_operand.hbm [shape: f32[2,8,32], index: 1, kind: input, shape index: {}]   ;;  %s5492_s2 = inlined_call_operand.hbm [shape: f32[8,8], index: 2, kind: input, shape index: {}]   ;;  %s5493_s3 = inlined_call_operand.hbm [shape: f32[2,1,8], index: 3, kind: input, shape index: {}]   ;;  %s5494_s4 = inlined_call_operand.hbm [shape: bf16[32,96], index: 4, kind: input, shape index: {}]   ;;  %s5495_s5 = inlined_call_operand.hbm [shape: f32[1,96], index: 5, kind: input, shape index: {}]   ;;  %s5496_s6 = inlined_call_operand.hbm [shape: bf16[32,32], index: 6, kind: input, shape index: {}]   ;;  %s5497_s7 = inlined_call_operand.hbm [shape: f32[1,32], index: 7, kind: input, shape index: {}]   ;;  %s5498_s8 = inlined_call_operand.hbm [shape: f32[1,32], index: 8, kind: input, shape index: {}]   ;;  %s5499_s9 = inlined_call_operand.hbm [shape: f32[1,32], index: 9, kind: input, shape index: {}]   ;;  %s5500_s10 = inlined_call_operand.hbm [shape: bf16[32,32], index: 10, kind: input, shape index: {}]   ;;  %s5501_s11 = inlined_call_operand.hbm [shape: f32[1,32], index: 11, kind: input, shape index: {}]   ;;  %s5502_s12 = inlined_call_operand.hbm [shape: bf16[32,64], index: 12, kind: input, shape index: {}]   ;;  %s5503_s13 = inlined_call_operand.hbm [shape: f32[1,64], index: 13, kind: input, shape index: {}]   ;;  %s5504_s14 = inlined_call_operand.hbm [shape: bf16[32,32], index: 14, kind: input, shape index: {}]   ;;  %s5505_s15 = inlined_call_operand.hbm [shape: f32[1,32], index: 15, kind: input, shape index: {}]   ;;  %s5506_s16 = inlined_call_operand.hbm [shape: f32[1,32], index: 16, kind: input, shape index: {}]   ;;  %s5507_s17 = inlined_call_operand.hbm [shape: f32[1,32], index: 17, kind: input, shape index: {}]   ;;  %s5508_s18 = inlined_call_operand.hbm [shape: bf16[32,64], index: 18, kind: input, shape index: {}]   ;;  %s5509_s19 = inlined_call_operand.hbm [shape: f32[1,64], index: 19, kind: input, shape index: {}]   ;;  %s5510_s20 = inlined_call_operand.hbm [shape: bf16[64,32], index: 20, kind: input, shape index: {}]   ;;  %s5511_s21 = inlined_call_operand.hbm [shape: f32[1,32], index: 21, kind: input, shape index: {}]   ;;  %s5512_s22 = inlined_call_operand.hbm [shape: f32[1,32], index: 22, kind: input, shape index: {}]   ;;  %s5513_s23 = inlined_call_operand.hbm [shape: f32[1,32], index: 23, kind: input, shape index: {}]   ;;  %s5514_s24 = inlined_call_operand.hbm [shape: f32[2,8,32], index: 24, kind: output, shape index: {}]  }
   0x1   :  { %5551 = sst [smem:[#allocation64_spill]] %s5490_s0 }
   0x2   :  { %5552 = sst [smem:[#allocation65_spill]] %s5491_s1 }
   0x3   :  { %5553 = sst [smem:[#allocation66_spill]] %s5492_s2 }
   0x4   :  { %5554 = sst [smem:[#allocation67_spill]] %s5493_s3 }
   0x5   :  { %5555 = sst [smem:[#allocation68_spill]] %s5494_s4 }
   0x6   :  { %5556 = sst [smem:[#allocation69_spill]] %s5495_s5 }
   0x7   :  { %5557 = sst [smem:[#allocation70_spill]] %s5496_s6 }
   0x8   :  { %5558 = sst [smem:[#allocation71_spill]] %s5497_s7 }
   0x9   :  { %5559 = sst [smem:[#allocation72_spill]] %s5498_s8 }
   0xa   :  { %5560 = sst [smem:[#allocation73_spill]] %s5499_s9 }
   0xb   :  { %5561 = sst [smem:[#allocation74_spill]] %s5500_s10 }
   0xc   :  { %5562 = sst [smem:[#allocation75_spill]] %s5501_s11 }
   0xd   :  { %5563 = sst [smem:[#allocation76_spill]] %s5502_s12 }
   0xe   :  { %5564 = sst [smem:[#allocation77_spill]] %s5503_s13 }
   0xf   :  { %5565 = sst [smem:[#allocation78_spill]] %s5504_s14 }
  0x10   :  { %5566 = sst [smem:[#allocation79_spill]] %s5505_s15 }
  0x11   :  { %5567 = sst [smem:[#allocation80_spill]] %s5506_s16 }
  0x12   :  { %5568 = sst [smem:[#allocation81_spill]] %s5507_s17 }
  0x13   :  { %5569 = sst [smem:[#allocation82_spill]] %s5508_s18 }
  0x14   :  { %5570 = sst [smem:[#allocation83_spill]] %s5509_s19 }
  0x15   :  { %5571 = sst [smem:[#allocation84_spill]] %s5512_s22 }
  0x16   :  { %5572 = sst [smem:[#allocation85_spill]] %s5513_s23 }
  0x17   :  { %5573 = sst [smem:[#allocation86_spill]] %s5514_s24 }
  0x18   :  { %29 = vsyncpa [#allocation4], 0 }
  0x19   :  { %31 = vsyncpa [#allocation4 + $0x1], 0 }
  0x1a   :  { %32 = vsyncpa [#allocation7], 0 }
  0x1b   :  { %34 = vsyncpa [#allocation7 + $0x1], 0 }
  0x1c   :  { %35 = vsyncpa [#allocation10], 0 }
  0x1d   :  { %37 = vsyncpa [#allocation10 + $0x1], 0 }
  0x1e   :  { %38 = vsyncpa [#allocation13], 0 }
  0x1f   :  { %39 = vsyncpa [#allocation16], 0 }
  0x20   :  { %40 = vsyncpa [#allocation19], 0 }
  0x21   :  { %41 = vsyncpa [#allocation22], 0 }
  0x22   :  { %42 = vsyncpa [#allocation25], 0 }
  0x23   :  { %43 = vsyncpa [#allocation28], 0 }
  0x24   :  { %44 = vsyncpa [#allocation31], 0 }
  0x25   :  { %45 = vsyncpa [#allocation34], 0 }
  0x26   :  { %46 = vsyncpa [#allocation37], 0 }
  0x27   :  { %47 = vsyncpa [#allocation40], 0 }
  0x28   :  { %48 = vsyncpa [#allocation5], 0 }
  0x29   :  { %50 = vsyncpa [#allocation5 + $0x1], 0  ;;  %s4573_s5 = smov 0   ;;  %s4575_s26 = smov 0  }
  0x2a   :  { %s4577_s27 = smov 0   ;;  %s4579_s28 = smov 0  }
  0x2b   :  { %5574 = sst [smem:[#allocation58_spill]] %s4577_s27 }
  0x2c LB: > { %s5576_s27 = sld [smem:[#allocation58_spill]]  ;;  %5578 = sst [smem:[#allocation59_spill]] %s4395_s26  ;;  %s4403_s28 = sphi %s4579_s28, %s5034_s28   ;;  %s4395_s26 = sphi %s4575_s26, %s5660_s26   ;;  %s4391_s5 = sphi %s4573_s5, %s5659_s5  }
  0x2d   : > { %5577 = sst [smem:[#allocation58_spill]] %s4391_s5  ;;  %s4405_s6 = smov [#allocation8]  }
  0x2e   : > { %5580 = sst [smem:[#allocation61_spill]] %s4403_s28  ;;  %s619_s2 = sshll.u32 %s4405_s6, 4  ;;  %s620_s2 = int_to_ptr.vmem [resolvable:$true] %s619_s2 }
  0x2f   : > { %s4594_s29 = sadd.s32 4294967295, %s4403_s28   ;;  %p2943_p0 = scmp.ge.s32.totalorder %s4403_s28, 1 }
  0x30   : > { %5581 = sst [smem:[#allocation62_spill]] %s4594_s29  ;;  %p5529_p1 = scmp.eq.s32.totalorder %s4594_s29, 0 }
  0x31   : > { %p606_p2 = scmp.lt.s32.totalorder %s4403_s28, 3  ;;  %s4406_s7 = smov [#allocation11]  }
  0x32   : > { %5579 = sst [smem:[#allocation60_spill]] %s5576_s27  ;;  %s629_s30 = sshll.u32 %s4406_s7, 4  ;;  %s4606_s30 = int_to_ptr.vmem [resolvable:$true] %s629_s30 }
  0x33   : > { %p4599_p3 = pnand %p2943_p0, %p606_p2  ;;  %s4407_s25 = smov [#allocation12]  }
  0x34   : > { %s643_s8 = sshll.u32 %s4407_s25, 4  ;;  %s5585_s6 = sld [smem:[#allocation66_spill]]  ;;  %s4614_s8 = int_to_ptr.vmem [resolvable:$true] %s643_s8 }
  0x35   : > { %s5582_s0 = scalar_select %p4599_p3, 1, 0 }
  0x36   : > { %p3356_p5 = pneg %p4599_p3 }
  0x37   : > { %5583 = sst [smem:[#allocation63_spill]] %s5582_s0 }
  0x38   : > { %p4610_p6 = pnand %p3356_p5, %p5529_p1 }
  0x3a   : > { %s3603_s24 = scalar_lea.hbm %s5585_s6, 128  ;;  %p4624_p8 = pneg %p4610_p6 }
  0x3b   : > { %p3604_p7 = scmp.ne.s32.totalorder %s5585_s6, %s3603_s24  ;;  %p3610_p11 = scmp.lt.u32.totalorder %s3603_s24, %s5585_s6 }
  0x3d   : > { %p3606_p9 = pnand %p4624_p8, %p3604_p7 }
  0x3f   : > { %p3607_p10 = pneg %p3606_p9 }
  0x41   : > { %p3612_p12 = pnand %p3610_p11, %p3607_p10 }
  0x43   : > { %3615 = shalt.err (!%p3612_p12)
}
  0x44   : > { %s3616_s4 = scalar_lea.vmem %s620_s2, 128  ;;  %p3624_p5 = scmp.lt.s32.totalorder %s620_s2, %s620_s2 }
  0x45   : > { %p3617_p13 = scmp.ne.s32.totalorder %s620_s2, %s3616_s4  ;;  %p3625_p4 = scmp.lt.s32.totalorder %s3616_s4, %s3616_s4 }
  0x47   : > { %p3619_p0 = pnand %p3617_p13, %p4624_p8  ;;  %p3626_p1 = por %p3625_p4, %p3624_p5 }
  0x49   : > { %p3620_p2 = pneg %p3619_p0 }
  0x4b   : > { %p3627_p3 = pnand %p3626_p1, %p3620_p2 }
  0x4d   : > { %3630 = shalt.err (!%p3627_p3)
}
  0x4e   : > { %3359 = dma.hbm_to_vmem [thread:$0]  (!%p4610_p6), %s5585_s6, 128, %s620_s2, [#allocation7]  }
  0x4f   : > { %s5587_s1 = sld [smem:[#allocation68_spill]] }
  0x55   : > { %s3631_s25 = scalar_lea.hbm %s5587_s1, 256 }
  0x56   : > { %p3632_p7 = scmp.ne.s32.totalorder %s5587_s1, %s3631_s25  ;;  %p3638_p1 = scmp.lt.u32.totalorder %s3631_s25, %s5587_s1 }
  0x58   : > { %p3634_p9 = pnand %p3632_p7, %p4624_p8 }
  0x5a   : > { %p3635_p4 = pneg %p3634_p9 }
  0x5c   : > { %p3640_p3 = pnand %p3638_p1, %p3635_p4 }
  0x5e   : > { %3643 = shalt.err (!%p3640_p3)
}
  0x5f   : > { %s3644_s2 = scalar_lea.vmem %s4606_s30, 256  ;;  %p3652_p13 = scmp.lt.s32.totalorder %s4606_s30, %s4606_s30 }
  0x60   : > { %p3645_p10 = scmp.ne.s32.totalorder %s4606_s30, %s3644_s2  ;;  %p3653_p0 = scmp.lt.s32.totalorder %s3644_s2, %s3644_s2 }
  0x62   : > { %p3647_p11 = pnand %p3645_p10, %p4624_p8  ;;  %p3654_p2 = por %p3653_p0, %p3652_p13 }
  0x64   : > { %p3648_p12 = pneg %p3647_p11 }
  0x66   : > { %p3655_p5 = pnand %p3654_p2, %p3648_p12 }
  0x68   : > { %3658 = shalt.err (!%p3655_p5)
}
  0x69   : > { %s5537_s26 = smov 64   ;;  %s5539_s27 = smov 4  }
  0x6a   : > { %3362 = dma.hbm_to_vmem [thread:$0]  (!%p4610_p6), %s5587_s1, 256, %s4606_s30, [#allocation10], %s5537_s26, %s5537_s26, %s5539_s27  }
  0x6b   : > { %s5588_s29 = sld [smem:[#allocation69_spill]] }
  0x71   : > { %s3659_s25 = scalar_lea.hbm %s5588_s29, 16 }
  0x72   : > { %p3660_p7 = scmp.ne.s32.totalorder %s5588_s29, %s3659_s25  ;;  %p3666_p1 = scmp.lt.u32.totalorder %s3659_s25, %s5588_s29 }
  0x74   : > { %p3662_p9 = pnand %p3660_p7, %p4624_p8 }
  0x76   : > { %p3663_p4 = pneg %p3662_p9 }
  0x78   : > { %p3668_p3 = pnand %p3666_p1, %p3663_p4 }
  0x7a   : > { %3671 = shalt.err (!%p3668_p3)
}
  0x7b   : > { %s3672_s30 = scalar_lea.vmem %s4614_s8, 16  ;;  %s3679_s28 = scalar_lea.vmem %s4614_s8, 32 }
  0x7c   : > { %p3673_p10 = scmp.ne.s32.totalorder %s4614_s8, %s3672_s30  ;;  %p3680_p13 = scmp.lt.s32.totalorder %s4614_s8, %s4614_s8 }
  0x7d   : > { %p3681_p0 = scmp.lt.s32.totalorder %s3679_s28, %s3672_s30 }
  0x7e   : > { %p3675_p11 = pnand %p3673_p10, %p4624_p8 }
  0x7f   : > { %p3682_p2 = por %p3681_p0, %p3680_p13 }
  0x80   : > { %p3676_p12 = pneg %p3675_p11 }
  0x82   : > { %p3683_p5 = pnand %p3682_p2, %p3676_p12 }
  0x84   : > { %3686 = shalt.err (!%p3683_p5)
}
  0x85   : > { %3365 = dma.hbm_to_vmem [thread:$0]  (!%p4610_p6), %s5588_s29, 16, %s4614_s8, [#allocation13]  }
  0x86   : > { %s4410_s5 = smov [#allocation15]   ;;  %s4411_s24 = smov [#allocation18]  }
  0x87   : > { %s667_s0 = sshll.u32 %s4410_s5, 4  ;;  %s689_s25 = sshll.u32 %s4411_s24, 4  ;;  %s668_s0 = int_to_ptr.vmem [resolvable:$true] %s667_s0  ;;  %s690_s25 = int_to_ptr.vmem [resolvable:$true] %s689_s25 }
  0x88   : > { %s5589_s26 = sld [smem:[#allocation71_spill]] }
  0x8e   : > { %s5590_s27 = smov %s5589_s26  ;;  %s3687_s30 = scalar_lea.hbm %s5589_s26, 16 }
  0x8f   : > { %p3688_p7 = scmp.ne.s32.totalorder %s5590_s27, %s3687_s30  ;;  %p3694_p1 = scmp.lt.u32.totalorder %s3687_s30, %s5590_s27 }
  0x91   : > { %p3690_p9 = pnand %p3688_p7, %p4624_p8 }
  0x93   : > { %p3691_p4 = pneg %p3690_p9 }
  0x95   : > { %p3696_p3 = pnand %p3694_p1, %p3691_p4 }
  0x97   : > { %3699 = shalt.err (!%p3696_p3)
}
  0x98   : > { %s3700_s8 = scalar_lea.vmem %s668_s0, 16  ;;  %s3707_s26 = scalar_lea.vmem %s668_s0, 32 }
  0x99   : > { %p3701_p10 = scmp.ne.s32.totalorder %s668_s0, %s3700_s8  ;;  %p3708_p13 = scmp.lt.s32.totalorder %s668_s0, %s668_s0 }
  0x9a   : > { %p3709_p0 = scmp.lt.s32.totalorder %s3707_s26, %s3700_s8 }
  0x9b   : > { %p3703_p11 = pnand %p3701_p10, %p4624_p8 }
  0x9c   : > { %p3710_p2 = por %p3709_p0, %p3708_p13 }
  0x9d   : > { %p3704_p12 = pneg %p3703_p11 }
  0x9f   : > { %p3711_p5 = pnand %p3710_p2, %p3704_p12 }
  0xa1   : > { %3714 = shalt.err (!%p3711_p5)
}
  0xa2   : > { %3371 = dma.hbm_to_vmem [thread:$0]  (!%p4610_p6), %s5590_s27, 16, %s668_s0, [#allocation16]  }
  0xa3   : > { %s5591_s9 = sld [smem:[#allocation73_spill]] }
  0xa9   : > { %s3715_s24 = scalar_lea.hbm %s5591_s9, 16 }
  0xaa   : > { %p3716_p7 = scmp.ne.s32.totalorder %s5591_s9, %s3715_s24  ;;  %p3722_p1 = scmp.lt.u32.totalorder %s3715_s24, %s5591_s9 }
  0xac   : > { %p3718_p9 = pnand %p3716_p7, %p4624_p8 }
  0xae   : > { %p3719_p4 = pneg %p3718_p9 }
  0xb0   : > { %p3724_p3 = pnand %p3722_p1, %p3719_p4 }
  0xb2   : > { %3727 = shalt.err (!%p3724_p3)
}
  0xb3   : > { %s3728_s23 = scalar_lea.vmem %s690_s25, 16  ;;  %s3735_s0 = scalar_lea.vmem %s690_s25, 32 }
  0xb4   : > { %p3729_p10 = scmp.ne.s32.totalorder %s690_s25, %s3728_s23  ;;  %p3736_p13 = scmp.lt.s32.totalorder %s690_s25, %s690_s25 }
  0xb5   : > { %p3737_p0 = scmp.lt.s32.totalorder %s3735_s0, %s3728_s23 }
  0xb6   : > { %p3731_p11 = pnand %p3729_p10, %p4624_p8 }
  0xb7   : > { %p3738_p2 = por %p3737_p0, %p3736_p13 }
  0xb8   : > { %p3732_p12 = pneg %p3731_p11 }
  0xba   : > { %p3739_p5 = pnand %p3738_p2, %p3732_p12 }
  0xbc   : > { %3742 = shalt.err (!%p3739_p5)
}
  0xbd   : > { %3377 = dma.hbm_to_vmem [thread:$0]  (!%p4610_p6), %s5591_s9, 16, %s690_s25, [#allocation19]  }
  0xbe   : > { %s4412_s1 = smov [#allocation21]   ;;  %s4413_s22 = smov [#allocation24]  }
  0xbf   : > { %s713_s6 = sshll.u32 %s4412_s1, 4  ;;  %s737_s5 = sshll.u32 %s4413_s22, 4  ;;  %s714_s6 = int_to_ptr.vmem [resolvable:$true] %s713_s6  ;;  %s738_s5 = int_to_ptr.vmem [resolvable:$true] %s737_s5 }
  0xc0   : > { %s5592_s11 = sld [smem:[#allocation75_spill]] }
  0xc6   : > { %s3743_s2 = scalar_lea.hbm %s5592_s11, 16 }
  0xc7   : > { %p3744_p7 = scmp.ne.s32.totalorder %s5592_s11, %s3743_s2  ;;  %p3750_p1 = scmp.lt.u32.totalorder %s3743_s2, %s5592_s11 }
  0xc9   : > { %p3746_p9 = pnand %p3744_p7, %p4624_p8 }
  0xcb   : > { %p3747_p4 = pneg %p3746_p9 }
  0xcd   : > { %p3752_p3 = pnand %p3750_p1, %p3747_p4 }
  0xcf   : > { %3755 = shalt.err (!%p3752_p3)
}
  0xd0   : > { %s3756_s25 = scalar_lea.vmem %s714_s6, 16  ;;  %s3763_s8 = scalar_lea.vmem %s714_s6, 32 }
  0xd1   : > { %p3757_p10 = scmp.ne.s32.totalorder %s714_s6, %s3756_s25  ;;  %p3764_p13 = scmp.lt.s32.totalorder %s714_s6, %s714_s6 }
  0xd2   : > { %p3765_p0 = scmp.lt.s32.totalorder %s3763_s8, %s3756_s25 }
  0xd3   : > { %p3759_p11 = pnand %p3757_p10, %p4624_p8 }
  0xd4   : > { %p3766_p2 = por %p3765_p0, %p3764_p13 }
  0xd5   : > { %p3760_p12 = pneg %p3759_p11 }
  0xd7   : > { %p3767_p5 = pnand %p3766_p2, %p3760_p12 }
  0xd9   : > { %3770 = shalt.err (!%p3767_p5)
}
  0xda   : > { %3383 = dma.hbm_to_vmem [thread:$0]  (!%p4610_p6), %s5592_s11, 16, %s714_s6, [#allocation22]  }
  0xdb   : > { %s5593_s13 = sld [smem:[#allocation77_spill]] }
  0xe1   : > { %s3771_s4 = scalar_lea.hbm %s5593_s13, 16 }
  0xe2   : > { %p3772_p7 = scmp.ne.s32.totalorder %s5593_s13, %s3771_s4  ;;  %p3778_p1 = scmp.lt.u32.totalorder %s3771_s4, %s5593_s13 }
  0xe4   : > { %p3774_p9 = pnand %p3772_p7, %p4624_p8 }
  0xe6   : > { %p3775_p4 = pneg %p3774_p9 }
  0xe8   : > { %p3780_p3 = pnand %p3778_p1, %p3775_p4 }
  0xea   : > { %3783 = shalt.err (!%p3780_p3)
}
  0xeb   : > { %s3784_s0 = scalar_lea.vmem %s738_s5, 16  ;;  %s3791_s6 = scalar_lea.vmem %s738_s5, 32 }
  0xec   : > { %p3785_p10 = scmp.ne.s32.totalorder %s738_s5, %s3784_s0  ;;  %p3792_p13 = scmp.lt.s32.totalorder %s738_s5, %s738_s5 }
  0xed   : > { %p3793_p0 = scmp.lt.s32.totalorder %s3791_s6, %s3784_s0 }
  0xee   : > { %p3787_p11 = pnand %p3785_p10, %p4624_p8 }
  0xef   : > { %p3794_p2 = por %p3793_p0, %p3792_p13 }
  0xf0   : > { %p3788_p12 = pneg %p3787_p11 }
  0xf2   : > { %p3795_p5 = pnand %p3794_p2, %p3788_p12 }
  0xf4   : > { %3798 = shalt.err (!%p3795_p5)
}
  0xf5   : > { %3389 = dma.hbm_to_vmem [thread:$0]  (!%p4610_p6), %s5593_s13, 16, %s738_s5, [#allocation25]  }
  0xf6   : > { %s4414_s26 = smov [#allocation27]   ;;  %s4415_s22 = smov [#allocation30]  }
  0xf7   : > { %s761_s1 = sshll.u32 %s4414_s26, 4  ;;  %s783_s24 = sshll.u32 %s4415_s22, 4  ;;  %s762_s1 = int_to_ptr.vmem [resolvable:$true] %s761_s1  ;;  %s784_s24 = int_to_ptr.vmem [resolvable:$true] %s783_s24 }
  0xf8   : > { %s5594_s15 = sld [smem:[#allocation79_spill]] }
  0xfe   : > { %s3799_s30 = scalar_lea.hbm %s5594_s15, 16 }
  0xff   : > { %p3800_p7 = scmp.ne.s32.totalorder %s5594_s15, %s3799_s30  ;;  %p3806_p1 = scmp.lt.u32.totalorder %s3799_s30, %s5594_s15 }
 0x101   : > { %p3802_p9 = pnand %p3800_p7, %p4624_p8 }
 0x103   : > { %p3803_p4 = pneg %p3802_p9 }
 0x105   : > { %p3808_p3 = pnand %p3806_p1, %p3803_p4 }
 0x107   : > { %3811 = shalt.err (!%p3808_p3)
}
 0x108   : > { %s3812_s5 = scalar_lea.vmem %s762_s1, 16  ;;  %s3819_s25 = scalar_lea.vmem %s762_s1, 32 }
 0x109   : > { %p3813_p10 = scmp.ne.s32.totalorder %s762_s1, %s3812_s5  ;;  %p3820_p13 = scmp.lt.s32.totalorder %s762_s1, %s762_s1 }
 0x10a   : > { %p3821_p0 = scmp.lt.s32.totalorder %s3819_s25, %s3812_s5 }
 0x10b   : > { %p3815_p11 = pnand %p3813_p10, %p4624_p8 }
 0x10c   : > { %p3822_p2 = por %p3821_p0, %p3820_p13 }
 0x10d   : > { %p3816_p12 = pneg %p3815_p11 }
 0x10f   : > { %p3823_p5 = pnand %p3822_p2, %p3816_p12 }
 0x111   : > { %3826 = shalt.err (!%p3823_p5)
}
 0x112   : > { %3395 = dma.hbm_to_vmem [thread:$0]  (!%p4610_p6), %s5594_s15, 16, %s762_s1, [#allocation28]  }
 0x113   : > { %s5595_s17 = sld [smem:[#allocation81_spill]] }
 0x119   : > { %s3827_s2 = scalar_lea.hbm %s5595_s17, 16 }
 0x11a   : > { %p3828_p7 = scmp.ne.s32.totalorder %s5595_s17, %s3827_s2  ;;  %p3834_p1 = scmp.lt.u32.totalorder %s3827_s2, %s5595_s17 }
 0x11c   : > { %p3830_p9 = pnand %p3828_p7, %p4624_p8 }
 0x11e   : > { %p3831_p4 = pneg %p3830_p9 }
 0x120   : > { %p3836_p3 = pnand %p3834_p1, %p3831_p4 }
 0x122   : > { %3839 = shalt.err (!%p3836_p3)
}
 0x123   : > { %s3840_s6 = scalar_lea.vmem %s784_s24, 16  ;;  %s3847_s1 = scalar_lea.vmem %s784_s24, 32 }
 0x124   : > { %p3841_p10 = scmp.ne.s32.totalorder %s784_s24, %s3840_s6  ;;  %p3848_p13 = scmp.lt.s32.totalorder %s784_s24, %s784_s24 }
 0x125   : > { %p3849_p0 = scmp.lt.s32.totalorder %s3847_s1, %s3840_s6 }
 0x126   : > { %p3843_p11 = pnand %p3841_p10, %p4624_p8 }
 0x127   : > { %p3850_p2 = por %p3849_p0, %p3848_p13 }
 0x128   : > { %p3844_p12 = pneg %p3843_p11 }
 0x12a   : > { %p3851_p5 = pnand %p3850_p2, %p3844_p12 }
 0x12c   : > { %3854 = shalt.err (!%p3851_p5)
}
 0x12d   : > { %3401 = dma.hbm_to_vmem [thread:$0]  (!%p4610_p6), %s5595_s17, 16, %s784_s24, [#allocation31]  }
 0x12e   : > { %s4416_s8 = smov [#allocation33]   ;;  %s4417_s22 = smov [#allocation36]  }
 0x12f   : > { %s807_s26 = sshll.u32 %s4416_s8, 4  ;;  %s831_s4 = sshll.u32 %s4417_s22, 4  ;;  %s808_s26 = int_to_ptr.vmem [resolvable:$true] %s807_s26  ;;  %s832_s4 = int_to_ptr.vmem [resolvable:$true] %s831_s4 }
 0x130   : > { %s5596_s19 = sld [smem:[#allocation83_spill]] }
 0x136   : > { %s3855_s28 = scalar_lea.hbm %s5596_s19, 16 }
 0x137   : > { %p3856_p7 = scmp.ne.s32.totalorder %s5596_s19, %s3855_s28  ;;  %p3862_p1 = scmp.lt.u32.totalorder %s3855_s28, %s5596_s19 }
 0x139   : > { %p3858_p9 = pnand %p3856_p7, %p4624_p8 }
 0x13b   : > { %p3859_p4 = pneg %p3858_p9 }
 0x13d   : > { %p3864_p3 = pnand %p3862_p1, %p3859_p4 }
 0x13f   : > { %3867 = shalt.err (!%p3864_p3)
}
 0x140   : > { %s3868_s24 = scalar_lea.vmem %s808_s26, 16  ;;  %s3875_s5 = scalar_lea.vmem %s808_s26, 32 }
 0x141   : > { %p3869_p10 = scmp.ne.s32.totalorder %s808_s26, %s3868_s24  ;;  %p3876_p13 = scmp.lt.s32.totalorder %s808_s26, %s808_s26 }
 0x142   : > { %p3877_p0 = scmp.lt.s32.totalorder %s3875_s5, %s3868_s24 }
 0x143   : > { %p3871_p11 = pnand %p3869_p10, %p4624_p8 }
 0x144   : > { %p3878_p2 = por %p3877_p0, %p3876_p13 }
 0x145   : > { %p3872_p12 = pneg %p3871_p11 }
 0x147   : > { %p3879_p5 = pnand %p3878_p2, %p3872_p12 }
 0x149   : > { %3882 = shalt.err (!%p3879_p5)
}
 0x14a   : > { %3407 = dma.hbm_to_vmem [thread:$0]  (!%p4610_p6), %s5596_s19, 16, %s808_s26, [#allocation34]  }
 0x14b   : > { %s3883_s30 = scalar_lea.hbm %s5511_s21, 16 }
 0x14c   : > { %p3884_p7 = scmp.ne.s32.totalorder %s5511_s21, %s3883_s30  ;;  %p3890_p1 = scmp.lt.u32.totalorder %s3883_s30, %s5511_s21 }
 0x14e   : > { %p3886_p9 = pnand %p3884_p7, %p4624_p8 }
 0x150   : > { %p3887_p4 = pneg %p3886_p9 }
 0x152   : > { %p3892_p3 = pnand %p3890_p1, %p3887_p4 }
 0x154   : > { %3895 = shalt.err (!%p3892_p3)
}
 0x155   : > { %s3896_s1 = scalar_lea.vmem %s832_s4, 16  ;;  %s3903_s26 = scalar_lea.vmem %s832_s4, 32 }
 0x156   : > { %p3897_p10 = scmp.ne.s32.totalorder %s832_s4, %s3896_s1  ;;  %p3904_p13 = scmp.lt.s32.totalorder %s832_s4, %s832_s4 }
 0x157   : > { %p3905_p0 = scmp.lt.s32.totalorder %s3903_s26, %s3896_s1 }
 0x158   : > { %p3899_p11 = pnand %p3897_p10, %p4624_p8 }
 0x159   : > { %p3906_p2 = por %p3905_p0, %p3904_p13 }
 0x15a   : > { %p3900_p12 = pneg %p3899_p11 }
 0x15c   : > { %p3907_p5 = pnand %p3906_p2, %p3900_p12 }
 0x15e   : > { %3910 = shalt.err (!%p3907_p5)
}
 0x15f   : > { %3413 = dma.hbm_to_vmem [thread:$0]  (!%p4610_p6), %s5511_s21, 16, %s832_s4, [#allocation37]  }
 0x160   : > { %s4418_s25 = smov [#allocation14]   ;;  %s4419_s22 = smov [#allocation17]  }
 0x161   : > { %s653_s8 = sshll.u32 %s4418_s25, 4  ;;  %s678_s2 = sshll.u32 %s4419_s22, 4  ;;  %s654_s8 = int_to_ptr.vmem [resolvable:$true] %s653_s8  ;;  %s679_s2 = int_to_ptr.vmem [resolvable:$true] %s678_s2 }
 0x162   : > { %s5597_s23 = sld [smem:[#allocation70_spill]] }
 0x168   : > { %s3911_s0 = scalar_lea.hbm %s5597_s23, 256 }
 0x169   : > { %p3912_p7 = scmp.ne.s32.totalorder %s5597_s23, %s3911_s0  ;;  %p3918_p1 = scmp.lt.u32.totalorder %s3911_s0, %s5597_s23 }
 0x16b   : > { %p3914_p9 = pnand %p3912_p7, %p4624_p8 }
 0x16d   : > { %p3915_p4 = pneg %p3914_p9 }
 0x16f   : > { %p3920_p3 = pnand %p3918_p1, %p3915_p4 }
 0x171   : > { %3923 = shalt.err (!%p3920_p3)
}
 0x172   : > { %s3924_s4 = scalar_lea.vmem %s654_s8, 256  ;;  %p3932_p13 = scmp.lt.s32.totalorder %s654_s8, %s654_s8 }
 0x173   : > { %p3925_p10 = scmp.ne.s32.totalorder %s654_s8, %s3924_s4  ;;  %p3933_p0 = scmp.lt.s32.totalorder %s3924_s4, %s3924_s4 }
 0x175   : > { %p3927_p11 = pnand %p3925_p10, %p4624_p8  ;;  %p3934_p2 = por %p3933_p0, %p3932_p13 }
 0x177   : > { %p3928_p12 = pneg %p3927_p11 }
 0x179   : > { %p3935_p5 = pnand %p3934_p2, %p3928_p12 }
 0x17b   : > { %3938 = shalt.err (!%p3935_p5)
}
 0x17c   : > { %s5598_s5 = smov 4   ;;  %s5599_s25 = smov 64  }
 0x17d   : > { %3368 = dma.hbm_to_vmem [thread:$0]  (!%p4610_p6), %s5597_s23, 256, %s654_s8, [#allocation13], %s5599_s25, %s5599_s25, %s5598_s5  }
 0x17e   : > { %s5600_s6 = sld [smem:[#allocation72_spill]] }
 0x184   : > { %s3939_s1 = scalar_lea.hbm %s5600_s6, 16 }
 0x185   : > { %p3940_p7 = scmp.ne.s32.totalorder %s5600_s6, %s3939_s1  ;;  %p3946_p1 = scmp.lt.u32.totalorder %s3939_s1, %s5600_s6 }
 0x187   : > { %p3942_p9 = pnand %p3940_p7, %p4624_p8 }
 0x189   : > { %p3943_p4 = pneg %p3942_p9 }
 0x18b   : > { %p3948_p3 = pnand %p3946_p1, %p3943_p4 }
 0x18d   : > { %3951 = shalt.err (!%p3948_p3)
}
 0x18e   : > { %s3952_s22 = scalar_lea.vmem %s679_s2, 16  ;;  %s3959_s8 = scalar_lea.vmem %s679_s2, 32 }
 0x18f   : > { %p3953_p10 = scmp.ne.s32.totalorder %s679_s2, %s3952_s22  ;;  %p3960_p13 = scmp.lt.s32.totalorder %s679_s2, %s679_s2 }
 0x190   : > { %p3961_p0 = scmp.lt.s32.totalorder %s3959_s8, %s3952_s22 }
 0x191   : > { %p3955_p11 = pnand %p3953_p10, %p4624_p8 }
 0x192   : > { %p3962_p2 = por %p3961_p0, %p3960_p13 }
 0x193   : > { %p3956_p12 = pneg %p3955_p11 }
 0x195   : > { %p3963_p5 = pnand %p3962_p2, %p3956_p12 }
 0x197   : > { %3966 = shalt.err (!%p3963_p5)
}
 0x198   : > { %3374 = dma.hbm_to_vmem [thread:$0]  (!%p4610_p6), %s5600_s6, 16, %s679_s2, [#allocation16]  }
 0x199   : > { %s4420_s9 = smov [#allocation20]   ;;  %s4421_s1 = smov [#allocation23]  }
 0x19a   : > { %s699_s0 = sshll.u32 %s4420_s9, 4  ;;  %s723_s26 = sshll.u32 %s4421_s1, 4  ;;  %s700_s0 = int_to_ptr.vmem [resolvable:$true] %s699_s0  ;;  %s724_s26 = int_to_ptr.vmem [resolvable:$true] %s723_s26 }
 0x19b   : > { %s5601_s10 = sld [smem:[#allocation74_spill]] }
 0x1a1   : > { %s3967_s11 = scalar_lea.hbm %s5601_s10, 256 }
 0x1a2   : > { %p3968_p7 = scmp.ne.s32.totalorder %s5601_s10, %s3967_s11  ;;  %p3974_p1 = scmp.lt.u32.totalorder %s3967_s11, %s5601_s10 }
 0x1a4   : > { %p3970_p9 = pnand %p3968_p7, %p4624_p8 }
 0x1a6   : > { %p3971_p4 = pneg %p3970_p9 }
 0x1a8   : > { %p3976_p3 = pnand %p3974_p1, %p3971_p4 }
 0x1aa   : > { %3979 = shalt.err (!%p3976_p3)
}
 0x1ab   : > { %s3980_s2 = scalar_lea.vmem %s700_s0, 256  ;;  %p3988_p13 = scmp.lt.s32.totalorder %s700_s0, %s700_s0 }
 0x1ac   : > { %p3981_p10 = scmp.ne.s32.totalorder %s700_s0, %s3980_s2  ;;  %p3989_p0 = scmp.lt.s32.totalorder %s3980_s2, %s3980_s2 }
 0x1ae   : > { %p3983_p11 = pnand %p3981_p10, %p4624_p8  ;;  %p3990_p2 = por %p3989_p0, %p3988_p13 }
 0x1b0   : > { %p3984_p12 = pneg %p3983_p11 }
 0x1b2   : > { %p3991_p5 = pnand %p3990_p2, %p3984_p12 }
 0x1b4   : > { %3994 = shalt.err (!%p3991_p5)
}
 0x1b5   : > { %3380 = dma.hbm_to_vmem [thread:$0]  (!%p4610_p6), %s5601_s10, 256, %s700_s0, [#allocation19], %s5599_s25, %s5599_s25, %s5598_s5  }
 0x1b6   : > { %s5602_s12 = sld [smem:[#allocation76_spill]] }
 0x1bc   : > { %s3995_s1 = scalar_lea.hbm %s5602_s12, 256 }
 0x1bd   : > { %p3996_p7 = scmp.ne.s32.totalorder %s5602_s12, %s3995_s1  ;;  %p4002_p1 = scmp.lt.u32.totalorder %s3995_s1, %s5602_s12 }
 0x1bf   : > { %p3998_p9 = pnand %p3996_p7, %p4624_p8 }
 0x1c1   : > { %p3999_p4 = pneg %p3998_p9 }
 0x1c3   : > { %p4004_p3 = pnand %p4002_p1, %p3999_p4 }
 0x1c5   : > { %4007 = shalt.err (!%p4004_p3)
}
 0x1c6   : > { %s4008_s30 = scalar_lea.vmem %s724_s26, 256  ;;  %p4016_p13 = scmp.lt.s32.totalorder %s724_s26, %s724_s26 }
 0x1c7   : > { %p4009_p10 = scmp.ne.s32.totalorder %s724_s26, %s4008_s30  ;;  %p4017_p0 = scmp.lt.s32.totalorder %s4008_s30, %s4008_s30 }
 0x1c9   : > { %p4011_p11 = pnand %p4009_p10, %p4624_p8  ;;  %p4018_p2 = por %p4017_p0, %p4016_p13 }
 0x1cb   : > { %p4012_p12 = pneg %p4011_p11 }
 0x1cd   : > { %p4019_p5 = pnand %p4018_p2, %p4012_p12 }
 0x1cf   : > { %4022 = shalt.err (!%p4019_p5)
}
 0x1d0   : > { %3386 = dma.hbm_to_vmem [thread:$0]  (!%p4610_p6), %s5602_s12, 256, %s724_s26, [#allocation22], %s5599_s25, %s5599_s25, %s5598_s5  }
 0x1d1   : > { %s4422_s13 = smov [#allocation26]   ;;  %s4423_s28 = smov [#allocation29]  }
 0x1d2   : > { %s747_s11 = sshll.u32 %s4422_s13, 4  ;;  %s772_s9 = sshll.u32 %s4423_s28, 4  ;;  %s748_s11 = int_to_ptr.vmem [resolvable:$true] %s747_s11  ;;  %s773_s9 = int_to_ptr.vmem [resolvable:$true] %s772_s9 }
 0x1d3   : > { %s5603_s14 = sld [smem:[#allocation78_spill]] }
 0x1d9   : > { %s4023_s4 = scalar_lea.hbm %s5603_s14, 256 }
 0x1da   : > { %p4024_p7 = scmp.ne.s32.totalorder %s5603_s14, %s4023_s4  ;;  %p4030_p1 = scmp.lt.u32.totalorder %s4023_s4, %s5603_s14 }
 0x1dc   : > { %p4026_p9 = pnand %p4024_p7, %p4624_p8 }
 0x1de   : > { %p4027_p4 = pneg %p4026_p9 }
 0x1e0   : > { %p4032_p3 = pnand %p4030_p1, %p4027_p4 }
 0x1e2   : > { %4035 = shalt.err (!%p4032_p3)
}
 0x1e3   : > { %s4036_s26 = scalar_lea.vmem %s748_s11, 256  ;;  %p4044_p13 = scmp.lt.s32.totalorder %s748_s11, %s748_s11 }
 0x1e4   : > { %p4037_p10 = scmp.ne.s32.totalorder %s748_s11, %s4036_s26  ;;  %p4045_p0 = scmp.lt.s32.totalorder %s4036_s26, %s4036_s26 }
 0x1e6   : > { %p4039_p11 = pnand %p4037_p10, %p4624_p8  ;;  %p4046_p2 = por %p4045_p0, %p4044_p13 }
 0x1e8   : > { %p4040_p12 = pneg %p4039_p11 }
 0x1ea   : > { %p4047_p5 = pnand %p4046_p2, %p4040_p12 }
 0x1ec   : > { %4050 = shalt.err (!%p4047_p5)
}
 0x1ed   : > { %3392 = dma.hbm_to_vmem [thread:$0]  (!%p4610_p6), %s5603_s14, 256, %s748_s11, [#allocation25], %s5599_s25, %s5599_s25, %s5598_s5  }
 0x1ee   : > { %s5604_s16 = sld [smem:[#allocation80_spill]] }
 0x1f4   : > { %s4051_s24 = scalar_lea.hbm %s5604_s16, 16 }
 0x1f5   : > { %p4052_p7 = scmp.ne.s32.totalorder %s5604_s16, %s4051_s24  ;;  %p4058_p1 = scmp.lt.u32.totalorder %s4051_s24, %s5604_s16 }
 0x1f7   : > { %p4054_p9 = pnand %p4052_p7, %p4624_p8 }
 0x1f9   : > { %p4055_p4 = pneg %p4054_p9 }
 0x1fb   : > { %p4060_p3 = pnand %p4058_p1, %p4055_p4 }
 0x1fd   : > { %4063 = shalt.err (!%p4060_p3)
}
 0x1fe   : > { %s4064_s0 = scalar_lea.vmem %s773_s9, 16  ;;  %s4071_s11 = scalar_lea.vmem %s773_s9, 32 }
 0x1ff   : > { %p4065_p10 = scmp.ne.s32.totalorder %s773_s9, %s4064_s0  ;;  %p4072_p13 = scmp.lt.s32.totalorder %s773_s9, %s773_s9 }
 0x200   : > { %p4073_p0 = scmp.lt.s32.totalorder %s4071_s11, %s4064_s0 }
 0x201   : > { %p4067_p11 = pnand %p4065_p10, %p4624_p8 }
 0x202   : > { %p4074_p2 = por %p4073_p0, %p4072_p13 }
 0x203   : > { %p4068_p12 = pneg %p4067_p11 }
 0x205   : > { %p4075_p5 = pnand %p4074_p2, %p4068_p12 }
 0x207   : > { %4078 = shalt.err (!%p4075_p5)
}
 0x208   : > { %3398 = dma.hbm_to_vmem [thread:$0]  (!%p4610_p6), %s5604_s16, 16, %s773_s9, [#allocation28]  }
 0x209   : > { %s4424_s13 = smov [#allocation32]   ;;  %s4425_s1 = smov [#allocation35]  }
 0x20a   : > { %s793_s28 = sshll.u32 %s4424_s13, 4  ;;  %s817_s24 = sshll.u32 %s4425_s1, 4  ;;  %s794_s28 = int_to_ptr.vmem [resolvable:$true] %s793_s28  ;;  %s818_s24 = int_to_ptr.vmem [resolvable:$true] %s817_s24 }
 0x20b   : > { %s5605_s18 = sld [smem:[#allocation82_spill]] }
 0x211   : > { %s4079_s8 = scalar_lea.hbm %s5605_s18, 256 }
 0x212   : > { %p4080_p7 = scmp.ne.s32.totalorder %s5605_s18, %s4079_s8  ;;  %p4086_p1 = scmp.lt.u32.totalorder %s4079_s8, %s5605_s18 }
 0x214   : > { %p4082_p9 = pnand %p4080_p7, %p4624_p8 }
 0x216   : > { %p4083_p4 = pneg %p4082_p9 }
 0x218   : > { %p4088_p3 = pnand %p4086_p1, %p4083_p4 }
 0x21a   : > { %4091 = shalt.err (!%p4088_p3)
}
 0x21b   : > { %s4092_s9 = scalar_lea.vmem %s794_s28, 256  ;;  %p4100_p13 = scmp.lt.s32.totalorder %s794_s28, %s794_s28 }
 0x21c   : > { %p4093_p10 = scmp.ne.s32.totalorder %s794_s28, %s4092_s9  ;;  %p4101_p0 = scmp.lt.s32.totalorder %s4092_s9, %s4092_s9 }
 0x21e   : > { %p4095_p11 = pnand %p4093_p10, %p4624_p8  ;;  %p4102_p2 = por %p4101_p0, %p4100_p13 }
 0x220   : > { %p4096_p12 = pneg %p4095_p11 }
 0x222   : > { %p4103_p5 = pnand %p4102_p2, %p4096_p12 }
 0x224   : > { %4106 = shalt.err (!%p4103_p5)
}
 0x225   : > { %3404 = dma.hbm_to_vmem [thread:$0]  (!%p4610_p6), %s5605_s18, 256, %s794_s28, [#allocation31], %s5599_s25, %s5599_s25, %s5598_s5  }
 0x226   : > { %s4107_s22 = scalar_lea.hbm %s5510_s20, 512 }
 0x227   : > { %p4108_p7 = scmp.ne.s32.totalorder %s5510_s20, %s4107_s22  ;;  %p4114_p1 = scmp.lt.u32.totalorder %s4107_s22, %s5510_s20 }
 0x229   : > { %p4110_p9 = pnand %p4108_p7, %p4624_p8 }
 0x22b   : > { %p4111_p4 = pneg %p4110_p9 }
 0x22d   : > { %p4116_p3 = pnand %p4114_p1, %p4111_p4 }
 0x22f   : > { %4119 = shalt.err (!%p4116_p3)
}
 0x230   : > { %s4120_s26 = scalar_lea.vmem %s818_s24, 512  ;;  %p4128_p13 = scmp.lt.s32.totalorder %s818_s24, %s818_s24 }
 0x231   : > { %p4121_p10 = scmp.ne.s32.totalorder %s818_s24, %s4120_s26  ;;  %p4129_p0 = scmp.lt.s32.totalorder %s4120_s26, %s4120_s26 }
 0x233   : > { %p4123_p11 = pnand %p4121_p10, %p4624_p8  ;;  %p4130_p2 = por %p4129_p0, %p4128_p13 }
 0x235   : > { %p4124_p12 = pneg %p4123_p11 }
 0x237   : > { %p4131_p5 = pnand %p4130_p2, %p4124_p12 }
 0x239   : > { %4134 = shalt.err (!%p4131_p5)
}
 0x23a   : > { %3410 = dma.hbm_to_vmem [thread:$0]  (!%p4610_p6), %s5510_s20, 512, %s818_s24, [#allocation34], %s5599_s25, %s5599_s25, %s5598_s5  }
 0x23b   : > { %s4426_s2 = smov [#allocation38]   ;;  %s4427_s1 = smov [#allocation39]  }
 0x23c   : > { %s842_s13 = sshll.u32 %s4426_s2, 4  ;;  %s853_s4 = sshll.u32 %s4427_s1, 4  ;;  %s843_s13 = int_to_ptr.vmem [resolvable:$true] %s842_s13  ;;  %s854_s4 = int_to_ptr.vmem [resolvable:$true] %s853_s4 }
 0x23d   : > { %s5606_s30 = sld [smem:[#allocation84_spill]] }
 0x243   : > { %s4135_s0 = scalar_lea.hbm %s5606_s30, 16 }
 0x244   : > { %p4136_p7 = scmp.ne.s32.totalorder %s5606_s30, %s4135_s0  ;;  %p4142_p1 = scmp.lt.u32.totalorder %s4135_s0, %s5606_s30 }
 0x246   : > { %p4138_p9 = pnand %p4136_p7, %p4624_p8 }
 0x248   : > { %p4139_p4 = pneg %p4138_p9 }
 0x24a   : > { %p4144_p3 = pnand %p4142_p1, %p4139_p4 }
 0x24c   : > { %4147 = shalt.err (!%p4144_p3)
}
 0x24d   : > { %s4148_s5 = scalar_lea.vmem %s843_s13, 16  ;;  %s4155_s25 = scalar_lea.vmem %s843_s13, 32 }
 0x24e   : > { %p4149_p10 = scmp.ne.s32.totalorder %s843_s13, %s4148_s5  ;;  %p4156_p13 = scmp.lt.s32.totalorder %s843_s13, %s843_s13 }
 0x24f   : > { %p4157_p0 = scmp.lt.s32.totalorder %s4155_s25, %s4148_s5 }
 0x250   : > { %p4151_p11 = pnand %p4149_p10, %p4624_p8 }
 0x251   : > { %p4158_p2 = por %p4157_p0, %p4156_p13 }
 0x252   : > { %p4152_p12 = pneg %p4151_p11 }
 0x254   : > { %p4159_p5 = pnand %p4158_p2, %p4152_p12 }
 0x256   : > { %4162 = shalt.err (!%p4159_p5)
}
 0x257   : > { %3416 = dma.hbm_to_vmem [thread:$0]  (!%p4610_p6), %s5606_s30, 16, %s843_s13, [#allocation37]  }
 0x258   : > { %s5607_s1 = sld [smem:[#allocation85_spill]] }
 0x25e   : > { %s4163_s22 = scalar_lea.hbm %s5607_s1, 16 }
 0x25f   : > { %p4164_p7 = scmp.ne.s32.totalorder %s5607_s1, %s4163_s22  ;;  %p4170_p1 = scmp.lt.u32.totalorder %s4163_s22, %s5607_s1 }
 0x261   : > { %p4166_p9 = pnand %p4164_p7, %p4624_p8 }
 0x263   : > { %p4167_p4 = pneg %p4166_p9 }
 0x265   : > { %p4172_p3 = pnand %p4170_p1, %p4167_p4 }
 0x267   : > { %4175 = shalt.err (!%p4172_p3)
}
 0x268   : > { %s4176_s28 = scalar_lea.vmem %s854_s4, 16  ;;  %s4183_s13 = scalar_lea.vmem %s854_s4, 32 }
 0x269   : > { %p4177_p10 = scmp.ne.s32.totalorder %s854_s4, %s4176_s28  ;;  %p4184_p13 = scmp.lt.s32.totalorder %s854_s4, %s854_s4 }
 0x26a   : > { %p4185_p0 = scmp.lt.s32.totalorder %s4183_s13, %s4176_s28 }
 0x26b   : > { %p4179_p11 = pnand %p4177_p10, %p4624_p8 }
 0x26c   : > { %p4186_p2 = por %p4185_p0, %p4184_p13 }
 0x26d   : > { %p4180_p12 = pneg %p4179_p11 }
 0x26f   : > { %p4187_p5 = pnand %p4186_p2, %p4180_p12 }
 0x271   : > { %4190 = shalt.err (!%p4187_p5)
}
 0x272   : > { %s5608_s24 = sld [smem:[#allocation61_spill]]  ;;  %s5609_s9 = sld [smem:[#allocation60_spill]] }
 0x273   : > { %s5610_s6 = sld [smem:[#allocation59_spill]]  ;;  %s5611_s7 = sld [smem:[#allocation58_spill]] }
 0x274   : > { %s5612_s2 = sld [smem:[#allocation62_spill]]  ;;  %s5619_s12 = sld [smem:[#allocation65_spill]] }
 0x275   : > { %3419 = dma.hbm_to_vmem [thread:$0]  (!%p4610_p6), %s5607_s1, 16, %s854_s4, [#allocation40]  }
 0x278   : > { %s2942_s22 = sadd.s32 4294967294, %s5608_s24   ;;  %s5034_s28 = sadd.s32 1, %s5608_s24  }
 0x279   : > { %s63_s3 = sadd.s32 1, %s5609_s9  ;;  %s60_s8 = ssub.s32 %s5608_s24, %s5034_s28 }
 0x27a   : > { %p70_p8 = scmp.ne.s32.totalorder %s5609_s9, %s5610_s6  ;;  %p61_p7 = scmp.eq.s32.totalorder %s60_s8, 0 }
 0x27b   : > { %p71_p9 = scmp.eq.s32.totalorder %s5608_s24, 0  ;;  %p76_p4 = scmp.ne.s32.totalorder %s5610_s6, %s5611_s7 }
 0x27c   : > { %p593_p1 = scmp.eq.s32.totalorder %s5612_s2, 1  ;;  %p5613_p10 = scmp.eq.s32.totalorder %s5612_s2, 0 }
 0x27d   : > { %s5046_s0 = scalar_select %p61_p7, %s5609_s9, %s63_s3  }
 0x27e   : > { %p72_p3 = por %p71_p9, %p70_p8  ;;  %p5050_p11 = por %p5613_p10, %p76_p4 }
 0x27f   : > { %p5054_p6 = por %p593_p1, %p70_p8  ;;  %p599_p12 = scmp.eq.s32.totalorder %s2942_s22, 1 }
 0x280   : > { %s5614_s11 = scalar_select %p5050_p11, 1, 0 }
 0x281   : > { %s5615_s4 = scalar_select %p5054_p6, 1, 0 }
 0x282   : > { %p3455_p13 = scmp.lt.s32.totalorder %s5608_s24, 2  ;;  %s5060_s26 = sand.u32 1, %s5609_s9  }
 0x283   : > { %p5062_p0 = por %p599_p12, %p76_p4  ;;  %s5545_s5 = sshll.u32 %s5060_s26, 3 }
 0x284   : > { %s2967_s25 = sshll.u32 %s5608_s24, 7  ;;  %s5617_s2 = sld [smem:[#allocation64_spill]] }
 0x285   : > { %s5616_s13 = scalar_select %p5062_p0, 1, 0 }
 0x286   : > { %s868_s9 = scalar_lea.vmem [#allocation3], %s5545_s5  ;;  %p5075_p2 = pnand %p3455_p13, %p72_p3 }
 0x287   : > { %s875_s22 = sshll.u32 %s868_s9, 4  ;;  %s5084_s6 = scalar_lea.hbm %s5619_s12, %s2967_s25  ;;  %s5079_s22 = int_to_ptr.vmem [resolvable:$true] %s875_s22 }
 0x288   : > { %s5618_s8 = scalar_select %p5075_p2, 1, 0 }
 0x289   : > { %s865_s7 = scalar_lea.sflag [#allocation4], %s5060_s26  ;;  %p5091_p8 = pneg %p5075_p2 }
 0x28a   : > { %s5071_s3 = scalar_lea.hbm %s5617_s2, %s2967_s25  ;;  %s4196_s16 = scalar_lea.hbm %s5617_s2, 256 }
 0x28b   : > { %s4191_s14 = scalar_lea.hbm %s5071_s3, 128  ;;  %p4197_p4 = scmp.lt.u32.totalorder %s5071_s3, %s5617_s2 }
 0x28c   : > { %p4192_p5 = scmp.ne.s32.totalorder %s5071_s3, %s4191_s14  ;;  %p4198_p1 = scmp.lt.u32.totalorder %s4196_s16, %s4191_s14 }
 0x28d   : > { %p4200_p10 = scmp.lt.u32.totalorder %s4191_s14, %s5071_s3 }
 0x28e   : > { %p4194_p7 = pnand %p5091_p8, %p4192_p5  ;;  %p4199_p3 = por %p4198_p1, %p4197_p4 }
 0x290   : > { %p4195_p9 = pneg %p4194_p7  ;;  %p4201_p12 = por %p4200_p10, %p4199_p3 }
 0x292   : > { %p4202_p13 = pnand %p4201_p12, %p4195_p9 }
 0x294   : > { %4205 = shalt.err (!%p4202_p13)
}
 0x295   : > { %s4206_s1 = scalar_lea.vmem %s5079_s22, 128  ;;  %s4428_s5 = smov [#allocation3]  }
 0x296   : > { %p4207_p5 = scmp.ne.s32.totalorder %s5079_s22, %s4206_s1  ;;  %s4211_s25 = sshll.u32 %s4428_s5, 4  ;;  %s4212_s25 = int_to_ptr.vmem [resolvable:$false] %s4211_s25 }
 0x297   : > { %s4213_s17 = scalar_lea.vmem %s4212_s25, 256  ;;  %p4214_p6 = scmp.lt.s32.totalorder %s5079_s22, %s4212_s25 }
 0x298   : > { %p4209_p7 = pnand %p4207_p5, %p5091_p8  ;;  %p4215_p11 = scmp.lt.s32.totalorder %s4213_s17, %s4206_s1 }
 0x29a   : > { %p4210_p0 = pneg %p4209_p7  ;;  %p4216_p4 = por %p4215_p11, %p4214_p6 }
 0x29c   : > { %p4217_p1 = pnand %p4216_p4, %p4210_p0 }
 0x29e   : > { %4220 = shalt.err (!%p4217_p1)
}
 0x29f   : > { %3423 = dma.hbm_to_vmem [thread:$0]  (!%p5075_p2), %s5071_s3, 128, %s5079_s22, %s865_s7  }
 0x2a0   : > { %s882_s14 = sand.u32 1, %s5608_s24   ;;  %s5621_s16 = sshll.u32 %s5060_s26, 3 }
 0x2a1   : > { %s886_s9 = scalar_lea.vmem [#allocation6], %s5621_s16  ;;  %s883_s1 = scalar_lea.sflag [#allocation7], %s882_s14 }
 0x2a2   : > { %s893_s10 = sshll.u32 %s886_s9, 4  ;;  %s4221_s5 = scalar_lea.hbm %s5084_s6, 128  ;;  %s894_s10 = int_to_ptr.vmem [resolvable:$true] %s893_s10 }
 0x2a3   : > { %p4222_p11 = scmp.ne.s32.totalorder %s5084_s6, %s4221_s5  ;;  %s4226_s2 = scalar_lea.hbm %s5619_s12, 256 }
 0x2a4   : > { %p4227_p9 = scmp.lt.u32.totalorder %s5084_s6, %s5619_s12  ;;  %p4228_p3 = scmp.lt.u32.totalorder %s4226_s2, %s4221_s5 }
 0x2a5   : > { %p4224_p6 = pnand %p4222_p11, %p5091_p8  ;;  %p4230_p12 = scmp.lt.u32.totalorder %s4221_s5, %s5084_s6 }
 0x2a6   : > { %p4229_p10 = por %p4228_p3, %p4227_p9 }
 0x2a7   : > { %p4225_p0 = pneg %p4224_p6 }
 0x2a8   : > { %p4231_p13 = por %p4230_p12, %p4229_p10 }
 0x2aa   : > { %p4232_p5 = pnand %p4231_p13, %p4225_p0 }
 0x2ac   : > { %4235 = shalt.err (!%p4232_p5)
}
 0x2ad   : > { %s4236_s3 = scalar_lea.vmem %s894_s10, 128  ;;  %s4429_s22 = smov [#allocation6]  }
 0x2ae   : > { %p4237_p7 = scmp.ne.s32.totalorder %s894_s10, %s4236_s3  ;;  %s4241_s7 = sshll.u32 %s4429_s22, 4  ;;  %s4242_s7 = int_to_ptr.vmem [resolvable:$false] %s4241_s7 }
 0x2af   : > { %s4243_s16 = scalar_lea.vmem %s4242_s7, 256  ;;  %p4244_p11 = scmp.lt.s32.totalorder %s894_s10, %s4242_s7 }
 0x2b0   : > { %p4239_p4 = pnand %p4237_p7, %p5091_p8  ;;  %p4245_p6 = scmp.lt.s32.totalorder %s4243_s16, %s4236_s3 }
 0x2b2   : > { %p4240_p1 = pneg %p4239_p4  ;;  %p4246_p2 = por %p4245_p6, %p4244_p11 }
 0x2b4   : > { %p4247_p3 = pnand %p4246_p2, %p4240_p1 }
 0x2b6   : > { %4250 = shalt.err (!%p4247_p3)
}
 0x2b7   : > { %p5622_p9 = scmp.ne.s32.totalorder %s5618_s8, 0  ;;  %s2970_s18 = sshll.u32 %s5608_s24, 4 }
 0x2b8   : > { %s903_s19 = scalar_lea.vmem [#allocation9], %s5060_s26  ;;  %s5623_s25 = sld [smem:[#allocation67_spill]] }
 0x2b9   : > { %3426 = dma.hbm_to_vmem [thread:$0]  (!%p5622_p9), %s5084_s6, 128, %s894_s10, %s883_s1  }
 0x2ba   : > { %s910_s2 = sshll.u32 %s903_s19, 4  ;;  %s901_s3 = scalar_lea.sflag [#allocation10], %s882_s14  ;;  %s911_s2 = int_to_ptr.vmem [resolvable:$true] %s910_s2 }
 0x2be   : > { %s5141_s17 = scalar_lea.hbm %s5623_s25, %s2970_s18  ;;  %s4256_s10 = scalar_lea.hbm %s5623_s25, 32 }
 0x2bf   : > { %s4251_s22 = scalar_lea.hbm %s5141_s17, 16  ;;  %p4257_p12 = scmp.lt.u32.totalorder %s5141_s17, %s5623_s25 }
 0x2c0   : > { %p4252_p2 = scmp.ne.s32.totalorder %s5141_s17, %s4251_s22  ;;  %p4258_p13 = scmp.lt.u32.totalorder %s4256_s10, %s4251_s22 }
 0x2c1   : > { %p4260_p7 = scmp.lt.u32.totalorder %s4251_s22, %s5141_s17 }
 0x2c2   : > { %p4254_p0 = pnand %p4252_p2, %p5091_p8  ;;  %p4259_p5 = por %p4258_p13, %p4257_p12 }
 0x2c4   : > { %p4255_p10 = pneg %p4254_p0  ;;  %p4261_p4 = por %p4260_p7, %p4259_p5 }
 0x2c6   : > { %p4262_p1 = pnand %p4261_p4, %p4255_p10 }
 0x2c8   : > { %4265 = shalt.err (!%p4262_p1)
}
 0x2c9   : > { %s4266_s24 = scalar_lea.vmem %s911_s2, 16  ;;  %s4430_s14 = smov [#allocation9]  }
 0x2ca   : > { %p4267_p11 = scmp.ne.s32.totalorder %s911_s2, %s4266_s24  ;;  %s4271_s16 = sshll.u32 %s4430_s14, 4  ;;  %s4272_s16 = int_to_ptr.vmem [resolvable:$false] %s4271_s16 }
 0x2cb   : > { %s4273_s18 = scalar_lea.vmem %s4272_s16, 32  ;;  %p4274_p2 = scmp.lt.s32.totalorder %s911_s2, %s4272_s16 }
 0x2cc   : > { %p4269_p6 = pnand %p4267_p11, %p5091_p8  ;;  %p4275_p0 = scmp.lt.s32.totalorder %s4273_s18, %s4266_s24 }
 0x2ce   : > { %p4270_p3 = pneg %p4269_p6  ;;  %p4276_p9 = por %p4275_p0, %p4274_p2 }
 0x2d0   : > { %p4277_p12 = pnand %p4276_p9, %p4270_p3 }
 0x2d2   : > { %4280 = shalt.err (!%p4277_p12)
}
 0x2d3   : > { %p5624_p13 = scmp.ne.s32.totalorder %s5618_s8, 0  ;;  %s5625_s19 = sld [smem:[#allocation63_spill]] }
 0x2d5   : > { %3429 = dma.hbm_to_vmem [thread:$0]  (!%p5624_p13), %s5141_s17, 16, %s911_s2, %s901_s3  }
 0x2d9   : > { %p5626_p10 = scmp.ne.s32.totalorder %s5625_s19, 0 }
 0x2da   : > { %s5627_s9 = sld [smem:[#allocation59_spill]] (!%p5626_p10)  ;;  %p5628_p8 = scmp.ne.s32.totalorder (!%p5626_p10), %s5614_s11, 0 }
 0x2db   : > { %919 = sbr.rel (%p5626_p10) target bundleno = 5113 (0x13f9), region = 116 }
 0x2e0   : > { %s5165_s15 = sand.u32 (!%p5626_p10), 1, %s5627_s9  }
 0x2e1   : > { %s5168_s5 = sshll.u32 (!%p5626_p10), %s5165_s15, 3  ;;  %s922_s22 = scalar_lea.sflag (!%p5626_p10), [#allocation4], %s5165_s15 }
 0x2e2   : > { %s925_s6 = scalar_lea.vmem [#allocation3], %s5168_s5 }
 0x2e3   : > { %4326 = dma.done.wait (%p5628_p8), %s922_s22, 128  }
 0x2e4   : > { %4328 = vsyncadd (%p5628_p8), %s922_s22, 4294967168  ;;  %s5629_s8 = sld [smem:[#allocation62_spill]]  ;;  %s934_s3 = scalar_lea.vmem [#allocation6], %s5168_s5 }
 0x2ea   : > { %s930_s2 = sand.u32 1, %s5629_s8  }
 0x2eb   : > { %s931_s17 = scalar_lea.sflag [#allocation7], %s930_s2 }
 0x2ec   : > { %4330 = dma.done.wait (%p5628_p8), %s931_s17, 128  }
 0x2ed   : > { %4332 = vsyncadd (%p5628_p8), %s931_s17, 4294967168  ;;  %p5630_p9 = scmp.eq.s32.totalorder %s5629_s8, 0 }
 0x2ef   : > { %4334 = dma.done.wait (%p5630_p9), [#allocation7], 128   ;;  %p5631_p5 = pmov %p5630_p9 }
 0x2f0   : > { %s944_s26 = scalar_lea.sflag [#allocation10], %s930_s2  ;;  %s946_s10 = scalar_lea.vmem [#allocation9], %s5165_s15 }
 0x2f1   : > { %4336 = vsyncadd (%p5631_p5), [#allocation7], 4294967168 }
 0x2f2   : > { %4338 = dma.done.wait (%p5628_p8), %s944_s26, 16  }
 0x2f3   : > { %4340 = vsyncadd (%p5628_p8), %s944_s26, 4294967280  ;;  %p5632_p7 = pmov %p5631_p5 }
 0x2f4   : > { %p5633_p4 = pmov %p5631_p5 }
 0x2f5   : > { %4342 = dma.done.wait (%p5632_p7), [#allocation10], 256  }
 0x2f6   : > { %4344 = vsyncadd (%p5633_p4), [#allocation10], 4294967040  ;;  %p5634_p1 = pmov %p5633_p4 }
 0x2f8   : > { %4346 = dma.done.wait (%p5634_p1), [#allocation13], 272   ;;  %p5635_p11 = pmov %p5634_p1 }
 0x2f9   : > { %p5636_p6 = pmov %p5634_p1 }
 0x2fa   : > { %4348 = vsyncadd (%p5635_p11), [#allocation13], 4294967024 }
 0x2fb   : > { %4350 = dma.done.wait (%p5636_p6), [#allocation16], 32   ;;  %p5637_p3 = pmov %p5634_p1 }
 0x2fc   : > { %p5638_p2 = pmov %p5634_p1 }
 0x2fd   : > { %4352 = vsyncadd (%p5637_p3), [#allocation16], 4294967264 }
 0x2fe   : > { %4354 = dma.done.wait (%p5638_p2), [#allocation19], 272   ;;  %p5639_p0 = pmov %p5634_p1 }
 0x300   : > { %4356 = vsyncadd (%p5639_p0), [#allocation19], 4294967024  ;;  %p5640_p12 = pmov %p5639_p0 }
 0x301   : > { %p5641_p13 = pmov %p5639_p0 }
 0x302   : > { %4358 = dma.done.wait (%p5640_p12), [#allocation22], 272  }
 0x303   : > { %4360 = vsyncadd (%p5641_p13), [#allocation22], 4294967024  ;;  %p5642_p10 = pmov %p5639_p0 }
 0x304   : > { %p5643_p8 = pmov %p5639_p0 }
 0x305   : > { %4362 = dma.done.wait (%p5642_p10), [#allocation25], 272  }
 0x306   : > { %4364 = vsyncadd (%p5643_p8), [#allocation25], 4294967024  ;;  %p5644_p9 = pmov %p5639_p0 }
 0x307   : > { %p5645_p5 = pmov %p5639_p0 }
 0x308   : > { %4366 = dma.done.wait (%p5644_p9), [#allocation28], 32  }
 0x309   : > { %4368 = vsyncadd (%p5645_p5), [#allocation28], 4294967264  ;;  %p5646_p7 = pmov %p5639_p0 }
 0x30a   : > { %p5647_p4 = pmov %p5639_p0 }
 0x30b   : > { %4370 = dma.done.wait (%p5646_p7), [#allocation31], 272  }
 0x30c   : > { %4372 = vsyncadd (%p5647_p4), [#allocation31], 4294967024  ;;  %p5648_p1 = pmov %p5639_p0 }
 0x30d   : > { %p5649_p11 = pmov %p5639_p0 }
 0x30e   : > { %4374 = dma.done.wait (%p5648_p1), [#allocation34], 528  }
 0x30f   : > { %4376 = vsyncadd (%p5649_p11), [#allocation34], 4294966768  ;;  %p5650_p6 = pmov %p5639_p0 }
 0x310   : > { %p5651_p3 = pmov %p5639_p0 }
 0x311   : > { %4378 = dma.done.wait (%p5650_p6), [#allocation37], 32  }
 0x312   : > { %4380 = vsyncadd (%p5651_p3), [#allocation37], 4294967264  ;;  %p5652_p2 = pmov %p5639_p0 }
 0x314   : > { %4382 = dma.done.wait (%p5652_p2), [#allocation40], 16  }
 0x315   : > { %4384 = vsyncadd (%p5639_p0), [#allocation40], 4294967280  ;;  %v4431_v0 = vmov 0.0   ;;  %vm4432_vm0 = vmmov 0   ;;  %v3549_v1 = vld [vmem:[#allocation11] sm:$0xff]   ;;  %v3550_v2 = vld [vmem:[#allocation11 + $0x8] sm:$0xff]  }
 0x316   : > { %3108 = vmatprep.subr.bf16.mxu1 %v4431_v0  ;;  %3112 = vmatprep.mubr.msk.bf16.mxu1 %vm4432_vm0, %v4431_v0  ;;  %v5243_v3 = vld [vmem:[%s925_s6] sm:$0xff]  ;;  %vm1127_vm1 = vcmask 261120   ;;  %v2996_v5 = vld [vmem:[#allocation12] ss:$0 sm:$0xff]  ;;  %s4433_s11 = smov 96   ;;  %s4434_s1 = smov 120  }
 0x317   : > { %3122 = vmatprep.subr.bf16.mxu0 %v4431_v0  ;;  %3124 = vmatprep.mubr.msk.bf16.mxu0 %vm4432_vm0, %v4431_v0  ;;  %v1103_v4 = vpack.c.bf16 %v5243_v3, %v5243_v3  ;;  %s4435_s7 = smov 88   ;;  %s4436_s24 = smov 80   ;;  %vm1191_vm2 = vcmask 64512   ;;  %v1171_v25 = vld [vmem:[#allocation8] sm:$0xff]  ;;  %v3000_v26 = vld [vmem:[%s946_s10] ss:$0 sm:$0xff] }
 0x318   : > { %3109 = vmatpush3.bf16.msra.mxu1 %v3549_v1  ;;  %s4437_s14 = smov 112   ;;  %s4438_s16 = smov 72   ;;  %v1179_v27 = vadd.f32 %v3000_v26, %v1171_v25  ;;  %vm1255_vm3 = vcmask 1043456   ;;  %vm1415_vm4 = vcmask 130112   ;;  %vm1531_vm5 = vcmask 195712  }
 0x319   : > { %3110 = vmatprep.subr.bf16.mxu1 %v4431_v0  ;;  %s4439_s18 = smov 104   ;;  %s4440_s19 = smov 56   ;;  %vm1647_vm6 = vcmask 261312   ;;  %vm2541_vm7 = vcmask 523264  }
 0x31a   : > { %v1180_v28 = vmax.f32 %v1179_v27, -1e+09  ;;  %s4441_s9 = smov 64   ;;  %s4442_s22 = smov 40  }
 0x31b   : > { %s4443_s6 = smov 48   ;;  %s4444_s2 = smov 8  }
 0x31c   : > { %3111 = vmatpush3.bf16.msra.mxu1 %v3550_v2  ;;  %s4445_s17 = smov 16   ;;  %s4446_s26 = smov 24  }
 0x31d   : > { %3116 = vmatprep.subr.bf16.mxu1 %v4431_v0  ;;  %s1099_s10 = scalar_lea.vmem [#allocation41], %s5168_s5  ;;  %p5654_p13 = scmp.ne.s32.totalorder %s5615_s4, 0 }
 0x31e   : > { %s4447_s5 = smov [#allocation41]  }
 0x31f   : > { %3113 = vmatmul.mubr.msk.bf16.vlgmr.msra.gmra.mrb[0].mxu1 %vm1127_vm1, %v1103_v4 }
 0x320   : > { %3118 = vmatprep.mubr.msk.bf16.mxu1 %vm4432_vm0, %v4431_v0 }
 0x3f2   : > { %v1165_v6 = vpop.f32.mrb[0].mxu1 }
 0x3f3   : > { %v1166_v7 = vadd.f32 %v2996_v5, %v1165_v6  ;;  %v3114_v8 = vpop.f32.mrb[1].mxu1 }
 0x3f4   : > { %v1168_v9 = vpop.f32.mrb[2].mxu1 }
 0x3f5   : > { %v1181_v10 = vmul.f32 0.35355338, %v1166_v7  ;;  %v5252_v11 = vpack.c.bf16 %v1166_v7, %v1166_v7  ;;  %v3115_v12 = vpop.f32.mrb[3].mxu1 }
 0x3f7   : > { %v1186_v13 = vpack.c.bf16 %v1181_v10, %v1181_v10  ;;  %1189 = vrot.lane.b32.xlu0 %v5252_v11, %s4433_s11 }
 0x3f9   : > { %1301 = vrot.lane.b32.xlu1 %v1186_v13, %s4434_s1 }
 0x3fb   : > { %1303 = vrot.lane.b32.xlu0 %v5252_v11, %s4435_s7 }
 0x3fd   : > { %1419 = vrot.lane.b32.xlu1 %v5252_v11, %s4436_s24 }
 0x3ff   : > { %1417 = vrot.lane.b32.xlu0 %v1186_v13, %s4437_s14 }
 0x401   : > { %1535 = vrot.lane.b32.xlu1 %v5252_v11, %s4438_s16 }
 0x403   : > { %1533 = vrot.lane.b32.xlu0 %v1186_v13, %s4439_s18 }
 0x469   : > { %v1190_v14 = vpop.permute.xlu0 %1189 }
 0x46a   : > { %v1196_v15 = vsel %vm1191_vm2, %v1190_v14, 0 }
 0x46b   : > { %3117 = vmatpush3.bf16.xpose.msra.mxu1 %v1196_v15  ;;  %v1302_v17 = vpop.permute.xlu1 %1301 }
 0x46c   : > { %3128 = vmatprep.subr.bf16.mxu1 %v4431_v0 }
 0x46d   : > { %v1304_v16 = vpop.permute.xlu0 %1303 }
 0x46e   : > { %v1309_v18 = vsel %vm1191_vm2, %v1304_v16, 0 }
 0x46f   : > { %v1420_v19 = vpop.permute.xlu1 %1419 }
 0x470   : > { %v1425_v20 = vsel %vm1191_vm2, %v1420_v19, 0 }
 0x471   : > { %v1418_v22 = vpop.permute.xlu0 %1417 }
 0x472   : > { %3119 = vmatmul.mubr.msk.bf16.vlgmr.msra.gmra.mrb[4].mxu1 %vm1191_vm2, %v1186_v13 }
 0x473   : > { %3129 = vmatpush3.bf16.xpose.msra.mxu1 %v1309_v18  ;;  %3130 = vmatprep.mubr.msk.bf16.mxu1 %vm4432_vm0, %v4431_v0  ;;  %v1536_v21 = vpop.permute.xlu1 %1535 }
 0x474   : > { %3140 = vmatprep.subr.bf16.mxu1 %v4431_v0  ;;  %v1541_v23 = vsel %vm1191_vm2, %v1536_v21, 0 }
 0x475   : > { %v1534_v24 = vpop.permute.xlu0 %1533 }
 0x47a   : > { %3131 = vmatmul.mubr.msk.bf16.vlgmr.msra.gmra.mrb[8].mxu1 %vm1191_vm2, %v1302_v17 }
 0x47b   : > { %3141 = vmatpush3.bf16.xpose.msra.mxu1 %v1425_v20  ;;  %3142 = vmatprep.mubr.msk.bf16.mxu1 %vm4432_vm0, %v4431_v0 }
 0x47c   : > { %3152 = vmatprep.subr.bf16.mxu1 %v4431_v0 }
 0x482   : > { %3143 = vmatmul.mubr.msk.bf16.vlgmr.msra.gmra.mrb[12].mxu1 %vm1191_vm2, %v1418_v22 }
 0x483   : > { %3153 = vmatpush3.bf16.xpose.msra.mxu1 %v1541_v23  ;;  %3154 = vmatprep.mubr.msk.bf16.mxu1 %vm4432_vm0, %v4431_v0 }
 0x484   : > { %3164 = vmatprep.subr.bf16.mxu1 %v4431_v0 }
 0x48a   : > { %3155 = vmatmul.mubr.msk.bf16.vlgmr.msra.gmra.mrb[16].mxu1 %vm1191_vm2, %v1534_v24 }
 0x48b   : > { %3168 = vmatprep.mubr.msk.bf16.mxu1 %vm4432_vm0, %v4431_v0 }
 0x545   : > { %v1232_v29 = vpop.f32.mrb[4].mxu1 }
 0x546   : > { %v1233_v30 = vadd.f32 %v1232_v29, %v1180_v28  ;;  %v3120_v31 = vpop.f32.mrb[5].mxu1 }
 0x547   : > { %v1235_v32 = vpop.f32.mrb[6].mxu1 }
 0x548   : > { %v3121_v33 = vpop.f32.mrb[7].mxu1  ;;  %v1238_v34 = vsel %vm1191_vm2, %v1233_v30, -inf }
 0x549   : > { %1239 = vmax.xlane.f32.xlu1 %v1238_v34 }
 0x54d   : > { %v1345_v35 = vpop.f32.mrb[8].mxu1 }
 0x54e   : > { %v1346_v36 = vadd.f32 %v1345_v35, %v1180_v28  ;;  %v3132_v37 = vpop.f32.mrb[9].mxu1 }
 0x54f   : > { %v1348_v38 = vpop.f32.mrb[10].mxu1 }
 0x550   : > { %v3133_v39 = vpop.f32.mrb[11].mxu1  ;;  %v1351_v40 = vsel %vm1191_vm2, %v1346_v36, -inf }
 0x551   : > { %1352 = vmax.xlane.f32.xlu0 %v1351_v40 }
 0x555   : > { %v1461_v41 = vpop.f32.mrb[12].mxu1 }
 0x556   : > { %v1462_v42 = vadd.f32 %v1461_v41, %v1180_v28  ;;  %v3144_v43 = vpop.f32.mrb[13].mxu1 }
 0x557   : > { %v1464_v44 = vpop.f32.mrb[14].mxu1  ;;  %v3551_v43 = vld [vmem:[#allocation14] sm:$0xff]  }
 0x558   : > { %v3145_v45 = vpop.f32.mrb[15].mxu1  ;;  %v1467_v46 = vsel %vm1191_vm2, %v1462_v42, -inf  ;;  %3165 = vmatpush3.bf16.msra.mxu1 %v3551_v43  ;;  %v3552_v44 = vld [vmem:[#allocation14 + $0x8] sm:$0xff]  }
 0x559   : > { %1468 = vmax.xlane.f32.xlu0 %v1467_v46  ;;  %3166 = vmatprep.subr.bf16.mxu1 %v4431_v0 }
 0x55c   : > { %3167 = vmatpush3.bf16.msra.mxu1 %v3552_v44 }
 0x55d   : > { %v1577_v47 = vpop.f32.mrb[16].mxu1  ;;  %3180 = vmatprep.subr.bf16.mxu1 %v4431_v0 }
 0x55e   : > { %v1578_v48 = vadd.f32 %v1577_v47, %v1180_v28  ;;  %v3156_v49 = vpop.f32.mrb[17].mxu1 }
 0x55f   : > { %v1580_v50 = vpop.f32.mrb[18].mxu1 }
 0x560   : > { %v3157_v51 = vpop.f32.mrb[19].mxu1  ;;  %v1583_v52 = vsel %vm1191_vm2, %v1578_v48, -inf }
 0x561   : > { %1584 = vmax.xlane.f32.xlu1 %v1583_v52 }
 0x5d6   : > { %v1240_v53 = vpop.xlane.xlu1 %1239 }
 0x5d7   : > { %v1241_v54 = vsub.f32 %v1233_v30, %v1240_v53 }
 0x5d9   : > { %v1242_v55 = vmul.f32 1.442695, %v1241_v54 }
 0x5db   : > { %3565 = vpow2.f32 %v1242_v55 }
 0x5de   : > { %v1353_v56 = vpop.xlane.xlu0 %1352 }
 0x5df   : > { %v1354_v57 = vsub.f32 %v1346_v36, %v1353_v56 }
 0x5e1   : > { %v1355_v58 = vmul.f32 1.442695, %v1354_v57 }
 0x5e3   : > { %3567 = vpow2.f32 %v1355_v58  ;;  %v3009_v58 = vld [vmem:[#allocation15] ss:$0 sm:$0xff] }
 0x5e5   : > { %v3566_v59 = vpop.eup %3565 }
 0x5e6   : > { %v1469_v60 = vpop.xlane.xlu0 %1468  ;;  %v1244_v61 = vsel %vm1191_vm2, %v3566_v59, 0.0 }
 0x5e7   : > { %v1470_v62 = vsub.f32 %v1462_v42, %v1469_v60  ;;  %1245 = vadd.xlane.f32.xlu0 %v1244_v61 }
 0x5e9   : > { %v1471_v63 = vmul.f32 1.442695, %v1470_v62 }
 0x5eb   : > { %3569 = vpow2.f32 %v1471_v63 }
 0x5ed   : > { %v3568_v1 = vpop.eup %3567 }
 0x5ee   : > { %v1357_v2 = vsel %vm1191_vm2, %v3568_v1, 0.0  ;;  %v1585_v6 = vpop.xlane.xlu1 %1584 }
 0x5ef   : > { %1358 = vadd.xlane.f32.xlu1 %v1357_v2  ;;  %v1586_v7 = vsub.f32 %v1578_v48, %v1585_v6 }
 0x5f1   : > { %v1587_v8 = vmul.f32 1.442695, %v1586_v7 }
 0x5f3   : > { %3571 = vpow2.f32 %v1587_v8 }
 0x5f5   : > { %v3570_v4 = vpop.eup %3569 }
 0x5f6   : > { %v1473_v5 = vsel %vm1191_vm2, %v3570_v4, 0.0 }
 0x5f7   : > { %1474 = vadd.xlane.f32.xlu0 %v1473_v5 }
 0x5fd   : > { %v3572_v9 = vpop.eup %3571 }
 0x5fe   : > { %v1589_v10 = vsel %vm1191_vm2, %v3572_v9, 0.0 }
 0x600   : > { %1363 = vrot.lane.b32.xlu1 %v5252_v11, %s4440_s19 }
 0x60d   : > { %1250 = vrot.lane.b32.xlu0 %v5252_v11, %s4441_s9 }
 0x611   : > { %1595 = vrot.lane.b32.xlu0 %v5252_v11, %s4442_s22 }
 0x624   : > { %1590 = vadd.xlane.f32.xlu1 %v1589_v10  ;;  %v3554_v10 = vld [vmem:[#allocation23 + $0x8] sm:$0xff]  }
 0x635   : > { %1479 = vrot.lane.b32.xlu1 %v5252_v11, %s4443_s6 }
 0x674   : > { %v1246_v12 = vpop.xlane.xlu0 %1245 }
 0x675   : > { %3573 = vrcp.f32 %v1246_v12  ;;  %v1102_v12 = vld [vmem:[%s934_s3] sm:$0xff]  ;;  %s3050_s3 = sshll.u32 %s5629_s8, 7  ;;  %s4285_s8 = sshll.u32 %s4447_s5, 4  ;;  %s4286_s8 = int_to_ptr.vmem [resolvable:$false] %s4285_s8 }
 0x676   : > { %s4287_s19 = scalar_lea.vmem %s4286_s8, 256 }
 0x67c   : > { %v1359_v13 = vpop.xlane.xlu1 %1358 }
 0x67d   : > { %3575 = vrcp.f32 %v1359_v13  ;;  %v1811_v13 = vpack.c.bf16 %v1102_v12, %v1102_v12 }
 0x67f   : > { %v3574_v14 = vpop.eup %3573 }
 0x680   : > { %v1248_v16 = vmul.f32 %v3574_v14, %v3566_v59  ;;  %v1364_v19 = vpop.permute.xlu1 %1363  ;;  %v3556_v14 = vld [vmem:[#allocation20 + $0x8] sm:$0xff]  }
 0x681   : > { %v1369_v22 = vsel %vm1255_vm3, %v1364_v19, 0  ;;  %v3013_v19 = vld [vmem:[#allocation17] ss:$0 sm:$0xff] }
 0x682   : > { %v1249_v20 = vpack.c.bf16 %v1248_v16, %v1248_v16 }
 0x684   : > { %v1475_v15 = vpop.xlane.xlu0 %1474 }
 0x685   : > { %3577 = vrcp.f32 %v1475_v15 }
 0x687   : > { %v3576_v21 = vpop.eup %3575 }
 0x688   : > { %v1251_v17 = vpop.permute.xlu0 %1250  ;;  %v1361_v11 = vmul.f32 %v3576_v21, %v3568_v1  ;;  %v3014_v21 = vld [vmem:[#allocation18] ss:$0 sm:$0xff] }
 0x689   : > { %v1257_v18 = vsel %vm1255_vm3, %v1251_v17, 0 }
 0x68a   : > { %3123 = vmatpush3.bf16.msra.mxu0 %v1257_v18  ;;  %v1362_v23 = vpack.c.bf16 %v1361_v11, %v1361_v11 }
 0x68b   : > { %3134 = vmatprep.subr.bf16.mxu0 %v4431_v0 }
 0x68c   : > { %v1596_v29 = vpop.permute.xlu0 %1595 }
 0x68d   : > { %3125 = vmatmul.mubr.msk.bf16.vlgmr.msra.gmra.mrb[0].mxu0 %vm1191_vm2, %v1249_v20  ;;  %v1601_v31 = vsel %vm1255_vm3, %v1596_v29, 0 }
 0x68e   : > { %3135 = vmatpush3.bf16.msra.mxu0 %v1369_v22  ;;  %3136 = vmatprep.mubr.msk.bf16.mxu0 %vm4432_vm0, %v4431_v0 }
 0x68f   : > { %3146 = vmatprep.subr.bf16.mxu0 %v4431_v0  ;;  %v3578_v24 = vpop.eup %3577 }
 0x690   : > { %v1477_v26 = vmul.f32 %v3578_v24, %v3570_v4  ;;  %v3019_v24 = vld [vmem:[#allocation24] ss:$0 sm:$0xff] }
 0x692   : > { %v1478_v30 = vpack.c.bf16 %v1477_v26, %v1477_v26 }
 0x695   : > { %3137 = vmatmul.mubr.msk.bf16.vlgmr.msra.gmra.mrb[4].mxu0 %vm1191_vm2, %v1362_v23 }
 0x696   : > { %3148 = vmatprep.mubr.msk.bf16.mxu0 %vm4432_vm0, %v4431_v0 }
 0x6b1   : > { %v1591_v25 = vpop.xlane.xlu1 %1590 }
 0x6b2   : > { %3579 = vrcp.f32 %v1591_v25 }
 0x6b5   : > { %v1480_v27 = vpop.permute.xlu1 %1479 }
 0x6b6   : > { %v1485_v28 = vsel %vm1255_vm3, %v1480_v27, 0 }
 0x6b7   : > { %3147 = vmatpush3.bf16.msra.mxu0 %v1485_v28 }
 0x6b8   : > { %3158 = vmatprep.subr.bf16.mxu0 %v4431_v0 }
 0x6ba   : > { %3149 = vmatmul.mubr.msk.bf16.vlgmr.msra.gmra.mrb[8].mxu0 %vm1191_vm2, %v1478_v30 }
 0x6bb   : > { %3159 = vmatpush3.bf16.msra.mxu0 %v1601_v31  ;;  %3160 = vmatprep.mubr.msk.bf16.mxu0 %vm4432_vm0, %v4431_v0 }
 0x6bc   : > { %v3580_v32 = vpop.eup %3579  ;;  %3172 = vmatprep.subr.bf16.mxu0 %v4431_v0 }
 0x6bd   : > { %v1593_v33 = vmul.f32 %v3580_v32, %v3572_v9  ;;  %v3553_v9 = vld [vmem:[#allocation23] sm:$0xff]   ;;  %v3015_v32 = vld [vmem:[#allocation21] ss:$0 sm:$0xff] }
 0x6bf   : > { %v1594_v34 = vpack.c.bf16 %v1593_v33, %v1593_v33 }
 0x6c2   : > { %3161 = vmatmul.mubr.msk.bf16.vlgmr.msra.gmra.mrb[12].mxu0 %vm1191_vm2, %v1594_v34 }
 0x6c3   : > { %3176 = vmatprep.mubr.msk.bf16.mxu0 %vm4432_vm0, %v4431_v0 }
 0x760   : > { %v1293_v35 = vpop.f32.mrb[0].mxu0 }
 0x761   : > { %1299 = vst.msk [vmem:[#allocation2] sm:$0xff] %vm1191_vm2, %v1293_v35  ;;  %v3126_v36 = vpop.f32.mrb[1].mxu0 }
 0x762   : > { %v1296_v37 = vpop.f32.mrb[2].mxu0 }
 0x763   : > { %v3127_v38 = vpop.f32.mrb[3].mxu0 }
 0x768   : > { %v1405_v39 = vpop.f32.mrb[4].mxu0 }
 0x769   : > { %1412 = vrot.lane.b32.xlu1 %v1405_v39, %s4444_s2  ;;  %v3138_v40 = vpop.f32.mrb[5].mxu0 }
 0x76a   : > { %v1408_v41 = vpop.f32.mrb[6].mxu0 }
 0x76b   : > { %v3139_v42 = vpop.f32.mrb[7].mxu0 }
 0x78d   : > { %v1521_v45 = vpop.f32.mrb[8].mxu0 }
 0x78e   : > { %1528 = vrot.lane.b32.xlu0 %v1521_v45, %s4445_s17  ;;  %v3150_v46 = vpop.f32.mrb[9].mxu0 }
 0x78f   : > { %v1524_v47 = vpop.f32.mrb[10].mxu0 }
 0x790   : > { %v3151_v48 = vpop.f32.mrb[11].mxu0 }
 0x795   : > { %v1637_v49 = vpop.f32.mrb[12].mxu0 }
 0x796   : > { %1644 = vrot.lane.b32.xlu1 %v1637_v49, %s4446_s26  ;;  %v3162_v50 = vpop.f32.mrb[13].mxu0 }
 0x797   : > { %v1640_v51 = vpop.f32.mrb[14].mxu0 }
 0x798   : > { %v3163_v52 = vpop.f32.mrb[15].mxu0 }
 0x7db   : > { %v1413_v53 = vpop.permute.xlu1 %1412 }
 0x7dc   : > { %1416 = vst.msk [vmem:[#allocation2] sm:$0xff] %vm1415_vm4, %v1413_v53 }
 0x800   : > { %v1529_v54 = vpop.permute.xlu0 %1528 }
 0x801   : > { %1532 = vst.msk [vmem:[#allocation2] sm:$0xff] %vm1531_vm5, %v1529_v54 }
 0x808   : > { %v1645_v55 = vpop.permute.xlu1 %1644 }
 0x809   : > { %1648 = vst.msk [vmem:[#allocation2] sm:$0xff] %vm1647_vm6, %v1645_v55 }
 0x810   : > { %v1649_v56 = vld [vmem:[#allocation2] sm:$0xff] }
 0x811   : > { %v1650_v57 = vpack.c.bf16 %v1649_v56, %v1649_v56 }
 0x813   : > { %3169 = vmatmul.mubr.msk.bf16.vlgmr.msra.gmra.mrb[20].mxu1 %vm1127_vm1, %v1650_v57 }
 0x814   : > { %3184 = vmatprep.mubr.msk.bf16.mxu1 %vm4432_vm0, %v4431_v0  ;;  %3181 = vmatpush3.bf16.msra.mxu1 %v3553_v9 }
 0x815   : > { %3182 = vmatprep.subr.bf16.mxu1 %v4431_v0 }
 0x818   : > { %3183 = vmatpush3.bf16.msra.mxu1 %v3554_v10 }
 0x819   : > { %3194 = vmatprep.subr.bf16.mxu1 %v4431_v0 }
 0x81b   : > { %3185 = vmatmul.mubr.msk.bf16.vlgmr.msra.gmra.mrb[24].mxu1 %vm1127_vm1, %v1811_v13 }
 0x81c   : > { %3196 = vmatprep.mubr.msk.bf16.mxu1 %vm4432_vm0, %v4431_v0 }
 0x8e6   : > { %v1707_v59 = vpop.f32.mrb[20].mxu1 }
 0x8e7   : > { %v1708_v60 = vadd.f32 %v3009_v58, %v1707_v59  ;;  %v3170_v61 = vpop.f32.mrb[21].mxu1 }
 0x8e8   : > { %v1710_v62 = vpop.f32.mrb[22].mxu1 }
 0x8e9   : > { %v3171_v63 = vpop.f32.mrb[23].mxu1  ;;  %v1715_v1 = vadd.f32 %v1708_v60, %v5243_v3  ;;  %v3555_v3 = vld [vmem:[#allocation20] sm:$0xff]  }
 0x8ea   : > { %3173 = vmatpush3.bf16.msra.mxu0 %v3555_v3 }
 0x8eb   : > { %v1716_v2 = vsel %vm1127_vm1, %v1715_v1, 0.0  ;;  %3174 = vmatprep.subr.bf16.mxu0 %v4431_v0 }
 0x8ec   : > { %1717 = vadd.xlane.f32.xlu0 %v1716_v2 }
 0x8ee   : > { %3175 = vmatpush3.bf16.msra.mxu0 %v3556_v14  ;;  %v1872_v25 = vpop.f32.mrb[24].mxu1 }
 0x8ef   : > { %3188 = vmatprep.subr.bf16.mxu0 %v4431_v0  ;;  %v1873_v26 = vadd.f32 %v3019_v24, %v1872_v25  ;;  %v3186_v27 = vpop.f32.mrb[25].mxu1 }
 0x8f0   : > { %v1875_v28 = vpop.f32.mrb[26].mxu1 }
 0x8f1   : > { %v5350_v29 = vpack.c.bf16 %v1873_v26, %v1873_v26  ;;  %v3187_v30 = vpop.f32.mrb[27].mxu1 }
 0x8f3   : > { %v1889_v31 = vsel %vm1191_vm2, %v5350_v29, 0 }
 0x902   : > { %1996 = vrot.lane.b32.xlu0 %v5350_v29, %s4434_s1 }
 0x906   : > { %2111 = vrot.lane.b32.xlu0 %v5350_v29, %s4437_s14 }
 0x90a   : > { %2226 = vrot.lane.b32.xlu0 %v5350_v29, %s4439_s18 }
 0x979   : > { %v1718_v4 = vpop.xlane.xlu0 %1717 }
 0x97a   : > { %v1720_v5 = vmul.f32 0.03125, %v1718_v4 }
 0x97c   : > { %v1721_v6 = vsub.f32 %v1715_v1, %v1720_v5 }
 0x97d   : > { %v1997_v39 = vpop.permute.xlu0 %1996 }
 0x97e   : > { %v1722_v7 = vmul.f32 %v1721_v6, %v1721_v6  ;;  %v2002_v41 = vsel %vm1191_vm2, %v1997_v39, 0 }
 0x980   : > { %v1723_v8 = vsel %vm1127_vm1, %v1722_v7, 0.0 }
 0x981   : > { %1724 = vadd.xlane.f32.xlu1 %v1723_v8  ;;  %v2112_v42 = vpop.permute.xlu0 %2111 }
 0x982   : > { %v2117_v44 = vsel %vm1191_vm2, %v2112_v42, 0 }
 0x985   : > { %v2227_v45 = vpop.permute.xlu0 %2226 }
 0x986   : > { %v2232_v47 = vsel %vm1191_vm2, %v2227_v45, 0 }
 0xa0e   : > { %v1725_v15 = vpop.xlane.xlu1 %1724 }
 0xa0f   : > { %v1726_v16 = vmul.f32 0.03125, %v1725_v15 }
 0xa11   : > { %v1727_v17 = vadd.f32 1e-05, %v1726_v16 }
 0xa13   : > { %3581 = vrsqrt.f32 %v1727_v17 }
 0xa1d   : > { %v3582_v18 = vpop.eup %3581 }
 0xa1e   : > { %v1729_v20 = vmul.f32 %v3582_v18, %v1721_v6 }
 0xa20   : > { %v1736_v22 = vmul.f32 %v3013_v19, %v1729_v20 }
 0xa22   : > { %v5343_v11 = vadd.f32 %v3014_v21, %v1736_v22 }
 0xa24   : > { %v1744_v23 = vpack.c.bf16 %v5343_v11, %v5343_v11 }
 0xa26   : > { %3177 = vmatmul.mubr.msk.bf16.vlgmr.msra.gmra.mrb[16].mxu0 %vm1127_vm1, %v1744_v23 }
 0xa27   : > { %3190 = vmatprep.mubr.msk.bf16.mxu0 %vm4432_vm0, %v4431_v0  ;;  %3189 = vmatpush3.bf16.xpose.msra.mxu0 %v1889_v31 }
 0xa28   : > { %3200 = vmatprep.subr.bf16.mxu0 %v4431_v0 }
 0xaf9   : > { %v1805_v33 = vpop.f32.mrb[16].mxu0 }
 0xafa   : > { %v1806_v34 = vadd.f32 %v3015_v32, %v1805_v33  ;;  %v3178_v35 = vpop.f32.mrb[17].mxu0 }
 0xafb   : > { %v1808_v36 = vpop.f32.mrb[18].mxu0 }
 0xafc   : > { %v1878_v37 = vmul.f32 0.35355338, %v1806_v34  ;;  %v3179_v38 = vpop.f32.mrb[19].mxu0 }
 0xafe   : > { %v1883_v40 = vpack.c.bf16 %v1878_v37, %v1878_v37 }
 0xb00   : > { %1994 = vrot.lane.b32.xlu1 %v1883_v40, %s4434_s1  ;;  %3191 = vmatmul.mubr.msk.bf16.vlgmr.msra.gmra.mrb[20].mxu0 %vm1191_vm2, %v1883_v40 }
 0xb01   : > { %3201 = vmatpush3.bf16.xpose.msra.mxu0 %v2002_v41  ;;  %3202 = vmatprep.mubr.msk.bf16.mxu0 %vm4432_vm0, %v4431_v0 }
 0xb02   : > { %3212 = vmatprep.subr.bf16.mxu0 %v4431_v0 }
 0xb04   : > { %2109 = vrot.lane.b32.xlu1 %v1883_v40, %s4437_s14 }
 0xb08   : > { %2224 = vrot.lane.b32.xlu1 %v1883_v40, %s4439_s18 }
 0xb72   : > { %v1995_v43 = vpop.permute.xlu1 %1994 }
 0xb73   : > { %3203 = vmatmul.mubr.msk.bf16.vlgmr.msra.gmra.mrb[24].mxu0 %vm1191_vm2, %v1995_v43 }
 0xb74   : > { %3213 = vmatpush3.bf16.xpose.msra.mxu0 %v2117_v44  ;;  %3214 = vmatprep.mubr.msk.bf16.mxu0 %vm4432_vm0, %v4431_v0 }
 0xb75   : > { %3224 = vmatprep.subr.bf16.mxu0 %v4431_v0 }
 0xb76   : > { %v2110_v46 = vpop.permute.xlu1 %2109 }
 0xb7a   : > { %v2225_v48 = vpop.permute.xlu1 %2224 }
 0xb7b   : > { %3215 = vmatmul.mubr.msk.bf16.vlgmr.msra.gmra.mrb[28].mxu0 %vm1191_vm2, %v2110_v46 }
 0xb7c   : > { %3225 = vmatpush3.bf16.xpose.msra.mxu0 %v2232_v47  ;;  %3226 = vmatprep.mubr.msk.bf16.mxu0 %vm4432_vm0, %v4431_v0 }
 0xb7d   : > { %3236 = vmatprep.subr.bf16.mxu0 %v4431_v0 }
 0xb83   : > { %3227 = vmatmul.mubr.msk.bf16.vlgmr.msra.gmra.mrb[32].mxu0 %vm1191_vm2, %v2225_v48 }
 0xb84   : > { %3240 = vmatprep.mubr.msk.bf16.mxu0 %vm4432_vm0, %v4431_v0 }
 0xbd3   : > { %v1925_v49 = vpop.f32.mrb[20].mxu0 }
 0xbd4   : > { %v3192_v50 = vpop.f32.mrb[21].mxu0  ;;  %v1931_v51 = vsel %vm1191_vm2, %v1925_v49, -inf }
 0xbd5   : > { %1932 = vmax.xlane.f32.xlu0 %v1931_v51  ;;  %v1928_v52 = vpop.f32.mrb[22].mxu0 }
 0xbd6   : > { %v3193_v53 = vpop.f32.mrb[23].mxu0 }
 0xc46   : > { %v2038_v54 = vpop.f32.mrb[24].mxu0 }
 0xc47   : > { %v3204_v55 = vpop.f32.mrb[25].mxu0  ;;  %v2044_v56 = vsel %vm1191_vm2, %v2038_v54, -inf }
 0xc48   : > { %2045 = vmax.xlane.f32.xlu1 %v2044_v56  ;;  %v2041_v57 = vpop.f32.mrb[26].mxu0 }
 0xc49   : > { %v3205_v58 = vpop.f32.mrb[27].mxu0 }
 0xc4e   : > { %v2153_v59 = vpop.f32.mrb[28].mxu0 }
 0xc4f   : > { %v3216_v60 = vpop.f32.mrb[29].mxu0  ;;  %v2159_v61 = vsel %vm1191_vm2, %v2153_v59, -inf }
 0xc50   : > { %2160 = vmax.xlane.f32.xlu0 %v2159_v61  ;;  %v2156_v62 = vpop.f32.mrb[30].mxu0  ;;  %v3558_v60 = vld [vmem:[#allocation26 + $0x8] sm:$0xff]  }
 0xc51   : > { %v3217_v63 = vpop.f32.mrb[31].mxu0 }
 0xc56   : > { %v2268_v1 = vpop.f32.mrb[32].mxu0 }
 0xc57   : > { %v3228_v2 = vpop.f32.mrb[33].mxu0  ;;  %v2274_v4 = vsel %vm1191_vm2, %v2268_v1, -inf }
 0xc58   : > { %2275 = vmax.xlane.f32.xlu0 %v2274_v4  ;;  %v2271_v5 = vpop.f32.mrb[34].mxu0 }
 0xc59   : > { %v3229_v6 = vpop.f32.mrb[35].mxu0 }
 0xc62   : > { %v1933_v7 = vpop.xlane.xlu0 %1932 }
 0xc63   : > { %v1934_v8 = vsub.f32 %v1925_v49, %v1933_v7 }
 0xc65   : > { %v1935_v9 = vmul.f32 1.442695, %v1934_v8 }
 0xc67   : > { %3583 = vpow2.f32 %v1935_v9 }
 0xc71   : > { %v3584_v10 = vpop.eup %3583 }
 0xc72   : > { %v1937_v12 = vsel %vm1191_vm2, %v3584_v10, 0.0 }
 0xc73   : > { %1938 = vadd.xlane.f32.xlu1 %v1937_v12 }
 0xc84   : > { %1944 = vrot.lane.b32.xlu1 %v5350_v29, %s4433_s11  ;;  %s2630_s11 = sshll.u32 %s1099_s10, 4  ;;  %s5447_s11 = int_to_ptr.vmem [resolvable:$true] %s2630_s11 }
 0xc85   : > { %s4281_s18 = scalar_lea.vmem %s5447_s11, 128  ;;  %p4288_p9 = scmp.lt.s32.totalorder %s5447_s11, %s4286_s8 }
 0xc86   : > { %p4282_p12 = scmp.ne.s32.totalorder %s5447_s11, %s4281_s18  ;;  %p4289_p5 = scmp.lt.s32.totalorder %s4287_s19, %s4281_s18 }
 0xc88   : > { %p4283_p10 = pnand %p4282_p12, %p5654_p13  ;;  %p4290_p7 = por %p4289_p5, %p4288_p9 }
 0xc8a   : > { %p4284_p8 = pneg %p4283_p10 }
 0xc8c   : > { %p4291_p4 = pnand %p4290_p7, %p4284_p8 }
 0xcd5   : > { %v2046_v13 = vpop.xlane.xlu1 %2045 }
 0xcd6   : > { %v2047_v3 = vsub.f32 %v2038_v54, %v2046_v13  ;;  %v3031_v13 = vld [vmem:[#allocation27] ss:$0 sm:$0xff] }
 0xcd8   : > { %v2048_v14 = vmul.f32 1.442695, %v2047_v3 }
 0xcda   : > { %3585 = vpow2.f32 %v2048_v14 }
 0xcdd   : > { %v2161_v15 = vpop.xlane.xlu0 %2160 }
 0xcde   : > { %v2162_v16 = vsub.f32 %v2153_v59, %v2161_v15  ;;  %v3557_v59 = vld [vmem:[#allocation26] sm:$0xff]  }
 0xcdf   : > { %3237 = vmatpush3.bf16.msra.mxu0 %v3557_v59 }
 0xce0   : > { %v2163_v17 = vmul.f32 1.442695, %v2162_v16  ;;  %3238 = vmatprep.subr.bf16.mxu0 %v4431_v0 }
 0xce2   : > { %3587 = vpow2.f32 %v2163_v17 }
 0xce3   : > { %3239 = vmatpush3.bf16.msra.mxu0 %v3558_v60 }
 0xce4   : > { %v3586_v18 = vpop.eup %3585  ;;  %3252 = vmatprep.subr.bf16.mxu0 %v4431_v0 }
 0xce5   : > { %v2276_v19 = vpop.xlane.xlu0 %2275  ;;  %v2050_v20 = vsel %vm1191_vm2, %v3586_v18, 0.0 }
 0xce6   : > { %v2277_v21 = vsub.f32 %v2268_v1, %v2276_v19  ;;  %2051 = vadd.xlane.f32.xlu0 %v2050_v20 }
 0xce8   : > { %v2278_v22 = vmul.f32 1.442695, %v2277_v21 }
 0xcea   : > { %3589 = vpow2.f32 %v2278_v22 }
 0xcec   : > { %v3588_v23 = vpop.eup %3587 }
 0xced   : > { %v2165_v24 = vsel %vm1191_vm2, %v3588_v23, 0.0 }
 0xcee   : > { %2166 = vadd.xlane.f32.xlu1 %v2165_v24 }
 0xcf4   : > { %v3590_v25 = vpop.eup %3589 }
 0xcf5   : > { %v2280_v26 = vsel %vm1191_vm2, %v3590_v25, 0.0 }
 0xcf6   : > { %2281 = vadd.xlane.f32.xlu0 %v2280_v26  ;;  %v3560_v26 = vld [vmem:[#allocation32 + $0x8] sm:$0xff]  }
 0xcff   : > { %2171 = vrot.lane.b32.xlu1 %v5350_v29, %s4436_s24  ;;  %s5653_s24 = sld [smem:[#allocation86_spill]] }
 0xd00   : > { %v1939_v27 = vpop.xlane.xlu1 %1938 }
 0xd01   : > { %3591 = vrcp.f32 %v1939_v27  ;;  %v3561_v27 = vld [vmem:[#allocation35] sm:$0xff]  }
 0xd03   : > { %2286 = vrot.lane.b32.xlu1 %v5350_v29, %s4438_s16  ;;  %s2617_s16 = scalar_lea.sflag [#allocation5], %s5165_s15 }
 0xd04   : > { %v1945_v28 = vpop.permute.xlu1 %1944 }
 0xd05   : > { %v1950_v30 = vsel %vm1255_vm3, %v1945_v28, 0  ;;  %v3562_v28 = vld [vmem:[#allocation35 + $0x8] sm:$0xff]   ;;  %s5445_s14 = scalar_lea.hbm %s5653_s24, %s3050_s3 }
 0xd06   : > { %3195 = vmatpush3.bf16.msra.mxu1 %v1950_v30 }
 0xd07   : > { %3206 = vmatprep.subr.bf16.mxu1 %v4431_v0 }
 0xd0b   : > { %v3592_v31 = vpop.eup %3591 }
 0xd0c   : > { %v1941_v32 = vmul.f32 %v3592_v31, %v3584_v10  ;;  %2056 = vrot.lane.b32.xlu0 %v5350_v29, %s4435_s7 }
 0xd0e   : > { %v1942_v33 = vpack.c.bf16 %v1941_v32, %v1941_v32 }
 0xd10   : > { %3197 = vmatmul.mubr.msk.bf16.vlgmr.msra.gmra.mrb[28].mxu1 %vm1191_vm2, %v1942_v33  ;;  %v3035_v33 = vld [vmem:[#allocation29] ss:$0 sm:$0xff] }
 0xd11   : > { %3208 = vmatprep.mubr.msk.bf16.mxu1 %vm4432_vm0, %v4431_v0 }
 0xd73   : > { %v2052_v34 = vpop.xlane.xlu0 %2051 }
 0xd74   : > { %3593 = vrcp.f32 %v2052_v34 }
 0xd7b   : > { %v2167_v35 = vpop.xlane.xlu1 %2166 }
 0xd7c   : > { %3595 = vrcp.f32 %v2167_v35  ;;  %v3036_v35 = vld [vmem:[#allocation30] ss:$0 sm:$0xff] }
 0xd7e   : > { %v3594_v36 = vpop.eup %3593 }
 0xd7f   : > { %v2054_v38 = vmul.f32 %v3594_v36, %v3586_v18  ;;  %v2172_v41 = vpop.permute.xlu1 %2171 }
 0xd80   : > { %v2177_v43 = vsel %vm1255_vm3, %v2172_v41, 0  ;;  %v3037_v41 = vld [vmem:[#allocation33] ss:$0 sm:$0xff] }
 0xd81   : > { %v2055_v29 = vpack.c.bf16 %v2054_v38, %v2054_v38 }
 0xd83   : > { %v2282_v37 = vpop.xlane.xlu0 %2281  ;;  %v2287_v45 = vpop.permute.xlu1 %2286 }
 0xd84   : > { %3597 = vrcp.f32 %v2282_v37  ;;  %v2292_v48 = vsel %vm1255_vm3, %v2287_v45, 0 }
 0xd86   : > { %v3596_v42 = vpop.eup %3595 }
 0xd87   : > { %v2057_v39 = vpop.permute.xlu0 %2056  ;;  %v2169_v44 = vmul.f32 %v3596_v42, %v3588_v23 }
 0xd88   : > { %v2062_v40 = vsel %vm1255_vm3, %v2057_v39, 0  ;;  %v3563_v39 = vld [vmem:[#allocation35 + $0x10] sm:$0xff]  }
 0xd89   : > { %3207 = vmatpush3.bf16.msra.mxu1 %v2062_v40  ;;  %v2170_v46 = vpack.c.bf16 %v2169_v44, %v2169_v44  ;;  %v3564_v40 = vld [vmem:[#allocation35 + $0x18] sm:$0xff]  }
 0xd8a   : > { %3218 = vmatprep.subr.bf16.mxu1 %v4431_v0 }
 0xd8c   : > { %3209 = vmatmul.mubr.msk.bf16.vlgmr.msra.gmra.mrb[32].mxu1 %vm1191_vm2, %v2055_v29 }
 0xd8d   : > { %3219 = vmatpush3.bf16.msra.mxu1 %v2177_v43  ;;  %3220 = vmatprep.mubr.msk.bf16.mxu1 %vm4432_vm0, %v4431_v0 }
 0xd8e   : > { %3230 = vmatprep.subr.bf16.mxu1 %v4431_v0  ;;  %v3598_v47 = vpop.eup %3597 }
 0xd8f   : > { %v2284_v49 = vmul.f32 %v3598_v47, %v3590_v25  ;;  %v3559_v25 = vld [vmem:[#allocation32] sm:$0xff]  }
 0xd91   : > { %v2285_v50 = vpack.c.bf16 %v2284_v49, %v2284_v49 }
 0xd94   : > { %3221 = vmatmul.mubr.msk.bf16.vlgmr.msra.gmra.mrb[36].mxu1 %vm1191_vm2, %v2170_v46 }
 0xd95   : > { %3231 = vmatpush3.bf16.msra.mxu1 %v2292_v48  ;;  %3232 = vmatprep.mubr.msk.bf16.mxu1 %vm4432_vm0, %v4431_v0  ;;  %v3041_v48 = vld [vmem:[#allocation36] ss:$0 sm:$0xff] }
 0xd96   : > { %3244 = vmatprep.subr.bf16.mxu1 %v4431_v0 }
 0xd9c   : > { %3233 = vmatmul.mubr.msk.bf16.vlgmr.msra.gmra.mrb[40].mxu1 %vm1191_vm2, %v2285_v50 }
 0xd9d   : > { %3248 = vmatprep.mubr.msk.bf16.mxu1 %vm4432_vm0, %v4431_v0  ;;  %3245 = vmatpush3.bf16.msra.mxu1 %v3559_v25 }
 0xd9e   : > { %3246 = vmatprep.subr.bf16.mxu1 %v4431_v0 }
 0xda1   : > { %3247 = vmatpush3.bf16.msra.mxu1 %v3560_v26 }
 0xde3   : > { %v1986_v51 = vpop.f32.mrb[28].mxu1 }
 0xde4   : > { %1992 = vst.msk [vmem:[#allocation2] sm:$0xff] %vm1191_vm2, %v1986_v51  ;;  %v3198_v52 = vpop.f32.mrb[29].mxu1 }
 0xde5   : > { %v1989_v53 = vpop.f32.mrb[30].mxu1 }
 0xde6   : > { %v3199_v54 = vpop.f32.mrb[31].mxu1 }
 0xe5f   : > { %v2098_v55 = vpop.f32.mrb[32].mxu1 }
 0xe60   : > { %2105 = vrot.lane.b32.xlu0 %v2098_v55, %s4444_s2  ;;  %v3210_v56 = vpop.f32.mrb[33].mxu1 }
 0xe61   : > { %v2101_v57 = vpop.f32.mrb[34].mxu1 }
 0xe62   : > { %v3211_v58 = vpop.f32.mrb[35].mxu1 }
 0xe67   : > { %v2213_v61 = vpop.f32.mrb[36].mxu1 }
 0xe68   : > { %2220 = vrot.lane.b32.xlu1 %v2213_v61, %s4445_s17  ;;  %v3222_v62 = vpop.f32.mrb[37].mxu1 }
 0xe69   : > { %v2216_v63 = vpop.f32.mrb[38].mxu1 }
 0xe6a   : > { %v3223_v1 = vpop.f32.mrb[39].mxu1 }
 0xe6b   : > { %v3047_v1 = vld [vmem:[#allocation38] ss:$0 sm:$0xff] }
 0xe6f   : > { %v2328_v2 = vpop.f32.mrb[40].mxu1 }
 0xe70   : > { %2335 = vrot.lane.b32.xlu0 %v2328_v2, %s4446_s26  ;;  %v3234_v4 = vpop.f32.mrb[41].mxu1 }
 0xe71   : > { %v2331_v5 = vpop.f32.mrb[42].mxu1  ;;  %v3048_v4 = vld [vmem:[#allocation39] ss:$0 sm:$0xff] }
 0xe72   : > { %v3235_v6 = vpop.f32.mrb[43].mxu1 }
 0xed2   : > { %v2106_v7 = vpop.permute.xlu0 %2105 }
 0xed3   : > { %2108 = vst.msk [vmem:[#allocation2] sm:$0xff] %vm1415_vm4, %v2106_v7 }
 0xeda   : > { %v2221_v8 = vpop.permute.xlu1 %2220 }
 0xedb   : > { %2223 = vst.msk [vmem:[#allocation2] sm:$0xff] %vm1531_vm5, %v2221_v8 }
 0xee2   : > { %v2336_v9 = vpop.permute.xlu0 %2335 }
 0xee3   : > { %2338 = vst.msk [vmem:[#allocation2] sm:$0xff] %vm1647_vm6, %v2336_v9 }
 0xeea   : > { %v2339_v10 = vld [vmem:[#allocation2] sm:$0xff] }
 0xeeb   : > { %v2340_v12 = vpack.c.bf16 %v2339_v10, %v2339_v10 }
 0xeed   : > { %3241 = vmatmul.mubr.msk.bf16.vlgmr.msra.gmra.mrb[36].mxu0 %vm1127_vm1, %v2340_v12 }
 0xeee   : > { %3260 = vmatprep.mubr.msk.bf16.mxu0 %vm4432_vm0, %v4431_v0  ;;  %3253 = vmatpush3.bf16.msra.mxu0 %v3561_v27 }
 0xeef   : > { %3254 = vmatprep.subr.bf16.mxu0 %v4431_v0 }
 0xef2   : > { %3255 = vmatpush3.bf16.msra.mxu0 %v3562_v28 }
 0xef3   : > { %3256 = vmatprep.subr.bf16.mxu0 %v4431_v0 }
 0xef6   : > { %3257 = vmatpush3.bf16.msra.mxu0 %v3563_v39 }
 0xef7   : > { %3258 = vmatprep.subr.bf16.mxu0 %v4431_v0 }
 0xefa   : > { %3259 = vmatpush3.bf16.msra.mxu0 %v3564_v40 }
 0xfc0   : > { %v2397_v3 = vpop.f32.mrb[36].mxu0 }
 0xfc1   : > { %v2398_v14 = vadd.f32 %v3031_v13, %v2397_v3  ;;  %v3242_v15 = vpop.f32.mrb[37].mxu0 }
 0xfc2   : > { %v2400_v16 = vpop.f32.mrb[38].mxu0 }
 0xfc3   : > { %v3243_v17 = vpop.f32.mrb[39].mxu0  ;;  %v2405_v18 = vadd.f32 %v2398_v14, %v5343_v11 }
 0xfc5   : > { %v2406_v19 = vsel %vm1127_vm1, %v2405_v18, 0.0 }
 0xfc6   : > { %2407 = vadd.xlane.f32.xlu1 %v2406_v19 }
0x1053   : > { %v2408_v20 = vpop.xlane.xlu1 %2407 }
0x1054   : > { %v2409_v21 = vmul.f32 0.03125, %v2408_v20 }
0x1056   : > { %v2410_v22 = vsub.f32 %v2405_v18, %v2409_v21 }
0x1058   : > { %v2411_v23 = vmul.f32 %v2410_v22, %v2410_v22 }
0x105a   : > { %v2412_v24 = vsel %vm1127_vm1, %v2411_v23, 0.0 }
0x105b   : > { %2413 = vadd.xlane.f32.xlu0 %v2412_v24 }
0x10e8   : > { %v2414_v11 = vpop.xlane.xlu0 %2413 }
0x10e9   : > { %v2415_v30 = vmul.f32 0.03125, %v2414_v11 }
0x10eb   : > { %v2416_v31 = vadd.f32 1e-05, %v2415_v30 }
0x10ed   : > { %3599 = vrsqrt.f32 %v2416_v31 }
0x10f7   : > { %v3600_v32 = vpop.eup %3599 }
0x10f8   : > { %v2418_v34 = vmul.f32 %v3600_v32, %v2410_v22 }
0x10fa   : > { %v2425_v36 = vmul.f32 %v3035_v33, %v2418_v34 }
0x10fc   : > { %v2432_v37 = vadd.f32 %v3036_v35, %v2425_v36 }
0x10fe   : > { %v2433_v38 = vpack.c.bf16 %v2432_v37, %v2432_v37 }
0x1100   : > { %3249 = vmatmul.mubr.msk.bf16.vlgmr.msra.gmra.mrb[44].mxu1 %vm1127_vm1, %v2433_v38 }
0x11d3   : > { %v2494_v29 = vpop.f32.mrb[44].mxu1 }
0x11d4   : > { %v2495_v42 = vadd.f32 %v3037_v41, %v2494_v29  ;;  %v3250_v43 = vpop.f32.mrb[45].mxu1 }
0x11d5   : > { %v2497_v44 = vpop.f32.mrb[46].mxu1 }
0x11d6   : > { %v2500_v45 = vmax.f32 %v2495_v42, 0.0  ;;  %v3251_v46 = vpop.f32.mrb[47].mxu1 }
0x11d8   : > { %v2501_v47 = vpack.c.bf16 %v2500_v45, %v2500_v45 }
0x11da   : > { %3261 = vmatmul.mubr.msk.bf16.vlgmr.msra.gmra.mrb[40].mxu0 %vm2541_vm7, %v2501_v47 }
0x12ad   : > { %v2579_v49 = vpop.f32.mrb[40].mxu0 }
0x12ae   : > { %v2580_v50 = vadd.f32 %v3041_v48, %v2579_v49  ;;  %v3262_v51 = vpop.f32.mrb[41].mxu0 }
0x12af   : > { %v2582_v52 = vpop.f32.mrb[42].mxu0 }
0x12b0   : > { %v3263_v53 = vpop.f32.mrb[43].mxu0  ;;  %v2587_v54 = vadd.f32 %v2580_v50, %v2432_v37 }
0x12b2   : > { %v2588_v0 = vsel %vm1127_vm1, %v2587_v54, 0.0 }
0x12b3   : > { %2589 = vadd.xlane.f32.xlu0 %v2588_v0 }
0x1340   : > { %v2590_v55 = vpop.xlane.xlu0 %2589 }
0x1341   : > { %v2591_v56 = vmul.f32 0.03125, %v2590_v55 }
0x1343   : > { %v2592_v57 = vsub.f32 %v2587_v54, %v2591_v56 }
0x1345   : > { %v2593_v58 = vmul.f32 %v2592_v57, %v2592_v57 }
0x1347   : > { %v2594_v59 = vsel %vm1127_vm1, %v2593_v58, 0.0 }
0x1348   : > { %2595 = vadd.xlane.f32.xlu1 %v2594_v59 }
0x13d5   : > { %v2596_v60 = vpop.xlane.xlu1 %2595 }
0x13d6   : > { %v2597_v61 = vmul.f32 0.03125, %v2596_v60 }
0x13d8   : > { %v2598_v62 = vadd.f32 1e-05, %v2597_v61 }
0x13da   : > { %3601 = vrsqrt.f32 %v2598_v62 }
0x13e4   : > { %v3602_v63 = vpop.eup %3601 }
0x13e5   : > { %v2600_v2 = vmul.f32 %v3602_v63, %v2592_v57 }
0x13e7   : > { %v2607_v5 = vmul.f32 %v3047_v1, %v2600_v2 }
0x13e9   : > { %v2614_v6 = vadd.f32 %v3048_v4, %v2607_v5 }
0x13eb   : > { %2615 = vst.msk [vmem:[%s1099_s10] sm:$0xff] %vm1127_vm1, %v2614_v6 }
0x13ec   : > { %4294 = shalt.err (!%p4291_p4)
}
0x13ed   : > { %s4295_s15 = scalar_lea.hbm %s5445_s14, 128  ;;  %s4299_s6 = scalar_lea.hbm %s5653_s24, 256 }
0x13ee   : > { %p4296_p1 = scmp.ne.s32.totalorder %s5445_s14, %s4295_s15  ;;  %p4300_p3 = scmp.lt.u32.totalorder %s5445_s14, %s5653_s24 }
0x13ef   : > { %p4301_p2 = scmp.lt.u32.totalorder %s4299_s6, %s4295_s15  ;;  %p4303_p12 = scmp.lt.u32.totalorder %s4295_s15, %s5445_s14 }
0x13f0   : > { %p4297_p11 = pnand %p4296_p1, %p5654_p13 }
0x13f1   : > { %p4302_p0 = por %p4301_p2, %p4300_p3 }
0x13f2   : > { %p4298_p6 = pneg %p4297_p11 }
0x13f3   : > { %p4304_p10 = por %p4303_p12, %p4302_p0 }
0x13f5   : > { %p4305_p8 = pnand %p4304_p10, %p4298_p6 }
0x13f7   : > { %4308 = shalt.err (!%p4305_p8)
}
0x13f8   : > { %3354 = dma.vmem_to_hbm [thread:$0]  (%p5654_p13), %s5447_s11, 128, %s5445_s14, %s2617_s16  }
0x13f9 PF: > { %s5655_s26 = sld [smem:[#allocation58_spill]]  ;;  %s5656_s3 = sld [smem:[#allocation61_spill]] }
0x13fa   : > { %p5657_p9 = scmp.ne.s32.totalorder %s5616_s13, 0 }
0x13ff   : > { %s2642_s10 = sand.u32 1, %s5655_s26   ;;  %p5658_p5 = scmp.ge.s32.totalorder %s5656_s3, 2 }
0x1400   : > { %s2643_s1 = scalar_lea.sflag [#allocation5], %s2642_s10 }
0x1401   : > { %p3431_p7 = pnand %p5658_p5, %p5657_p9 }
0x1403   : > { %4386 = dma.done.wait (!%p3431_p7), %s2643_s1, 128  }
0x1404   : > { %4388 = vsyncadd (!%p3431_p7), %s2643_s1, 4294967168  ;;  %s5659_s5 = sld [smem:[#allocation59_spill]]  ;;  %s5660_s26 = sld [smem:[#allocation60_spill]] }
0x1405   : > { %p53_p4 = scmp.ge.s32.totalorder %s5034_s28, 4   ;;  %5661 = sst [smem:[#allocation58_spill]] %s5046_s0 }
0x1407   :  { %55 = sbr.rel (!%p53_p4) target bundleno = 44 (0x2c), region = 271 }
0x140e   :  { %2648 = vsyncpa [#allocation4], 1 }
0x140f   :  { %2650 = vsyncpa [#allocation4 + $0x1], 1 }
0x1410   :  { %2651 = vsyncpa [#allocation7], 1 }
0x1411   :  { %2653 = vsyncpa [#allocation7 + $0x1], 1 }
0x1412   :  { %2654 = vsyncpa [#allocation10], 1 }
0x1413   :  { %2656 = vsyncpa [#allocation10 + $0x1], 1 }
0x1414   :  { %2657 = vsyncpa [#allocation13], 1 }
0x1415   :  { %2658 = vsyncpa [#allocation16], 1 }
0x1416   :  { %2659 = vsyncpa [#allocation19], 1 }
0x1417   :  { %2660 = vsyncpa [#allocation22], 1 }
0x1418   :  { %2661 = vsyncpa [#allocation25], 1 }
0x1419   :  { %2662 = vsyncpa [#allocation28], 1 }
0x141a   :  { %2663 = vsyncpa [#allocation31], 1 }
0x141b   :  { %2664 = vsyncpa [#allocation34], 1 }
0x141c   :  { %2665 = vsyncpa [#allocation37], 1 }
0x141d   :  { %2666 = vsyncpa [#allocation40], 1 }
0x141e   :  { %2667 = vsyncpa [#allocation5], 1 }
0x141f   :  { %2669 = vsyncpa [#allocation5 + $0x1], 1 }

</bundles_post_ra>
